<compile_context>
chip_gen: v7x
topology: tpu7x:2x2x1
jax: 0.10.0
libtpu: 0.0.40
codegen_flags: <defaults>
</compile_context>

<pallas_src>
import jax
import jax.numpy as jnp
from jax.experimental import pallas as pl
from jax.experimental.pallas import tpu as pltpu


TILE_SUB = 8                 # sublane rows of batch per grid step
TILE_B = TILE_SUB * 128      # 1024 batch elements per grid step

# packed-parameter layout (flat f32, total 327 scalars):
#   w1(4x10) b1(10) w2(10x10) b2(10) w3(10x10) b3(10) w4(10x4) b4(4)
#   gamma(4) beta(4) w5(4x1) b5(1)
_LAYERS = [(4, 10), (10, 10), (10, 10), (10, 4)]


def _mlp_kernel(p_ref, x_ref, o_ref):
    # x_ref: (4, TILE_SUB, 128)  -- feature-major, batch on (sublane, lane)
    h = [x_ref[k].astype(jnp.float32) for k in range(4)]

    off = 0
    # ---- dimensionality_dense: 4 x (Linear + Tanh), unrolled VPU FMAs ----
    for (in_dim, out_dim) in _LAYERS:
        w_base = off
        b_base = off + in_dim * out_dim
        new_h = []
        for j in range(out_dim):
            acc = h[0] * p_ref[w_base + 0 * out_dim + j]
            for k in range(1, in_dim):
                acc = acc + h[k] * p_ref[w_base + k * out_dim + j]
            acc = acc + p_ref[b_base + j]
            new_h.append(jnp.tanh(acc))
        h = new_h
        off = b_base + out_dim

    # ---- LayerNorm(4): explicit adds/muls over the 4 feature vregs ----
    mu = (h[0] + h[1] + h[2] + h[3]) * 0.25
    c = [h[k] - mu for k in range(4)]
    var = (c[0] * c[0] + c[1] * c[1] + c[2] * c[2] + c[3] * c[3]) * 0.25
    inv = jax.lax.rsqrt(var + 1e-5)
    g_base = off
    be_base = off + 4
    n = [c[k] * inv * p_ref[g_base + k] + p_ref[be_base + k] for k in range(4)]
    off = be_base + 4

    # ---- head: Linear(4, 1) ----
    w5_base = off
    b5_idx = off + 4
    out = n[0] * p_ref[w5_base + 0]
    for k in range(1, 4):
        out = out + n[k] * p_ref[w5_base + k]
    out = out + p_ref[b5_idx]
    o_ref[...] = out.astype(o_ref.dtype)


def new_model_forward(x, packed_params):
    """x: (B, 4) float32, packed_params: (327,) float32 -> (B, 1) float32."""
    B = x.shape[0]
    Bp = ((B + TILE_B - 1) // TILE_B) * TILE_B
    xp = jnp.pad(x.astype(jnp.float32), ((0, Bp - B), (0, 0)))
    # layout plumbing in the wrapper: batch onto (sublane, lane)
    xt = xp.T.reshape(4, Bp // 128, 128)          # (4, SUB_total, 128)
    num_tiles = Bp // TILE_B

    out = pl.pallas_call(
        _mlp_kernel,
        out_shape=jax.ShapeDtypeStruct((Bp // 128, 128), jnp.float32),
        grid=(num_tiles,),
        in_specs=[
            # all params: one small block, resident in SMEM across the grid
            pl.BlockSpec(memory_space=pltpu.MemorySpace.SMEM),
            # x: one (4, TILE_SUB, 128) batch tile per grid step
            pl.BlockSpec((4, TILE_SUB, 128), lambda i: (0, i, 0)),
        ],
        # lane-dense output tile; reshaped to (B, 1) outside
        out_specs=pl.BlockSpec((TILE_SUB, 128), lambda i: (i, 0)),
        compiler_params=pltpu.CompilerParams(
            dimension_semantics=("parallel",)),
    )(packed_params, xt)

    return out.reshape(Bp, 1)[:B]


# ----------------------------- parameters ---------------------------------

def _init_linear(key, fan_in, fan_out):
    # PyTorch default nn.Linear init: U(-1/sqrt(fan_in), +1/sqrt(fan_in))
    kw, kb = jax.random.split(key)
    bound = 1.0 / jnp.sqrt(jnp.float32(fan_in))
    # stored as (fan_in, fan_out) so x @ W == x @ W_pt.T
    w = jax.random.uniform(kw, (fan_in, fan_out), jnp.float32, -bound, bound)
    b = jax.random.uniform(kb, (1, fan_out), jnp.float32, -bound, bound)
    return w, b


def init_params(key):
    k1, k2, k3, k4, k5 = jax.random.split(key, 5)
    w1, b1 = _init_linear(k1, 4, 10)
    w2, b2 = _init_linear(k2, 10, 10)
    w3, b3 = _init_linear(k3, 10, 10)
    w4, b4 = _init_linear(k4, 10, 4)
    gamma = jnp.ones((1, 4), jnp.float32)     # LayerNorm default affine
    beta = jnp.zeros((1, 4), jnp.float32)
    w5, b5 = _init_linear(k5, 4, 1)
    return (w1, b1, w2, b2, w3, b3, w4, b4, gamma, beta, w5, b5)


def pack_params(params):
    (w1, b1, w2, b2, w3, b3, w4, b4, gamma, beta, w5, b5) = params
    flat = [w1.reshape(-1), b1.reshape(-1),
            w2.reshape(-1), b2.reshape(-1),
            w3.reshape(-1), b3.reshape(-1),
            w4.reshape(-1), b4.reshape(-1),
            gamma.reshape(-1), beta.reshape(-1),
            w5.reshape(-1), b5.reshape(-1)]
    return jnp.concatenate(flat).astype(jnp.float32)   # (327,)


def _reference(x, params):
    (w1, b1, w2, b2, w3, b3, w4, b4, gamma, beta, w5, b5) = params
    h = jnp.tanh(x @ w1 + b1)
    h = jnp.tanh(h @ w2 + b2)
    h = jnp.tanh(h @ w3 + b3)
    h = jnp.tanh(h @ w4 + b4)
    mu = jnp.mean(h, axis=-1, keepdims=True)
    var = jnp.mean((h - mu) ** 2, axis=-1, keepdims=True)
    h = (h - mu) / jnp.sqrt(var + 1e-5) * gamma + beta
    return h @ w5 + b5


if __name__ == "__main__":
    key = jax.random.PRNGKey(0)
    kp, kx = jax.random.split(key)
    params = init_params(kp)
    packed = pack_params(params)
    x = jax.random.normal(kx, (8, 4), jnp.float32)     # batch=8, features=4

    out = new_model_forward(x, packed)
    out = jax.block_until_ready(out)

    ref = _reference(x, params)
    assert out.shape == (8, 1), out.shape
    assert jnp.allclose(out, ref, atol=1e-4, rtol=1e-4), "mismatch vs reference"
    print("KERNEL_OK")
</pallas_src>

<mosaic_0001>
module attributes {stable_mosaic.version = 11 : i64} {
  func.func @_mlp_kernel(%arg0: i32, %arg1: memref<327xf32, #tpu.memory_space<smem>>, %arg2: memref<4x8x128xf32, #tpu.memory_space<vmem>>, %arg3: memref<8x128xf32, #tpu.memory_space<vmem>>) attributes {dimension_semantics = [#tpu.dimension_semantics<parallel>], iteration_bounds = array<i64: 1>, scalar_prefetch = 0 : i64, scratch_operands = 0 : i64, tpu.core_type = #tpu.core_type<tc>, window_params = [{transform_indices = @transform_0, window_bounds = array<i64: 327>}, {transform_indices = @transform_1, window_bounds = array<i64: 4, 8, 128>}, {transform_indices = @transform_2, window_bounds = array<i64: 8, 128>}]} {
    %c0 = arith.constant 0 : index
    %c0_0 = arith.constant 0 : index
    %c0_1 = arith.constant 0 : index
    %0 = vector.load %arg2[%c0, %c0_0, %c0_1] : memref<4x8x128xf32, #tpu.memory_space<vmem>>, vector<1x8x128xf32>
    %1 = vector.shape_cast %0 : vector<1x8x128xf32> to vector<8x128xf32>
    %c1 = arith.constant 1 : index
    %c0_2 = arith.constant 0 : index
    %c0_3 = arith.constant 0 : index
    %2 = vector.load %arg2[%c1, %c0_2, %c0_3] : memref<4x8x128xf32, #tpu.memory_space<vmem>>, vector<1x8x128xf32>
    %3 = vector.shape_cast %2 : vector<1x8x128xf32> to vector<8x128xf32>
    %c2 = arith.constant 2 : index
    %c0_4 = arith.constant 0 : index
    %c0_5 = arith.constant 0 : index
    %4 = vector.load %arg2[%c2, %c0_4, %c0_5] : memref<4x8x128xf32, #tpu.memory_space<vmem>>, vector<1x8x128xf32>
    %5 = vector.shape_cast %4 : vector<1x8x128xf32> to vector<8x128xf32>
    %c3 = arith.constant 3 : index
    %c0_6 = arith.constant 0 : index
    %c0_7 = arith.constant 0 : index
    %6 = vector.load %arg2[%c3, %c0_6, %c0_7] : memref<4x8x128xf32, #tpu.memory_space<vmem>>, vector<1x8x128xf32>
    %7 = vector.shape_cast %6 : vector<1x8x128xf32> to vector<8x128xf32>
    %c0_8 = arith.constant 0 : index
    %8 = memref.load %arg1[%c0_8] : memref<327xf32, #tpu.memory_space<smem>>
    %9 = vector.broadcast %8 : f32 to vector<8x128xf32>
    %10 = arith.mulf %1, %9 : vector<8x128xf32>
    %c10 = arith.constant 10 : index
    %11 = memref.load %arg1[%c10] : memref<327xf32, #tpu.memory_space<smem>>
    %12 = vector.broadcast %11 : f32 to vector<8x128xf32>
    %13 = arith.mulf %3, %12 : vector<8x128xf32>
    %14 = arith.addf %10, %13 : vector<8x128xf32>
    %c20 = arith.constant 20 : index
    %15 = memref.load %arg1[%c20] : memref<327xf32, #tpu.memory_space<smem>>
    %16 = vector.broadcast %15 : f32 to vector<8x128xf32>
    %17 = arith.mulf %5, %16 : vector<8x128xf32>
    %18 = arith.addf %14, %17 : vector<8x128xf32>
    %c30 = arith.constant 30 : index
    %19 = memref.load %arg1[%c30] : memref<327xf32, #tpu.memory_space<smem>>
    %20 = vector.broadcast %19 : f32 to vector<8x128xf32>
    %21 = arith.mulf %7, %20 : vector<8x128xf32>
    %22 = arith.addf %18, %21 : vector<8x128xf32>
    %c40 = arith.constant 40 : index
    %23 = memref.load %arg1[%c40] : memref<327xf32, #tpu.memory_space<smem>>
    %24 = vector.broadcast %23 : f32 to vector<8x128xf32>
    %25 = arith.addf %22, %24 : vector<8x128xf32>
    %26 = math.tanh %25 : vector<8x128xf32>
    %c1_9 = arith.constant 1 : index
    %27 = memref.load %arg1[%c1_9] : memref<327xf32, #tpu.memory_space<smem>>
    %28 = vector.broadcast %27 : f32 to vector<8x128xf32>
    %29 = arith.mulf %1, %28 : vector<8x128xf32>
    %c11 = arith.constant 11 : index
    %30 = memref.load %arg1[%c11] : memref<327xf32, #tpu.memory_space<smem>>
    %31 = vector.broadcast %30 : f32 to vector<8x128xf32>
    %32 = arith.mulf %3, %31 : vector<8x128xf32>
    %33 = arith.addf %29, %32 : vector<8x128xf32>
    %c21 = arith.constant 21 : index
    %34 = memref.load %arg1[%c21] : memref<327xf32, #tpu.memory_space<smem>>
    %35 = vector.broadcast %34 : f32 to vector<8x128xf32>
    %36 = arith.mulf %5, %35 : vector<8x128xf32>
    %37 = arith.addf %33, %36 : vector<8x128xf32>
    %c31 = arith.constant 31 : index
    %38 = memref.load %arg1[%c31] : memref<327xf32, #tpu.memory_space<smem>>
    %39 = vector.broadcast %38 : f32 to vector<8x128xf32>
    %40 = arith.mulf %7, %39 : vector<8x128xf32>
    %41 = arith.addf %37, %40 : vector<8x128xf32>
    %c41 = arith.constant 41 : index
    %42 = memref.load %arg1[%c41] : memref<327xf32, #tpu.memory_space<smem>>
    %43 = vector.broadcast %42 : f32 to vector<8x128xf32>
    %44 = arith.addf %41, %43 : vector<8x128xf32>
    %45 = math.tanh %44 : vector<8x128xf32>
    %c2_10 = arith.constant 2 : index
    %46 = memref.load %arg1[%c2_10] : memref<327xf32, #tpu.memory_space<smem>>
    %47 = vector.broadcast %46 : f32 to vector<8x128xf32>
    %48 = arith.mulf %1, %47 : vector<8x128xf32>
    %c12 = arith.constant 12 : index
    %49 = memref.load %arg1[%c12] : memref<327xf32, #tpu.memory_space<smem>>
    %50 = vector.broadcast %49 : f32 to vector<8x128xf32>
    %51 = arith.mulf %3, %50 : vector<8x128xf32>
    %52 = arith.addf %48, %51 : vector<8x128xf32>
    %c22 = arith.constant 22 : index
    %53 = memref.load %arg1[%c22] : memref<327xf32, #tpu.memory_space<smem>>
    %54 = vector.broadcast %53 : f32 to vector<8x128xf32>
    %55 = arith.mulf %5, %54 : vector<8x128xf32>
    %56 = arith.addf %52, %55 : vector<8x128xf32>
    %c32 = arith.constant 32 : index
    %57 = memref.load %arg1[%c32] : memref<327xf32, #tpu.memory_space<smem>>
    %58 = vector.broadcast %57 : f32 to vector<8x128xf32>
    %59 = arith.mulf %7, %58 : vector<8x128xf32>
    %60 = arith.addf %56, %59 : vector<8x128xf32>
    %c42 = arith.constant 42 : index
    %61 = memref.load %arg1[%c42] : memref<327xf32, #tpu.memory_space<smem>>
    %62 = vector.broadcast %61 : f32 to vector<8x128xf32>
    %63 = arith.addf %60, %62 : vector<8x128xf32>
    %64 = math.tanh %63 : vector<8x128xf32>
    %c3_11 = arith.constant 3 : index
    %65 = memref.load %arg1[%c3_11] : memref<327xf32, #tpu.memory_space<smem>>
    %66 = vector.broadcast %65 : f32 to vector<8x128xf32>
    %67 = arith.mulf %1, %66 : vector<8x128xf32>
    %c13 = arith.constant 13 : index
    %68 = memref.load %arg1[%c13] : memref<327xf32, #tpu.memory_space<smem>>
    %69 = vector.broadcast %68 : f32 to vector<8x128xf32>
    %70 = arith.mulf %3, %69 : vector<8x128xf32>
    %71 = arith.addf %67, %70 : vector<8x128xf32>
    %c23 = arith.constant 23 : index
    %72 = memref.load %arg1[%c23] : memref<327xf32, #tpu.memory_space<smem>>
    %73 = vector.broadcast %72 : f32 to vector<8x128xf32>
    %74 = arith.mulf %5, %73 : vector<8x128xf32>
    %75 = arith.addf %71, %74 : vector<8x128xf32>
    %c33 = arith.constant 33 : index
    %76 = memref.load %arg1[%c33] : memref<327xf32, #tpu.memory_space<smem>>
    %77 = vector.broadcast %76 : f32 to vector<8x128xf32>
    %78 = arith.mulf %7, %77 : vector<8x128xf32>
    %79 = arith.addf %75, %78 : vector<8x128xf32>
    %c43 = arith.constant 43 : index
    %80 = memref.load %arg1[%c43] : memref<327xf32, #tpu.memory_space<smem>>
    %81 = vector.broadcast %80 : f32 to vector<8x128xf32>
    %82 = arith.addf %79, %81 : vector<8x128xf32>
    %83 = math.tanh %82 : vector<8x128xf32>
    %c4 = arith.constant 4 : index
    %84 = memref.load %arg1[%c4] : memref<327xf32, #tpu.memory_space<smem>>
    %85 = vector.broadcast %84 : f32 to vector<8x128xf32>
    %86 = arith.mulf %1, %85 : vector<8x128xf32>
    %c14 = arith.constant 14 : index
    %87 = memref.load %arg1[%c14] : memref<327xf32, #tpu.memory_space<smem>>
    %88 = vector.broadcast %87 : f32 to vector<8x128xf32>
    %89 = arith.mulf %3, %88 : vector<8x128xf32>
    %90 = arith.addf %86, %89 : vector<8x128xf32>
    %c24 = arith.constant 24 : index
    %91 = memref.load %arg1[%c24] : memref<327xf32, #tpu.memory_space<smem>>
    %92 = vector.broadcast %91 : f32 to vector<8x128xf32>
    %93 = arith.mulf %5, %92 : vector<8x128xf32>
    %94 = arith.addf %90, %93 : vector<8x128xf32>
    %c34 = arith.constant 34 : index
    %95 = memref.load %arg1[%c34] : memref<327xf32, #tpu.memory_space<smem>>
    %96 = vector.broadcast %95 : f32 to vector<8x128xf32>
    %97 = arith.mulf %7, %96 : vector<8x128xf32>
    %98 = arith.addf %94, %97 : vector<8x128xf32>
    %c44 = arith.constant 44 : index
    %99 = memref.load %arg1[%c44] : memref<327xf32, #tpu.memory_space<smem>>
    %100 = vector.broadcast %99 : f32 to vector<8x128xf32>
    %101 = arith.addf %98, %100 : vector<8x128xf32>
    %102 = math.tanh %101 : vector<8x128xf32>
    %c5 = arith.constant 5 : index
    %103 = memref.load %arg1[%c5] : memref<327xf32, #tpu.memory_space<smem>>
    %104 = vector.broadcast %103 : f32 to vector<8x128xf32>
    %105 = arith.mulf %1, %104 : vector<8x128xf32>
    %c15 = arith.constant 15 : index
    %106 = memref.load %arg1[%c15] : memref<327xf32, #tpu.memory_space<smem>>
    %107 = vector.broadcast %106 : f32 to vector<8x128xf32>
    %108 = arith.mulf %3, %107 : vector<8x128xf32>
    %109 = arith.addf %105, %108 : vector<8x128xf32>
    %c25 = arith.constant 25 : index
    %110 = memref.load %arg1[%c25] : memref<327xf32, #tpu.memory_space<smem>>
    %111 = vector.broadcast %110 : f32 to vector<8x128xf32>
    %112 = arith.mulf %5, %111 : vector<8x128xf32>
    %113 = arith.addf %109, %112 : vector<8x128xf32>
    %c35 = arith.constant 35 : index
    %114 = memref.load %arg1[%c35] : memref<327xf32, #tpu.memory_space<smem>>
    %115 = vector.broadcast %114 : f32 to vector<8x128xf32>
    %116 = arith.mulf %7, %115 : vector<8x128xf32>
    %117 = arith.addf %113, %116 : vector<8x128xf32>
    %c45 = arith.constant 45 : index
    %118 = memref.load %arg1[%c45] : memref<327xf32, #tpu.memory_space<smem>>
    %119 = vector.broadcast %118 : f32 to vector<8x128xf32>
    %120 = arith.addf %117, %119 : vector<8x128xf32>
    %121 = math.tanh %120 : vector<8x128xf32>
    %c6 = arith.constant 6 : index
    %122 = memref.load %arg1[%c6] : memref<327xf32, #tpu.memory_space<smem>>
    %123 = vector.broadcast %122 : f32 to vector<8x128xf32>
    %124 = arith.mulf %1, %123 : vector<8x128xf32>
    %c16 = arith.constant 16 : index
    %125 = memref.load %arg1[%c16] : memref<327xf32, #tpu.memory_space<smem>>
    %126 = vector.broadcast %125 : f32 to vector<8x128xf32>
    %127 = arith.mulf %3, %126 : vector<8x128xf32>
    %128 = arith.addf %124, %127 : vector<8x128xf32>
    %c26 = arith.constant 26 : index
    %129 = memref.load %arg1[%c26] : memref<327xf32, #tpu.memory_space<smem>>
    %130 = vector.broadcast %129 : f32 to vector<8x128xf32>
    %131 = arith.mulf %5, %130 : vector<8x128xf32>
    %132 = arith.addf %128, %131 : vector<8x128xf32>
    %c36 = arith.constant 36 : index
    %133 = memref.load %arg1[%c36] : memref<327xf32, #tpu.memory_space<smem>>
    %134 = vector.broadcast %133 : f32 to vector<8x128xf32>
    %135 = arith.mulf %7, %134 : vector<8x128xf32>
    %136 = arith.addf %132, %135 : vector<8x128xf32>
    %c46 = arith.constant 46 : index
    %137 = memref.load %arg1[%c46] : memref<327xf32, #tpu.memory_space<smem>>
    %138 = vector.broadcast %137 : f32 to vector<8x128xf32>
    %139 = arith.addf %136, %138 : vector<8x128xf32>
    %140 = math.tanh %139 : vector<8x128xf32>
    %c7 = arith.constant 7 : index
    %141 = memref.load %arg1[%c7] : memref<327xf32, #tpu.memory_space<smem>>
    %142 = vector.broadcast %141 : f32 to vector<8x128xf32>
    %143 = arith.mulf %1, %142 : vector<8x128xf32>
    %c17 = arith.constant 17 : index
    %144 = memref.load %arg1[%c17] : memref<327xf32, #tpu.memory_space<smem>>
    %145 = vector.broadcast %144 : f32 to vector<8x128xf32>
    %146 = arith.mulf %3, %145 : vector<8x128xf32>
    %147 = arith.addf %143, %146 : vector<8x128xf32>
    %c27 = arith.constant 27 : index
    %148 = memref.load %arg1[%c27] : memref<327xf32, #tpu.memory_space<smem>>
    %149 = vector.broadcast %148 : f32 to vector<8x128xf32>
    %150 = arith.mulf %5, %149 : vector<8x128xf32>
    %151 = arith.addf %147, %150 : vector<8x128xf32>
    %c37 = arith.constant 37 : index
    %152 = memref.load %arg1[%c37] : memref<327xf32, #tpu.memory_space<smem>>
    %153 = vector.broadcast %152 : f32 to vector<8x128xf32>
    %154 = arith.mulf %7, %153 : vector<8x128xf32>
    %155 = arith.addf %151, %154 : vector<8x128xf32>
    %c47 = arith.constant 47 : index
    %156 = memref.load %arg1[%c47] : memref<327xf32, #tpu.memory_space<smem>>
    %157 = vector.broadcast %156 : f32 to vector<8x128xf32>
    %158 = arith.addf %155, %157 : vector<8x128xf32>
    %159 = math.tanh %158 : vector<8x128xf32>
    %c8 = arith.constant 8 : index
    %160 = memref.load %arg1[%c8] : memref<327xf32, #tpu.memory_space<smem>>
    %161 = vector.broadcast %160 : f32 to vector<8x128xf32>
    %162 = arith.mulf %1, %161 : vector<8x128xf32>
    %c18 = arith.constant 18 : index
    %163 = memref.load %arg1[%c18] : memref<327xf32, #tpu.memory_space<smem>>
    %164 = vector.broadcast %163 : f32 to vector<8x128xf32>
    %165 = arith.mulf %3, %164 : vector<8x128xf32>
    %166 = arith.addf %162, %165 : vector<8x128xf32>
    %c28 = arith.constant 28 : index
    %167 = memref.load %arg1[%c28] : memref<327xf32, #tpu.memory_space<smem>>
    %168 = vector.broadcast %167 : f32 to vector<8x128xf32>
    %169 = arith.mulf %5, %168 : vector<8x128xf32>
    %170 = arith.addf %166, %169 : vector<8x128xf32>
    %c38 = arith.constant 38 : index
    %171 = memref.load %arg1[%c38] : memref<327xf32, #tpu.memory_space<smem>>
    %172 = vector.broadcast %171 : f32 to vector<8x128xf32>
    %173 = arith.mulf %7, %172 : vector<8x128xf32>
    %174 = arith.addf %170, %173 : vector<8x128xf32>
    %c48 = arith.constant 48 : index
    %175 = memref.load %arg1[%c48] : memref<327xf32, #tpu.memory_space<smem>>
    %176 = vector.broadcast %175 : f32 to vector<8x128xf32>
    %177 = arith.addf %174, %176 : vector<8x128xf32>
    %178 = math.tanh %177 : vector<8x128xf32>
    %c9 = arith.constant 9 : index
    %179 = memref.load %arg1[%c9] : memref<327xf32, #tpu.memory_space<smem>>
    %180 = vector.broadcast %179 : f32 to vector<8x128xf32>
    %181 = arith.mulf %1, %180 : vector<8x128xf32>
    %c19 = arith.constant 19 : index
    %182 = memref.load %arg1[%c19] : memref<327xf32, #tpu.memory_space<smem>>
    %183 = vector.broadcast %182 : f32 to vector<8x128xf32>
    %184 = arith.mulf %3, %183 : vector<8x128xf32>
    %185 = arith.addf %181, %184 : vector<8x128xf32>
    %c29 = arith.constant 29 : index
    %186 = memref.load %arg1[%c29] : memref<327xf32, #tpu.memory_space<smem>>
    %187 = vector.broadcast %186 : f32 to vector<8x128xf32>
    %188 = arith.mulf %5, %187 : vector<8x128xf32>
    %189 = arith.addf %185, %188 : vector<8x128xf32>
    %c39 = arith.constant 39 : index
    %190 = memref.load %arg1[%c39] : memref<327xf32, #tpu.memory_space<smem>>
    %191 = vector.broadcast %190 : f32 to vector<8x128xf32>
    %192 = arith.mulf %7, %191 : vector<8x128xf32>
    %193 = arith.addf %189, %192 : vector<8x128xf32>
    %c49 = arith.constant 49 : index
    %194 = memref.load %arg1[%c49] : memref<327xf32, #tpu.memory_space<smem>>
    %195 = vector.broadcast %194 : f32 to vector<8x128xf32>
    %196 = arith.addf %193, %195 : vector<8x128xf32>
    %197 = math.tanh %196 : vector<8x128xf32>
    %c50 = arith.constant 50 : index
    %198 = memref.load %arg1[%c50] : memref<327xf32, #tpu.memory_space<smem>>
    %199 = vector.broadcast %198 : f32 to vector<8x128xf32>
    %200 = arith.mulf %26, %199 : vector<8x128xf32>
    %c60 = arith.constant 60 : index
    %201 = memref.load %arg1[%c60] : memref<327xf32, #tpu.memory_space<smem>>
    %202 = vector.broadcast %201 : f32 to vector<8x128xf32>
    %203 = arith.mulf %45, %202 : vector<8x128xf32>
    %204 = arith.addf %200, %203 : vector<8x128xf32>
    %c70 = arith.constant 70 : index
    %205 = memref.load %arg1[%c70] : memref<327xf32, #tpu.memory_space<smem>>
    %206 = vector.broadcast %205 : f32 to vector<8x128xf32>
    %207 = arith.mulf %64, %206 : vector<8x128xf32>
    %208 = arith.addf %204, %207 : vector<8x128xf32>
    %c80 = arith.constant 80 : index
    %209 = memref.load %arg1[%c80] : memref<327xf32, #tpu.memory_space<smem>>
    %210 = vector.broadcast %209 : f32 to vector<8x128xf32>
    %211 = arith.mulf %83, %210 : vector<8x128xf32>
    %212 = arith.addf %208, %211 : vector<8x128xf32>
    %c90 = arith.constant 90 : index
    %213 = memref.load %arg1[%c90] : memref<327xf32, #tpu.memory_space<smem>>
    %214 = vector.broadcast %213 : f32 to vector<8x128xf32>
    %215 = arith.mulf %102, %214 : vector<8x128xf32>
    %216 = arith.addf %212, %215 : vector<8x128xf32>
    %c100 = arith.constant 100 : index
    %217 = memref.load %arg1[%c100] : memref<327xf32, #tpu.memory_space<smem>>
    %218 = vector.broadcast %217 : f32 to vector<8x128xf32>
    %219 = arith.mulf %121, %218 : vector<8x128xf32>
    %220 = arith.addf %216, %219 : vector<8x128xf32>
    %c110 = arith.constant 110 : index
    %221 = memref.load %arg1[%c110] : memref<327xf32, #tpu.memory_space<smem>>
    %222 = vector.broadcast %221 : f32 to vector<8x128xf32>
    %223 = arith.mulf %140, %222 : vector<8x128xf32>
    %224 = arith.addf %220, %223 : vector<8x128xf32>
    %c120 = arith.constant 120 : index
    %225 = memref.load %arg1[%c120] : memref<327xf32, #tpu.memory_space<smem>>
    %226 = vector.broadcast %225 : f32 to vector<8x128xf32>
    %227 = arith.mulf %159, %226 : vector<8x128xf32>
    %228 = arith.addf %224, %227 : vector<8x128xf32>
    %c130 = arith.constant 130 : index
    %229 = memref.load %arg1[%c130] : memref<327xf32, #tpu.memory_space<smem>>
    %230 = vector.broadcast %229 : f32 to vector<8x128xf32>
    %231 = arith.mulf %178, %230 : vector<8x128xf32>
    %232 = arith.addf %228, %231 : vector<8x128xf32>
    %c140 = arith.constant 140 : index
    %233 = memref.load %arg1[%c140] : memref<327xf32, #tpu.memory_space<smem>>
    %234 = vector.broadcast %233 : f32 to vector<8x128xf32>
    %235 = arith.mulf %197, %234 : vector<8x128xf32>
    %236 = arith.addf %232, %235 : vector<8x128xf32>
    %c150 = arith.constant 150 : index
    %237 = memref.load %arg1[%c150] : memref<327xf32, #tpu.memory_space<smem>>
    %238 = vector.broadcast %237 : f32 to vector<8x128xf32>
    %239 = arith.addf %236, %238 : vector<8x128xf32>
    %240 = math.tanh %239 : vector<8x128xf32>
    %c51 = arith.constant 51 : index
    %241 = memref.load %arg1[%c51] : memref<327xf32, #tpu.memory_space<smem>>
    %242 = vector.broadcast %241 : f32 to vector<8x128xf32>
    %243 = arith.mulf %26, %242 : vector<8x128xf32>
    %c61 = arith.constant 61 : index
    %244 = memref.load %arg1[%c61] : memref<327xf32, #tpu.memory_space<smem>>
    %245 = vector.broadcast %244 : f32 to vector<8x128xf32>
    %246 = arith.mulf %45, %245 : vector<8x128xf32>
    %247 = arith.addf %243, %246 : vector<8x128xf32>
    %c71 = arith.constant 71 : index
    %248 = memref.load %arg1[%c71] : memref<327xf32, #tpu.memory_space<smem>>
    %249 = vector.broadcast %248 : f32 to vector<8x128xf32>
    %250 = arith.mulf %64, %249 : vector<8x128xf32>
    %251 = arith.addf %247, %250 : vector<8x128xf32>
    %c81 = arith.constant 81 : index
    %252 = memref.load %arg1[%c81] : memref<327xf32, #tpu.memory_space<smem>>
    %253 = vector.broadcast %252 : f32 to vector<8x128xf32>
    %254 = arith.mulf %83, %253 : vector<8x128xf32>
    %255 = arith.addf %251, %254 : vector<8x128xf32>
    %c91 = arith.constant 91 : index
    %256 = memref.load %arg1[%c91] : memref<327xf32, #tpu.memory_space<smem>>
    %257 = vector.broadcast %256 : f32 to vector<8x128xf32>
    %258 = arith.mulf %102, %257 : vector<8x128xf32>
    %259 = arith.addf %255, %258 : vector<8x128xf32>
    %c101 = arith.constant 101 : index
    %260 = memref.load %arg1[%c101] : memref<327xf32, #tpu.memory_space<smem>>
    %261 = vector.broadcast %260 : f32 to vector<8x128xf32>
    %262 = arith.mulf %121, %261 : vector<8x128xf32>
    %263 = arith.addf %259, %262 : vector<8x128xf32>
    %c111 = arith.constant 111 : index
    %264 = memref.load %arg1[%c111] : memref<327xf32, #tpu.memory_space<smem>>
    %265 = vector.broadcast %264 : f32 to vector<8x128xf32>
    %266 = arith.mulf %140, %265 : vector<8x128xf32>
    %267 = arith.addf %263, %266 : vector<8x128xf32>
    %c121 = arith.constant 121 : index
    %268 = memref.load %arg1[%c121] : memref<327xf32, #tpu.memory_space<smem>>
    %269 = vector.broadcast %268 : f32 to vector<8x128xf32>
    %270 = arith.mulf %159, %269 : vector<8x128xf32>
    %271 = arith.addf %267, %270 : vector<8x128xf32>
    %c131 = arith.constant 131 : index
    %272 = memref.load %arg1[%c131] : memref<327xf32, #tpu.memory_space<smem>>
    %273 = vector.broadcast %272 : f32 to vector<8x128xf32>
    %274 = arith.mulf %178, %273 : vector<8x128xf32>
    %275 = arith.addf %271, %274 : vector<8x128xf32>
    %c141 = arith.constant 141 : index
    %276 = memref.load %arg1[%c141] : memref<327xf32, #tpu.memory_space<smem>>
    %277 = vector.broadcast %276 : f32 to vector<8x128xf32>
    %278 = arith.mulf %197, %277 : vector<8x128xf32>
    %279 = arith.addf %275, %278 : vector<8x128xf32>
    %c151 = arith.constant 151 : index
    %280 = memref.load %arg1[%c151] : memref<327xf32, #tpu.memory_space<smem>>
    %281 = vector.broadcast %280 : f32 to vector<8x128xf32>
    %282 = arith.addf %279, %281 : vector<8x128xf32>
    %283 = math.tanh %282 : vector<8x128xf32>
    %c52 = arith.constant 52 : index
    %284 = memref.load %arg1[%c52] : memref<327xf32, #tpu.memory_space<smem>>
    %285 = vector.broadcast %284 : f32 to vector<8x128xf32>
    %286 = arith.mulf %26, %285 : vector<8x128xf32>
    %c62 = arith.constant 62 : index
    %287 = memref.load %arg1[%c62] : memref<327xf32, #tpu.memory_space<smem>>
    %288 = vector.broadcast %287 : f32 to vector<8x128xf32>
    %289 = arith.mulf %45, %288 : vector<8x128xf32>
    %290 = arith.addf %286, %289 : vector<8x128xf32>
    %c72 = arith.constant 72 : index
    %291 = memref.load %arg1[%c72] : memref<327xf32, #tpu.memory_space<smem>>
    %292 = vector.broadcast %291 : f32 to vector<8x128xf32>
    %293 = arith.mulf %64, %292 : vector<8x128xf32>
    %294 = arith.addf %290, %293 : vector<8x128xf32>
    %c82 = arith.constant 82 : index
    %295 = memref.load %arg1[%c82] : memref<327xf32, #tpu.memory_space<smem>>
    %296 = vector.broadcast %295 : f32 to vector<8x128xf32>
    %297 = arith.mulf %83, %296 : vector<8x128xf32>
    %298 = arith.addf %294, %297 : vector<8x128xf32>
    %c92 = arith.constant 92 : index
    %299 = memref.load %arg1[%c92] : memref<327xf32, #tpu.memory_space<smem>>
    %300 = vector.broadcast %299 : f32 to vector<8x128xf32>
    %301 = arith.mulf %102, %300 : vector<8x128xf32>
    %302 = arith.addf %298, %301 : vector<8x128xf32>
    %c102 = arith.constant 102 : index
    %303 = memref.load %arg1[%c102] : memref<327xf32, #tpu.memory_space<smem>>
    %304 = vector.broadcast %303 : f32 to vector<8x128xf32>
    %305 = arith.mulf %121, %304 : vector<8x128xf32>
    %306 = arith.addf %302, %305 : vector<8x128xf32>
    %c112 = arith.constant 112 : index
    %307 = memref.load %arg1[%c112] : memref<327xf32, #tpu.memory_space<smem>>
    %308 = vector.broadcast %307 : f32 to vector<8x128xf32>
    %309 = arith.mulf %140, %308 : vector<8x128xf32>
    %310 = arith.addf %306, %309 : vector<8x128xf32>
    %c122 = arith.constant 122 : index
    %311 = memref.load %arg1[%c122] : memref<327xf32, #tpu.memory_space<smem>>
    %312 = vector.broadcast %311 : f32 to vector<8x128xf32>
    %313 = arith.mulf %159, %312 : vector<8x128xf32>
    %314 = arith.addf %310, %313 : vector<8x128xf32>
    %c132 = arith.constant 132 : index
    %315 = memref.load %arg1[%c132] : memref<327xf32, #tpu.memory_space<smem>>
    %316 = vector.broadcast %315 : f32 to vector<8x128xf32>
    %317 = arith.mulf %178, %316 : vector<8x128xf32>
    %318 = arith.addf %314, %317 : vector<8x128xf32>
    %c142 = arith.constant 142 : index
    %319 = memref.load %arg1[%c142] : memref<327xf32, #tpu.memory_space<smem>>
    %320 = vector.broadcast %319 : f32 to vector<8x128xf32>
    %321 = arith.mulf %197, %320 : vector<8x128xf32>
    %322 = arith.addf %318, %321 : vector<8x128xf32>
    %c152 = arith.constant 152 : index
    %323 = memref.load %arg1[%c152] : memref<327xf32, #tpu.memory_space<smem>>
    %324 = vector.broadcast %323 : f32 to vector<8x128xf32>
    %325 = arith.addf %322, %324 : vector<8x128xf32>
    %326 = math.tanh %325 : vector<8x128xf32>
    %c53 = arith.constant 53 : index
    %327 = memref.load %arg1[%c53] : memref<327xf32, #tpu.memory_space<smem>>
    %328 = vector.broadcast %327 : f32 to vector<8x128xf32>
    %329 = arith.mulf %26, %328 : vector<8x128xf32>
    %c63 = arith.constant 63 : index
    %330 = memref.load %arg1[%c63] : memref<327xf32, #tpu.memory_space<smem>>
    %331 = vector.broadcast %330 : f32 to vector<8x128xf32>
    %332 = arith.mulf %45, %331 : vector<8x128xf32>
    %333 = arith.addf %329, %332 : vector<8x128xf32>
    %c73 = arith.constant 73 : index
    %334 = memref.load %arg1[%c73] : memref<327xf32, #tpu.memory_space<smem>>
    %335 = vector.broadcast %334 : f32 to vector<8x128xf32>
    %336 = arith.mulf %64, %335 : vector<8x128xf32>
    %337 = arith.addf %333, %336 : vector<8x128xf32>
    %c83 = arith.constant 83 : index
    %338 = memref.load %arg1[%c83] : memref<327xf32, #tpu.memory_space<smem>>
    %339 = vector.broadcast %338 : f32 to vector<8x128xf32>
    %340 = arith.mulf %83, %339 : vector<8x128xf32>
    %341 = arith.addf %337, %340 : vector<8x128xf32>
    %c93 = arith.constant 93 : index
    %342 = memref.load %arg1[%c93] : memref<327xf32, #tpu.memory_space<smem>>
    %343 = vector.broadcast %342 : f32 to vector<8x128xf32>
    %344 = arith.mulf %102, %343 : vector<8x128xf32>
    %345 = arith.addf %341, %344 : vector<8x128xf32>
    %c103 = arith.constant 103 : index
    %346 = memref.load %arg1[%c103] : memref<327xf32, #tpu.memory_space<smem>>
    %347 = vector.broadcast %346 : f32 to vector<8x128xf32>
    %348 = arith.mulf %121, %347 : vector<8x128xf32>
    %349 = arith.addf %345, %348 : vector<8x128xf32>
    %c113 = arith.constant 113 : index
    %350 = memref.load %arg1[%c113] : memref<327xf32, #tpu.memory_space<smem>>
    %351 = vector.broadcast %350 : f32 to vector<8x128xf32>
    %352 = arith.mulf %140, %351 : vector<8x128xf32>
    %353 = arith.addf %349, %352 : vector<8x128xf32>
    %c123 = arith.constant 123 : index
    %354 = memref.load %arg1[%c123] : memref<327xf32, #tpu.memory_space<smem>>
    %355 = vector.broadcast %354 : f32 to vector<8x128xf32>
    %356 = arith.mulf %159, %355 : vector<8x128xf32>
    %357 = arith.addf %353, %356 : vector<8x128xf32>
    %c133 = arith.constant 133 : index
    %358 = memref.load %arg1[%c133] : memref<327xf32, #tpu.memory_space<smem>>
    %359 = vector.broadcast %358 : f32 to vector<8x128xf32>
    %360 = arith.mulf %178, %359 : vector<8x128xf32>
    %361 = arith.addf %357, %360 : vector<8x128xf32>
    %c143 = arith.constant 143 : index
    %362 = memref.load %arg1[%c143] : memref<327xf32, #tpu.memory_space<smem>>
    %363 = vector.broadcast %362 : f32 to vector<8x128xf32>
    %364 = arith.mulf %197, %363 : vector<8x128xf32>
    %365 = arith.addf %361, %364 : vector<8x128xf32>
    %c153 = arith.constant 153 : index
    %366 = memref.load %arg1[%c153] : memref<327xf32, #tpu.memory_space<smem>>
    %367 = vector.broadcast %366 : f32 to vector<8x128xf32>
    %368 = arith.addf %365, %367 : vector<8x128xf32>
    %369 = math.tanh %368 : vector<8x128xf32>
    %c54 = arith.constant 54 : index
    %370 = memref.load %arg1[%c54] : memref<327xf32, #tpu.memory_space<smem>>
    %371 = vector.broadcast %370 : f32 to vector<8x128xf32>
    %372 = arith.mulf %26, %371 : vector<8x128xf32>
    %c64 = arith.constant 64 : index
    %373 = memref.load %arg1[%c64] : memref<327xf32, #tpu.memory_space<smem>>
    %374 = vector.broadcast %373 : f32 to vector<8x128xf32>
    %375 = arith.mulf %45, %374 : vector<8x128xf32>
    %376 = arith.addf %372, %375 : vector<8x128xf32>
    %c74 = arith.constant 74 : index
    %377 = memref.load %arg1[%c74] : memref<327xf32, #tpu.memory_space<smem>>
    %378 = vector.broadcast %377 : f32 to vector<8x128xf32>
    %379 = arith.mulf %64, %378 : vector<8x128xf32>
    %380 = arith.addf %376, %379 : vector<8x128xf32>
    %c84 = arith.constant 84 : index
    %381 = memref.load %arg1[%c84] : memref<327xf32, #tpu.memory_space<smem>>
    %382 = vector.broadcast %381 : f32 to vector<8x128xf32>
    %383 = arith.mulf %83, %382 : vector<8x128xf32>
    %384 = arith.addf %380, %383 : vector<8x128xf32>
    %c94 = arith.constant 94 : index
    %385 = memref.load %arg1[%c94] : memref<327xf32, #tpu.memory_space<smem>>
    %386 = vector.broadcast %385 : f32 to vector<8x128xf32>
    %387 = arith.mulf %102, %386 : vector<8x128xf32>
    %388 = arith.addf %384, %387 : vector<8x128xf32>
    %c104 = arith.constant 104 : index
    %389 = memref.load %arg1[%c104] : memref<327xf32, #tpu.memory_space<smem>>
    %390 = vector.broadcast %389 : f32 to vector<8x128xf32>
    %391 = arith.mulf %121, %390 : vector<8x128xf32>
    %392 = arith.addf %388, %391 : vector<8x128xf32>
    %c114 = arith.constant 114 : index
    %393 = memref.load %arg1[%c114] : memref<327xf32, #tpu.memory_space<smem>>
    %394 = vector.broadcast %393 : f32 to vector<8x128xf32>
    %395 = arith.mulf %140, %394 : vector<8x128xf32>
    %396 = arith.addf %392, %395 : vector<8x128xf32>
    %c124 = arith.constant 124 : index
    %397 = memref.load %arg1[%c124] : memref<327xf32, #tpu.memory_space<smem>>
    %398 = vector.broadcast %397 : f32 to vector<8x128xf32>
    %399 = arith.mulf %159, %398 : vector<8x128xf32>
    %400 = arith.addf %396, %399 : vector<8x128xf32>
    %c134 = arith.constant 134 : index
    %401 = memref.load %arg1[%c134] : memref<327xf32, #tpu.memory_space<smem>>
    %402 = vector.broadcast %401 : f32 to vector<8x128xf32>
    %403 = arith.mulf %178, %402 : vector<8x128xf32>
    %404 = arith.addf %400, %403 : vector<8x128xf32>
    %c144 = arith.constant 144 : index
    %405 = memref.load %arg1[%c144] : memref<327xf32, #tpu.memory_space<smem>>
    %406 = vector.broadcast %405 : f32 to vector<8x128xf32>
    %407 = arith.mulf %197, %406 : vector<8x128xf32>
    %408 = arith.addf %404, %407 : vector<8x128xf32>
    %c154 = arith.constant 154 : index
    %409 = memref.load %arg1[%c154] : memref<327xf32, #tpu.memory_space<smem>>
    %410 = vector.broadcast %409 : f32 to vector<8x128xf32>
    %411 = arith.addf %408, %410 : vector<8x128xf32>
    %412 = math.tanh %411 : vector<8x128xf32>
    %c55 = arith.constant 55 : index
    %413 = memref.load %arg1[%c55] : memref<327xf32, #tpu.memory_space<smem>>
    %414 = vector.broadcast %413 : f32 to vector<8x128xf32>
    %415 = arith.mulf %26, %414 : vector<8x128xf32>
    %c65 = arith.constant 65 : index
    %416 = memref.load %arg1[%c65] : memref<327xf32, #tpu.memory_space<smem>>
    %417 = vector.broadcast %416 : f32 to vector<8x128xf32>
    %418 = arith.mulf %45, %417 : vector<8x128xf32>
    %419 = arith.addf %415, %418 : vector<8x128xf32>
    %c75 = arith.constant 75 : index
    %420 = memref.load %arg1[%c75] : memref<327xf32, #tpu.memory_space<smem>>
    %421 = vector.broadcast %420 : f32 to vector<8x128xf32>
    %422 = arith.mulf %64, %421 : vector<8x128xf32>
    %423 = arith.addf %419, %422 : vector<8x128xf32>
    %c85 = arith.constant 85 : index
    %424 = memref.load %arg1[%c85] : memref<327xf32, #tpu.memory_space<smem>>
    %425 = vector.broadcast %424 : f32 to vector<8x128xf32>
    %426 = arith.mulf %83, %425 : vector<8x128xf32>
    %427 = arith.addf %423, %426 : vector<8x128xf32>
    %c95 = arith.constant 95 : index
    %428 = memref.load %arg1[%c95] : memref<327xf32, #tpu.memory_space<smem>>
    %429 = vector.broadcast %428 : f32 to vector<8x128xf32>
    %430 = arith.mulf %102, %429 : vector<8x128xf32>
    %431 = arith.addf %427, %430 : vector<8x128xf32>
    %c105 = arith.constant 105 : index
    %432 = memref.load %arg1[%c105] : memref<327xf32, #tpu.memory_space<smem>>
    %433 = vector.broadcast %432 : f32 to vector<8x128xf32>
    %434 = arith.mulf %121, %433 : vector<8x128xf32>
    %435 = arith.addf %431, %434 : vector<8x128xf32>
    %c115 = arith.constant 115 : index
    %436 = memref.load %arg1[%c115] : memref<327xf32, #tpu.memory_space<smem>>
    %437 = vector.broadcast %436 : f32 to vector<8x128xf32>
    %438 = arith.mulf %140, %437 : vector<8x128xf32>
    %439 = arith.addf %435, %438 : vector<8x128xf32>
    %c125 = arith.constant 125 : index
    %440 = memref.load %arg1[%c125] : memref<327xf32, #tpu.memory_space<smem>>
    %441 = vector.broadcast %440 : f32 to vector<8x128xf32>
    %442 = arith.mulf %159, %441 : vector<8x128xf32>
    %443 = arith.addf %439, %442 : vector<8x128xf32>
    %c135 = arith.constant 135 : index
    %444 = memref.load %arg1[%c135] : memref<327xf32, #tpu.memory_space<smem>>
    %445 = vector.broadcast %444 : f32 to vector<8x128xf32>
    %446 = arith.mulf %178, %445 : vector<8x128xf32>
    %447 = arith.addf %443, %446 : vector<8x128xf32>
    %c145 = arith.constant 145 : index
    %448 = memref.load %arg1[%c145] : memref<327xf32, #tpu.memory_space<smem>>
    %449 = vector.broadcast %448 : f32 to vector<8x128xf32>
    %450 = arith.mulf %197, %449 : vector<8x128xf32>
    %451 = arith.addf %447, %450 : vector<8x128xf32>
    %c155 = arith.constant 155 : index
    %452 = memref.load %arg1[%c155] : memref<327xf32, #tpu.memory_space<smem>>
    %453 = vector.broadcast %452 : f32 to vector<8x128xf32>
    %454 = arith.addf %451, %453 : vector<8x128xf32>
    %455 = math.tanh %454 : vector<8x128xf32>
    %c56 = arith.constant 56 : index
    %456 = memref.load %arg1[%c56] : memref<327xf32, #tpu.memory_space<smem>>
    %457 = vector.broadcast %456 : f32 to vector<8x128xf32>
    %458 = arith.mulf %26, %457 : vector<8x128xf32>
    %c66 = arith.constant 66 : index
    %459 = memref.load %arg1[%c66] : memref<327xf32, #tpu.memory_space<smem>>
    %460 = vector.broadcast %459 : f32 to vector<8x128xf32>
    %461 = arith.mulf %45, %460 : vector<8x128xf32>
    %462 = arith.addf %458, %461 : vector<8x128xf32>
    %c76 = arith.constant 76 : index
    %463 = memref.load %arg1[%c76] : memref<327xf32, #tpu.memory_space<smem>>
    %464 = vector.broadcast %463 : f32 to vector<8x128xf32>
    %465 = arith.mulf %64, %464 : vector<8x128xf32>
    %466 = arith.addf %462, %465 : vector<8x128xf32>
    %c86 = arith.constant 86 : index
    %467 = memref.load %arg1[%c86] : memref<327xf32, #tpu.memory_space<smem>>
    %468 = vector.broadcast %467 : f32 to vector<8x128xf32>
    %469 = arith.mulf %83, %468 : vector<8x128xf32>
    %470 = arith.addf %466, %469 : vector<8x128xf32>
    %c96 = arith.constant 96 : index
    %471 = memref.load %arg1[%c96] : memref<327xf32, #tpu.memory_space<smem>>
    %472 = vector.broadcast %471 : f32 to vector<8x128xf32>
    %473 = arith.mulf %102, %472 : vector<8x128xf32>
    %474 = arith.addf %470, %473 : vector<8x128xf32>
    %c106 = arith.constant 106 : index
    %475 = memref.load %arg1[%c106] : memref<327xf32, #tpu.memory_space<smem>>
    %476 = vector.broadcast %475 : f32 to vector<8x128xf32>
    %477 = arith.mulf %121, %476 : vector<8x128xf32>
    %478 = arith.addf %474, %477 : vector<8x128xf32>
    %c116 = arith.constant 116 : index
    %479 = memref.load %arg1[%c116] : memref<327xf32, #tpu.memory_space<smem>>
    %480 = vector.broadcast %479 : f32 to vector<8x128xf32>
    %481 = arith.mulf %140, %480 : vector<8x128xf32>
    %482 = arith.addf %478, %481 : vector<8x128xf32>
    %c126 = arith.constant 126 : index
    %483 = memref.load %arg1[%c126] : memref<327xf32, #tpu.memory_space<smem>>
    %484 = vector.broadcast %483 : f32 to vector<8x128xf32>
    %485 = arith.mulf %159, %484 : vector<8x128xf32>
    %486 = arith.addf %482, %485 : vector<8x128xf32>
    %c136 = arith.constant 136 : index
    %487 = memref.load %arg1[%c136] : memref<327xf32, #tpu.memory_space<smem>>
    %488 = vector.broadcast %487 : f32 to vector<8x128xf32>
    %489 = arith.mulf %178, %488 : vector<8x128xf32>
    %490 = arith.addf %486, %489 : vector<8x128xf32>
    %c146 = arith.constant 146 : index
    %491 = memref.load %arg1[%c146] : memref<327xf32, #tpu.memory_space<smem>>
    %492 = vector.broadcast %491 : f32 to vector<8x128xf32>
    %493 = arith.mulf %197, %492 : vector<8x128xf32>
    %494 = arith.addf %490, %493 : vector<8x128xf32>
    %c156 = arith.constant 156 : index
    %495 = memref.load %arg1[%c156] : memref<327xf32, #tpu.memory_space<smem>>
    %496 = vector.broadcast %495 : f32 to vector<8x128xf32>
    %497 = arith.addf %494, %496 : vector<8x128xf32>
    %498 = math.tanh %497 : vector<8x128xf32>
    %c57 = arith.constant 57 : index
    %499 = memref.load %arg1[%c57] : memref<327xf32, #tpu.memory_space<smem>>
    %500 = vector.broadcast %499 : f32 to vector<8x128xf32>
    %501 = arith.mulf %26, %500 : vector<8x128xf32>
    %c67 = arith.constant 67 : index
    %502 = memref.load %arg1[%c67] : memref<327xf32, #tpu.memory_space<smem>>
    %503 = vector.broadcast %502 : f32 to vector<8x128xf32>
    %504 = arith.mulf %45, %503 : vector<8x128xf32>
    %505 = arith.addf %501, %504 : vector<8x128xf32>
    %c77 = arith.constant 77 : index
    %506 = memref.load %arg1[%c77] : memref<327xf32, #tpu.memory_space<smem>>
    %507 = vector.broadcast %506 : f32 to vector<8x128xf32>
    %508 = arith.mulf %64, %507 : vector<8x128xf32>
    %509 = arith.addf %505, %508 : vector<8x128xf32>
    %c87 = arith.constant 87 : index
    %510 = memref.load %arg1[%c87] : memref<327xf32, #tpu.memory_space<smem>>
    %511 = vector.broadcast %510 : f32 to vector<8x128xf32>
    %512 = arith.mulf %83, %511 : vector<8x128xf32>
    %513 = arith.addf %509, %512 : vector<8x128xf32>
    %c97 = arith.constant 97 : index
    %514 = memref.load %arg1[%c97] : memref<327xf32, #tpu.memory_space<smem>>
    %515 = vector.broadcast %514 : f32 to vector<8x128xf32>
    %516 = arith.mulf %102, %515 : vector<8x128xf32>
    %517 = arith.addf %513, %516 : vector<8x128xf32>
    %c107 = arith.constant 107 : index
    %518 = memref.load %arg1[%c107] : memref<327xf32, #tpu.memory_space<smem>>
    %519 = vector.broadcast %518 : f32 to vector<8x128xf32>
    %520 = arith.mulf %121, %519 : vector<8x128xf32>
    %521 = arith.addf %517, %520 : vector<8x128xf32>
    %c117 = arith.constant 117 : index
    %522 = memref.load %arg1[%c117] : memref<327xf32, #tpu.memory_space<smem>>
    %523 = vector.broadcast %522 : f32 to vector<8x128xf32>
    %524 = arith.mulf %140, %523 : vector<8x128xf32>
    %525 = arith.addf %521, %524 : vector<8x128xf32>
    %c127 = arith.constant 127 : index
    %526 = memref.load %arg1[%c127] : memref<327xf32, #tpu.memory_space<smem>>
    %527 = vector.broadcast %526 : f32 to vector<8x128xf32>
    %528 = arith.mulf %159, %527 : vector<8x128xf32>
    %529 = arith.addf %525, %528 : vector<8x128xf32>
    %c137 = arith.constant 137 : index
    %530 = memref.load %arg1[%c137] : memref<327xf32, #tpu.memory_space<smem>>
    %531 = vector.broadcast %530 : f32 to vector<8x128xf32>
    %532 = arith.mulf %178, %531 : vector<8x128xf32>
    %533 = arith.addf %529, %532 : vector<8x128xf32>
    %c147 = arith.constant 147 : index
    %534 = memref.load %arg1[%c147] : memref<327xf32, #tpu.memory_space<smem>>
    %535 = vector.broadcast %534 : f32 to vector<8x128xf32>
    %536 = arith.mulf %197, %535 : vector<8x128xf32>
    %537 = arith.addf %533, %536 : vector<8x128xf32>
    %c157 = arith.constant 157 : index
    %538 = memref.load %arg1[%c157] : memref<327xf32, #tpu.memory_space<smem>>
    %539 = vector.broadcast %538 : f32 to vector<8x128xf32>
    %540 = arith.addf %537, %539 : vector<8x128xf32>
    %541 = math.tanh %540 : vector<8x128xf32>
    %c58 = arith.constant 58 : index
    %542 = memref.load %arg1[%c58] : memref<327xf32, #tpu.memory_space<smem>>
    %543 = vector.broadcast %542 : f32 to vector<8x128xf32>
    %544 = arith.mulf %26, %543 : vector<8x128xf32>
    %c68 = arith.constant 68 : index
    %545 = memref.load %arg1[%c68] : memref<327xf32, #tpu.memory_space<smem>>
    %546 = vector.broadcast %545 : f32 to vector<8x128xf32>
    %547 = arith.mulf %45, %546 : vector<8x128xf32>
    %548 = arith.addf %544, %547 : vector<8x128xf32>
    %c78 = arith.constant 78 : index
    %549 = memref.load %arg1[%c78] : memref<327xf32, #tpu.memory_space<smem>>
    %550 = vector.broadcast %549 : f32 to vector<8x128xf32>
    %551 = arith.mulf %64, %550 : vector<8x128xf32>
    %552 = arith.addf %548, %551 : vector<8x128xf32>
    %c88 = arith.constant 88 : index
    %553 = memref.load %arg1[%c88] : memref<327xf32, #tpu.memory_space<smem>>
    %554 = vector.broadcast %553 : f32 to vector<8x128xf32>
    %555 = arith.mulf %83, %554 : vector<8x128xf32>
    %556 = arith.addf %552, %555 : vector<8x128xf32>
    %c98 = arith.constant 98 : index
    %557 = memref.load %arg1[%c98] : memref<327xf32, #tpu.memory_space<smem>>
    %558 = vector.broadcast %557 : f32 to vector<8x128xf32>
    %559 = arith.mulf %102, %558 : vector<8x128xf32>
    %560 = arith.addf %556, %559 : vector<8x128xf32>
    %c108 = arith.constant 108 : index
    %561 = memref.load %arg1[%c108] : memref<327xf32, #tpu.memory_space<smem>>
    %562 = vector.broadcast %561 : f32 to vector<8x128xf32>
    %563 = arith.mulf %121, %562 : vector<8x128xf32>
    %564 = arith.addf %560, %563 : vector<8x128xf32>
    %c118 = arith.constant 118 : index
    %565 = memref.load %arg1[%c118] : memref<327xf32, #tpu.memory_space<smem>>
    %566 = vector.broadcast %565 : f32 to vector<8x128xf32>
    %567 = arith.mulf %140, %566 : vector<8x128xf32>
    %568 = arith.addf %564, %567 : vector<8x128xf32>
    %c128 = arith.constant 128 : index
    %569 = memref.load %arg1[%c128] : memref<327xf32, #tpu.memory_space<smem>>
    %570 = vector.broadcast %569 : f32 to vector<8x128xf32>
    %571 = arith.mulf %159, %570 : vector<8x128xf32>
    %572 = arith.addf %568, %571 : vector<8x128xf32>
    %c138 = arith.constant 138 : index
    %573 = memref.load %arg1[%c138] : memref<327xf32, #tpu.memory_space<smem>>
    %574 = vector.broadcast %573 : f32 to vector<8x128xf32>
    %575 = arith.mulf %178, %574 : vector<8x128xf32>
    %576 = arith.addf %572, %575 : vector<8x128xf32>
    %c148 = arith.constant 148 : index
    %577 = memref.load %arg1[%c148] : memref<327xf32, #tpu.memory_space<smem>>
    %578 = vector.broadcast %577 : f32 to vector<8x128xf32>
    %579 = arith.mulf %197, %578 : vector<8x128xf32>
    %580 = arith.addf %576, %579 : vector<8x128xf32>
    %c158 = arith.constant 158 : index
    %581 = memref.load %arg1[%c158] : memref<327xf32, #tpu.memory_space<smem>>
    %582 = vector.broadcast %581 : f32 to vector<8x128xf32>
    %583 = arith.addf %580, %582 : vector<8x128xf32>
    %584 = math.tanh %583 : vector<8x128xf32>
    %c59 = arith.constant 59 : index
    %585 = memref.load %arg1[%c59] : memref<327xf32, #tpu.memory_space<smem>>
    %586 = vector.broadcast %585 : f32 to vector<8x128xf32>
    %587 = arith.mulf %26, %586 : vector<8x128xf32>
    %c69 = arith.constant 69 : index
    %588 = memref.load %arg1[%c69] : memref<327xf32, #tpu.memory_space<smem>>
    %589 = vector.broadcast %588 : f32 to vector<8x128xf32>
    %590 = arith.mulf %45, %589 : vector<8x128xf32>
    %591 = arith.addf %587, %590 : vector<8x128xf32>
    %c79 = arith.constant 79 : index
    %592 = memref.load %arg1[%c79] : memref<327xf32, #tpu.memory_space<smem>>
    %593 = vector.broadcast %592 : f32 to vector<8x128xf32>
    %594 = arith.mulf %64, %593 : vector<8x128xf32>
    %595 = arith.addf %591, %594 : vector<8x128xf32>
    %c89 = arith.constant 89 : index
    %596 = memref.load %arg1[%c89] : memref<327xf32, #tpu.memory_space<smem>>
    %597 = vector.broadcast %596 : f32 to vector<8x128xf32>
    %598 = arith.mulf %83, %597 : vector<8x128xf32>
    %599 = arith.addf %595, %598 : vector<8x128xf32>
    %c99 = arith.constant 99 : index
    %600 = memref.load %arg1[%c99] : memref<327xf32, #tpu.memory_space<smem>>
    %601 = vector.broadcast %600 : f32 to vector<8x128xf32>
    %602 = arith.mulf %102, %601 : vector<8x128xf32>
    %603 = arith.addf %599, %602 : vector<8x128xf32>
    %c109 = arith.constant 109 : index
    %604 = memref.load %arg1[%c109] : memref<327xf32, #tpu.memory_space<smem>>
    %605 = vector.broadcast %604 : f32 to vector<8x128xf32>
    %606 = arith.mulf %121, %605 : vector<8x128xf32>
    %607 = arith.addf %603, %606 : vector<8x128xf32>
    %c119 = arith.constant 119 : index
    %608 = memref.load %arg1[%c119] : memref<327xf32, #tpu.memory_space<smem>>
    %609 = vector.broadcast %608 : f32 to vector<8x128xf32>
    %610 = arith.mulf %140, %609 : vector<8x128xf32>
    %611 = arith.addf %607, %610 : vector<8x128xf32>
    %c129 = arith.constant 129 : index
    %612 = memref.load %arg1[%c129] : memref<327xf32, #tpu.memory_space<smem>>
    %613 = vector.broadcast %612 : f32 to vector<8x128xf32>
    %614 = arith.mulf %159, %613 : vector<8x128xf32>
    %615 = arith.addf %611, %614 : vector<8x128xf32>
    %c139 = arith.constant 139 : index
    %616 = memref.load %arg1[%c139] : memref<327xf32, #tpu.memory_space<smem>>
    %617 = vector.broadcast %616 : f32 to vector<8x128xf32>
    %618 = arith.mulf %178, %617 : vector<8x128xf32>
    %619 = arith.addf %615, %618 : vector<8x128xf32>
    %c149 = arith.constant 149 : index
    %620 = memref.load %arg1[%c149] : memref<327xf32, #tpu.memory_space<smem>>
    %621 = vector.broadcast %620 : f32 to vector<8x128xf32>
    %622 = arith.mulf %197, %621 : vector<8x128xf32>
    %623 = arith.addf %619, %622 : vector<8x128xf32>
    %c159 = arith.constant 159 : index
    %624 = memref.load %arg1[%c159] : memref<327xf32, #tpu.memory_space<smem>>
    %625 = vector.broadcast %624 : f32 to vector<8x128xf32>
    %626 = arith.addf %623, %625 : vector<8x128xf32>
    %627 = math.tanh %626 : vector<8x128xf32>
    %c160 = arith.constant 160 : index
    %628 = memref.load %arg1[%c160] : memref<327xf32, #tpu.memory_space<smem>>
    %629 = vector.broadcast %628 : f32 to vector<8x128xf32>
    %630 = arith.mulf %240, %629 : vector<8x128xf32>
    %c170 = arith.constant 170 : index
    %631 = memref.load %arg1[%c170] : memref<327xf32, #tpu.memory_space<smem>>
    %632 = vector.broadcast %631 : f32 to vector<8x128xf32>
    %633 = arith.mulf %283, %632 : vector<8x128xf32>
    %634 = arith.addf %630, %633 : vector<8x128xf32>
    %c180 = arith.constant 180 : index
    %635 = memref.load %arg1[%c180] : memref<327xf32, #tpu.memory_space<smem>>
    %636 = vector.broadcast %635 : f32 to vector<8x128xf32>
    %637 = arith.mulf %326, %636 : vector<8x128xf32>
    %638 = arith.addf %634, %637 : vector<8x128xf32>
    %c190 = arith.constant 190 : index
    %639 = memref.load %arg1[%c190] : memref<327xf32, #tpu.memory_space<smem>>
    %640 = vector.broadcast %639 : f32 to vector<8x128xf32>
    %641 = arith.mulf %369, %640 : vector<8x128xf32>
    %642 = arith.addf %638, %641 : vector<8x128xf32>
    %c200 = arith.constant 200 : index
    %643 = memref.load %arg1[%c200] : memref<327xf32, #tpu.memory_space<smem>>
    %644 = vector.broadcast %643 : f32 to vector<8x128xf32>
    %645 = arith.mulf %412, %644 : vector<8x128xf32>
    %646 = arith.addf %642, %645 : vector<8x128xf32>
    %c210 = arith.constant 210 : index
    %647 = memref.load %arg1[%c210] : memref<327xf32, #tpu.memory_space<smem>>
    %648 = vector.broadcast %647 : f32 to vector<8x128xf32>
    %649 = arith.mulf %455, %648 : vector<8x128xf32>
    %650 = arith.addf %646, %649 : vector<8x128xf32>
    %c220 = arith.constant 220 : index
    %651 = memref.load %arg1[%c220] : memref<327xf32, #tpu.memory_space<smem>>
    %652 = vector.broadcast %651 : f32 to vector<8x128xf32>
    %653 = arith.mulf %498, %652 : vector<8x128xf32>
    %654 = arith.addf %650, %653 : vector<8x128xf32>
    %c230 = arith.constant 230 : index
    %655 = memref.load %arg1[%c230] : memref<327xf32, #tpu.memory_space<smem>>
    %656 = vector.broadcast %655 : f32 to vector<8x128xf32>
    %657 = arith.mulf %541, %656 : vector<8x128xf32>
    %658 = arith.addf %654, %657 : vector<8x128xf32>
    %c240 = arith.constant 240 : index
    %659 = memref.load %arg1[%c240] : memref<327xf32, #tpu.memory_space<smem>>
    %660 = vector.broadcast %659 : f32 to vector<8x128xf32>
    %661 = arith.mulf %584, %660 : vector<8x128xf32>
    %662 = arith.addf %658, %661 : vector<8x128xf32>
    %c250 = arith.constant 250 : index
    %663 = memref.load %arg1[%c250] : memref<327xf32, #tpu.memory_space<smem>>
    %664 = vector.broadcast %663 : f32 to vector<8x128xf32>
    %665 = arith.mulf %627, %664 : vector<8x128xf32>
    %666 = arith.addf %662, %665 : vector<8x128xf32>
    %c260 = arith.constant 260 : index
    %667 = memref.load %arg1[%c260] : memref<327xf32, #tpu.memory_space<smem>>
    %668 = vector.broadcast %667 : f32 to vector<8x128xf32>
    %669 = arith.addf %666, %668 : vector<8x128xf32>
    %670 = math.tanh %669 : vector<8x128xf32>
    %c161 = arith.constant 161 : index
    %671 = memref.load %arg1[%c161] : memref<327xf32, #tpu.memory_space<smem>>
    %672 = vector.broadcast %671 : f32 to vector<8x128xf32>
    %673 = arith.mulf %240, %672 : vector<8x128xf32>
    %c171 = arith.constant 171 : index
    %674 = memref.load %arg1[%c171] : memref<327xf32, #tpu.memory_space<smem>>
    %675 = vector.broadcast %674 : f32 to vector<8x128xf32>
    %676 = arith.mulf %283, %675 : vector<8x128xf32>
    %677 = arith.addf %673, %676 : vector<8x128xf32>
    %c181 = arith.constant 181 : index
    %678 = memref.load %arg1[%c181] : memref<327xf32, #tpu.memory_space<smem>>
    %679 = vector.broadcast %678 : f32 to vector<8x128xf32>
    %680 = arith.mulf %326, %679 : vector<8x128xf32>
    %681 = arith.addf %677, %680 : vector<8x128xf32>
    %c191 = arith.constant 191 : index
    %682 = memref.load %arg1[%c191] : memref<327xf32, #tpu.memory_space<smem>>
    %683 = vector.broadcast %682 : f32 to vector<8x128xf32>
    %684 = arith.mulf %369, %683 : vector<8x128xf32>
    %685 = arith.addf %681, %684 : vector<8x128xf32>
    %c201 = arith.constant 201 : index
    %686 = memref.load %arg1[%c201] : memref<327xf32, #tpu.memory_space<smem>>
    %687 = vector.broadcast %686 : f32 to vector<8x128xf32>
    %688 = arith.mulf %412, %687 : vector<8x128xf32>
    %689 = arith.addf %685, %688 : vector<8x128xf32>
    %c211 = arith.constant 211 : index
    %690 = memref.load %arg1[%c211] : memref<327xf32, #tpu.memory_space<smem>>
    %691 = vector.broadcast %690 : f32 to vector<8x128xf32>
    %692 = arith.mulf %455, %691 : vector<8x128xf32>
    %693 = arith.addf %689, %692 : vector<8x128xf32>
    %c221 = arith.constant 221 : index
    %694 = memref.load %arg1[%c221] : memref<327xf32, #tpu.memory_space<smem>>
    %695 = vector.broadcast %694 : f32 to vector<8x128xf32>
    %696 = arith.mulf %498, %695 : vector<8x128xf32>
    %697 = arith.addf %693, %696 : vector<8x128xf32>
    %c231 = arith.constant 231 : index
    %698 = memref.load %arg1[%c231] : memref<327xf32, #tpu.memory_space<smem>>
    %699 = vector.broadcast %698 : f32 to vector<8x128xf32>
    %700 = arith.mulf %541, %699 : vector<8x128xf32>
    %701 = arith.addf %697, %700 : vector<8x128xf32>
    %c241 = arith.constant 241 : index
    %702 = memref.load %arg1[%c241] : memref<327xf32, #tpu.memory_space<smem>>
    %703 = vector.broadcast %702 : f32 to vector<8x128xf32>
    %704 = arith.mulf %584, %703 : vector<8x128xf32>
    %705 = arith.addf %701, %704 : vector<8x128xf32>
    %c251 = arith.constant 251 : index
    %706 = memref.load %arg1[%c251] : memref<327xf32, #tpu.memory_space<smem>>
    %707 = vector.broadcast %706 : f32 to vector<8x128xf32>
    %708 = arith.mulf %627, %707 : vector<8x128xf32>
    %709 = arith.addf %705, %708 : vector<8x128xf32>
    %c261 = arith.constant 261 : index
    %710 = memref.load %arg1[%c261] : memref<327xf32, #tpu.memory_space<smem>>
    %711 = vector.broadcast %710 : f32 to vector<8x128xf32>
    %712 = arith.addf %709, %711 : vector<8x128xf32>
    %713 = math.tanh %712 : vector<8x128xf32>
    %c162 = arith.constant 162 : index
    %714 = memref.load %arg1[%c162] : memref<327xf32, #tpu.memory_space<smem>>
    %715 = vector.broadcast %714 : f32 to vector<8x128xf32>
    %716 = arith.mulf %240, %715 : vector<8x128xf32>
    %c172 = arith.constant 172 : index
    %717 = memref.load %arg1[%c172] : memref<327xf32, #tpu.memory_space<smem>>
    %718 = vector.broadcast %717 : f32 to vector<8x128xf32>
    %719 = arith.mulf %283, %718 : vector<8x128xf32>
    %720 = arith.addf %716, %719 : vector<8x128xf32>
    %c182 = arith.constant 182 : index
    %721 = memref.load %arg1[%c182] : memref<327xf32, #tpu.memory_space<smem>>
    %722 = vector.broadcast %721 : f32 to vector<8x128xf32>
    %723 = arith.mulf %326, %722 : vector<8x128xf32>
    %724 = arith.addf %720, %723 : vector<8x128xf32>
    %c192 = arith.constant 192 : index
    %725 = memref.load %arg1[%c192] : memref<327xf32, #tpu.memory_space<smem>>
    %726 = vector.broadcast %725 : f32 to vector<8x128xf32>
    %727 = arith.mulf %369, %726 : vector<8x128xf32>
    %728 = arith.addf %724, %727 : vector<8x128xf32>
    %c202 = arith.constant 202 : index
    %729 = memref.load %arg1[%c202] : memref<327xf32, #tpu.memory_space<smem>>
    %730 = vector.broadcast %729 : f32 to vector<8x128xf32>
    %731 = arith.mulf %412, %730 : vector<8x128xf32>
    %732 = arith.addf %728, %731 : vector<8x128xf32>
    %c212 = arith.constant 212 : index
    %733 = memref.load %arg1[%c212] : memref<327xf32, #tpu.memory_space<smem>>
    %734 = vector.broadcast %733 : f32 to vector<8x128xf32>
    %735 = arith.mulf %455, %734 : vector<8x128xf32>
    %736 = arith.addf %732, %735 : vector<8x128xf32>
    %c222 = arith.constant 222 : index
    %737 = memref.load %arg1[%c222] : memref<327xf32, #tpu.memory_space<smem>>
    %738 = vector.broadcast %737 : f32 to vector<8x128xf32>
    %739 = arith.mulf %498, %738 : vector<8x128xf32>
    %740 = arith.addf %736, %739 : vector<8x128xf32>
    %c232 = arith.constant 232 : index
    %741 = memref.load %arg1[%c232] : memref<327xf32, #tpu.memory_space<smem>>
    %742 = vector.broadcast %741 : f32 to vector<8x128xf32>
    %743 = arith.mulf %541, %742 : vector<8x128xf32>
    %744 = arith.addf %740, %743 : vector<8x128xf32>
    %c242 = arith.constant 242 : index
    %745 = memref.load %arg1[%c242] : memref<327xf32, #tpu.memory_space<smem>>
    %746 = vector.broadcast %745 : f32 to vector<8x128xf32>
    %747 = arith.mulf %584, %746 : vector<8x128xf32>
    %748 = arith.addf %744, %747 : vector<8x128xf32>
    %c252 = arith.constant 252 : index
    %749 = memref.load %arg1[%c252] : memref<327xf32, #tpu.memory_space<smem>>
    %750 = vector.broadcast %749 : f32 to vector<8x128xf32>
    %751 = arith.mulf %627, %750 : vector<8x128xf32>
    %752 = arith.addf %748, %751 : vector<8x128xf32>
    %c262 = arith.constant 262 : index
    %753 = memref.load %arg1[%c262] : memref<327xf32, #tpu.memory_space<smem>>
    %754 = vector.broadcast %753 : f32 to vector<8x128xf32>
    %755 = arith.addf %752, %754 : vector<8x128xf32>
    %756 = math.tanh %755 : vector<8x128xf32>
    %c163 = arith.constant 163 : index
    %757 = memref.load %arg1[%c163] : memref<327xf32, #tpu.memory_space<smem>>
    %758 = vector.broadcast %757 : f32 to vector<8x128xf32>
    %759 = arith.mulf %240, %758 : vector<8x128xf32>
    %c173 = arith.constant 173 : index
    %760 = memref.load %arg1[%c173] : memref<327xf32, #tpu.memory_space<smem>>
    %761 = vector.broadcast %760 : f32 to vector<8x128xf32>
    %762 = arith.mulf %283, %761 : vector<8x128xf32>
    %763 = arith.addf %759, %762 : vector<8x128xf32>
    %c183 = arith.constant 183 : index
    %764 = memref.load %arg1[%c183] : memref<327xf32, #tpu.memory_space<smem>>
    %765 = vector.broadcast %764 : f32 to vector<8x128xf32>
    %766 = arith.mulf %326, %765 : vector<8x128xf32>
    %767 = arith.addf %763, %766 : vector<8x128xf32>
    %c193 = arith.constant 193 : index
    %768 = memref.load %arg1[%c193] : memref<327xf32, #tpu.memory_space<smem>>
    %769 = vector.broadcast %768 : f32 to vector<8x128xf32>
    %770 = arith.mulf %369, %769 : vector<8x128xf32>
    %771 = arith.addf %767, %770 : vector<8x128xf32>
    %c203 = arith.constant 203 : index
    %772 = memref.load %arg1[%c203] : memref<327xf32, #tpu.memory_space<smem>>
    %773 = vector.broadcast %772 : f32 to vector<8x128xf32>
    %774 = arith.mulf %412, %773 : vector<8x128xf32>
    %775 = arith.addf %771, %774 : vector<8x128xf32>
    %c213 = arith.constant 213 : index
    %776 = memref.load %arg1[%c213] : memref<327xf32, #tpu.memory_space<smem>>
    %777 = vector.broadcast %776 : f32 to vector<8x128xf32>
    %778 = arith.mulf %455, %777 : vector<8x128xf32>
    %779 = arith.addf %775, %778 : vector<8x128xf32>
    %c223 = arith.constant 223 : index
    %780 = memref.load %arg1[%c223] : memref<327xf32, #tpu.memory_space<smem>>
    %781 = vector.broadcast %780 : f32 to vector<8x128xf32>
    %782 = arith.mulf %498, %781 : vector<8x128xf32>
    %783 = arith.addf %779, %782 : vector<8x128xf32>
    %c233 = arith.constant 233 : index
    %784 = memref.load %arg1[%c233] : memref<327xf32, #tpu.memory_space<smem>>
    %785 = vector.broadcast %784 : f32 to vector<8x128xf32>
    %786 = arith.mulf %541, %785 : vector<8x128xf32>
    %787 = arith.addf %783, %786 : vector<8x128xf32>
    %c243 = arith.constant 243 : index
    %788 = memref.load %arg1[%c243] : memref<327xf32, #tpu.memory_space<smem>>
    %789 = vector.broadcast %788 : f32 to vector<8x128xf32>
    %790 = arith.mulf %584, %789 : vector<8x128xf32>
    %791 = arith.addf %787, %790 : vector<8x128xf32>
    %c253 = arith.constant 253 : index
    %792 = memref.load %arg1[%c253] : memref<327xf32, #tpu.memory_space<smem>>
    %793 = vector.broadcast %792 : f32 to vector<8x128xf32>
    %794 = arith.mulf %627, %793 : vector<8x128xf32>
    %795 = arith.addf %791, %794 : vector<8x128xf32>
    %c263 = arith.constant 263 : index
    %796 = memref.load %arg1[%c263] : memref<327xf32, #tpu.memory_space<smem>>
    %797 = vector.broadcast %796 : f32 to vector<8x128xf32>
    %798 = arith.addf %795, %797 : vector<8x128xf32>
    %799 = math.tanh %798 : vector<8x128xf32>
    %c164 = arith.constant 164 : index
    %800 = memref.load %arg1[%c164] : memref<327xf32, #tpu.memory_space<smem>>
    %801 = vector.broadcast %800 : f32 to vector<8x128xf32>
    %802 = arith.mulf %240, %801 : vector<8x128xf32>
    %c174 = arith.constant 174 : index
    %803 = memref.load %arg1[%c174] : memref<327xf32, #tpu.memory_space<smem>>
    %804 = vector.broadcast %803 : f32 to vector<8x128xf32>
    %805 = arith.mulf %283, %804 : vector<8x128xf32>
    %806 = arith.addf %802, %805 : vector<8x128xf32>
    %c184 = arith.constant 184 : index
    %807 = memref.load %arg1[%c184] : memref<327xf32, #tpu.memory_space<smem>>
    %808 = vector.broadcast %807 : f32 to vector<8x128xf32>
    %809 = arith.mulf %326, %808 : vector<8x128xf32>
    %810 = arith.addf %806, %809 : vector<8x128xf32>
    %c194 = arith.constant 194 : index
    %811 = memref.load %arg1[%c194] : memref<327xf32, #tpu.memory_space<smem>>
    %812 = vector.broadcast %811 : f32 to vector<8x128xf32>
    %813 = arith.mulf %369, %812 : vector<8x128xf32>
    %814 = arith.addf %810, %813 : vector<8x128xf32>
    %c204 = arith.constant 204 : index
    %815 = memref.load %arg1[%c204] : memref<327xf32, #tpu.memory_space<smem>>
    %816 = vector.broadcast %815 : f32 to vector<8x128xf32>
    %817 = arith.mulf %412, %816 : vector<8x128xf32>
    %818 = arith.addf %814, %817 : vector<8x128xf32>
    %c214 = arith.constant 214 : index
    %819 = memref.load %arg1[%c214] : memref<327xf32, #tpu.memory_space<smem>>
    %820 = vector.broadcast %819 : f32 to vector<8x128xf32>
    %821 = arith.mulf %455, %820 : vector<8x128xf32>
    %822 = arith.addf %818, %821 : vector<8x128xf32>
    %c224 = arith.constant 224 : index
    %823 = memref.load %arg1[%c224] : memref<327xf32, #tpu.memory_space<smem>>
    %824 = vector.broadcast %823 : f32 to vector<8x128xf32>
    %825 = arith.mulf %498, %824 : vector<8x128xf32>
    %826 = arith.addf %822, %825 : vector<8x128xf32>
    %c234 = arith.constant 234 : index
    %827 = memref.load %arg1[%c234] : memref<327xf32, #tpu.memory_space<smem>>
    %828 = vector.broadcast %827 : f32 to vector<8x128xf32>
    %829 = arith.mulf %541, %828 : vector<8x128xf32>
    %830 = arith.addf %826, %829 : vector<8x128xf32>
    %c244 = arith.constant 244 : index
    %831 = memref.load %arg1[%c244] : memref<327xf32, #tpu.memory_space<smem>>
    %832 = vector.broadcast %831 : f32 to vector<8x128xf32>
    %833 = arith.mulf %584, %832 : vector<8x128xf32>
    %834 = arith.addf %830, %833 : vector<8x128xf32>
    %c254 = arith.constant 254 : index
    %835 = memref.load %arg1[%c254] : memref<327xf32, #tpu.memory_space<smem>>
    %836 = vector.broadcast %835 : f32 to vector<8x128xf32>
    %837 = arith.mulf %627, %836 : vector<8x128xf32>
    %838 = arith.addf %834, %837 : vector<8x128xf32>
    %c264 = arith.constant 264 : index
    %839 = memref.load %arg1[%c264] : memref<327xf32, #tpu.memory_space<smem>>
    %840 = vector.broadcast %839 : f32 to vector<8x128xf32>
    %841 = arith.addf %838, %840 : vector<8x128xf32>
    %842 = math.tanh %841 : vector<8x128xf32>
    %c165 = arith.constant 165 : index
    %843 = memref.load %arg1[%c165] : memref<327xf32, #tpu.memory_space<smem>>
    %844 = vector.broadcast %843 : f32 to vector<8x128xf32>
    %845 = arith.mulf %240, %844 : vector<8x128xf32>
    %c175 = arith.constant 175 : index
    %846 = memref.load %arg1[%c175] : memref<327xf32, #tpu.memory_space<smem>>
    %847 = vector.broadcast %846 : f32 to vector<8x128xf32>
    %848 = arith.mulf %283, %847 : vector<8x128xf32>
    %849 = arith.addf %845, %848 : vector<8x128xf32>
    %c185 = arith.constant 185 : index
    %850 = memref.load %arg1[%c185] : memref<327xf32, #tpu.memory_space<smem>>
    %851 = vector.broadcast %850 : f32 to vector<8x128xf32>
    %852 = arith.mulf %326, %851 : vector<8x128xf32>
    %853 = arith.addf %849, %852 : vector<8x128xf32>
    %c195 = arith.constant 195 : index
    %854 = memref.load %arg1[%c195] : memref<327xf32, #tpu.memory_space<smem>>
    %855 = vector.broadcast %854 : f32 to vector<8x128xf32>
    %856 = arith.mulf %369, %855 : vector<8x128xf32>
    %857 = arith.addf %853, %856 : vector<8x128xf32>
    %c205 = arith.constant 205 : index
    %858 = memref.load %arg1[%c205] : memref<327xf32, #tpu.memory_space<smem>>
    %859 = vector.broadcast %858 : f32 to vector<8x128xf32>
    %860 = arith.mulf %412, %859 : vector<8x128xf32>
    %861 = arith.addf %857, %860 : vector<8x128xf32>
    %c215 = arith.constant 215 : index
    %862 = memref.load %arg1[%c215] : memref<327xf32, #tpu.memory_space<smem>>
    %863 = vector.broadcast %862 : f32 to vector<8x128xf32>
    %864 = arith.mulf %455, %863 : vector<8x128xf32>
    %865 = arith.addf %861, %864 : vector<8x128xf32>
    %c225 = arith.constant 225 : index
    %866 = memref.load %arg1[%c225] : memref<327xf32, #tpu.memory_space<smem>>
    %867 = vector.broadcast %866 : f32 to vector<8x128xf32>
    %868 = arith.mulf %498, %867 : vector<8x128xf32>
    %869 = arith.addf %865, %868 : vector<8x128xf32>
    %c235 = arith.constant 235 : index
    %870 = memref.load %arg1[%c235] : memref<327xf32, #tpu.memory_space<smem>>
    %871 = vector.broadcast %870 : f32 to vector<8x128xf32>
    %872 = arith.mulf %541, %871 : vector<8x128xf32>
    %873 = arith.addf %869, %872 : vector<8x128xf32>
    %c245 = arith.constant 245 : index
    %874 = memref.load %arg1[%c245] : memref<327xf32, #tpu.memory_space<smem>>
    %875 = vector.broadcast %874 : f32 to vector<8x128xf32>
    %876 = arith.mulf %584, %875 : vector<8x128xf32>
    %877 = arith.addf %873, %876 : vector<8x128xf32>
    %c255 = arith.constant 255 : index
    %878 = memref.load %arg1[%c255] : memref<327xf32, #tpu.memory_space<smem>>
    %879 = vector.broadcast %878 : f32 to vector<8x128xf32>
    %880 = arith.mulf %627, %879 : vector<8x128xf32>
    %881 = arith.addf %877, %880 : vector<8x128xf32>
    %c265 = arith.constant 265 : index
    %882 = memref.load %arg1[%c265] : memref<327xf32, #tpu.memory_space<smem>>
    %883 = vector.broadcast %882 : f32 to vector<8x128xf32>
    %884 = arith.addf %881, %883 : vector<8x128xf32>
    %885 = math.tanh %884 : vector<8x128xf32>
    %c166 = arith.constant 166 : index
    %886 = memref.load %arg1[%c166] : memref<327xf32, #tpu.memory_space<smem>>
    %887 = vector.broadcast %886 : f32 to vector<8x128xf32>
    %888 = arith.mulf %240, %887 : vector<8x128xf32>
    %c176 = arith.constant 176 : index
    %889 = memref.load %arg1[%c176] : memref<327xf32, #tpu.memory_space<smem>>
    %890 = vector.broadcast %889 : f32 to vector<8x128xf32>
    %891 = arith.mulf %283, %890 : vector<8x128xf32>
    %892 = arith.addf %888, %891 : vector<8x128xf32>
    %c186 = arith.constant 186 : index
    %893 = memref.load %arg1[%c186] : memref<327xf32, #tpu.memory_space<smem>>
    %894 = vector.broadcast %893 : f32 to vector<8x128xf32>
    %895 = arith.mulf %326, %894 : vector<8x128xf32>
    %896 = arith.addf %892, %895 : vector<8x128xf32>
    %c196 = arith.constant 196 : index
    %897 = memref.load %arg1[%c196] : memref<327xf32, #tpu.memory_space<smem>>
    %898 = vector.broadcast %897 : f32 to vector<8x128xf32>
    %899 = arith.mulf %369, %898 : vector<8x128xf32>
    %900 = arith.addf %896, %899 : vector<8x128xf32>
    %c206 = arith.constant 206 : index
    %901 = memref.load %arg1[%c206] : memref<327xf32, #tpu.memory_space<smem>>
    %902 = vector.broadcast %901 : f32 to vector<8x128xf32>
    %903 = arith.mulf %412, %902 : vector<8x128xf32>
    %904 = arith.addf %900, %903 : vector<8x128xf32>
    %c216 = arith.constant 216 : index
    %905 = memref.load %arg1[%c216] : memref<327xf32, #tpu.memory_space<smem>>
    %906 = vector.broadcast %905 : f32 to vector<8x128xf32>
    %907 = arith.mulf %455, %906 : vector<8x128xf32>
    %908 = arith.addf %904, %907 : vector<8x128xf32>
    %c226 = arith.constant 226 : index
    %909 = memref.load %arg1[%c226] : memref<327xf32, #tpu.memory_space<smem>>
    %910 = vector.broadcast %909 : f32 to vector<8x128xf32>
    %911 = arith.mulf %498, %910 : vector<8x128xf32>
    %912 = arith.addf %908, %911 : vector<8x128xf32>
    %c236 = arith.constant 236 : index
    %913 = memref.load %arg1[%c236] : memref<327xf32, #tpu.memory_space<smem>>
    %914 = vector.broadcast %913 : f32 to vector<8x128xf32>
    %915 = arith.mulf %541, %914 : vector<8x128xf32>
    %916 = arith.addf %912, %915 : vector<8x128xf32>
    %c246 = arith.constant 246 : index
    %917 = memref.load %arg1[%c246] : memref<327xf32, #tpu.memory_space<smem>>
    %918 = vector.broadcast %917 : f32 to vector<8x128xf32>
    %919 = arith.mulf %584, %918 : vector<8x128xf32>
    %920 = arith.addf %916, %919 : vector<8x128xf32>
    %c256 = arith.constant 256 : index
    %921 = memref.load %arg1[%c256] : memref<327xf32, #tpu.memory_space<smem>>
    %922 = vector.broadcast %921 : f32 to vector<8x128xf32>
    %923 = arith.mulf %627, %922 : vector<8x128xf32>
    %924 = arith.addf %920, %923 : vector<8x128xf32>
    %c266 = arith.constant 266 : index
    %925 = memref.load %arg1[%c266] : memref<327xf32, #tpu.memory_space<smem>>
    %926 = vector.broadcast %925 : f32 to vector<8x128xf32>
    %927 = arith.addf %924, %926 : vector<8x128xf32>
    %928 = math.tanh %927 : vector<8x128xf32>
    %c167 = arith.constant 167 : index
    %929 = memref.load %arg1[%c167] : memref<327xf32, #tpu.memory_space<smem>>
    %930 = vector.broadcast %929 : f32 to vector<8x128xf32>
    %931 = arith.mulf %240, %930 : vector<8x128xf32>
    %c177 = arith.constant 177 : index
    %932 = memref.load %arg1[%c177] : memref<327xf32, #tpu.memory_space<smem>>
    %933 = vector.broadcast %932 : f32 to vector<8x128xf32>
    %934 = arith.mulf %283, %933 : vector<8x128xf32>
    %935 = arith.addf %931, %934 : vector<8x128xf32>
    %c187 = arith.constant 187 : index
    %936 = memref.load %arg1[%c187] : memref<327xf32, #tpu.memory_space<smem>>
    %937 = vector.broadcast %936 : f32 to vector<8x128xf32>
    %938 = arith.mulf %326, %937 : vector<8x128xf32>
    %939 = arith.addf %935, %938 : vector<8x128xf32>
    %c197 = arith.constant 197 : index
    %940 = memref.load %arg1[%c197] : memref<327xf32, #tpu.memory_space<smem>>
    %941 = vector.broadcast %940 : f32 to vector<8x128xf32>
    %942 = arith.mulf %369, %941 : vector<8x128xf32>
    %943 = arith.addf %939, %942 : vector<8x128xf32>
    %c207 = arith.constant 207 : index
    %944 = memref.load %arg1[%c207] : memref<327xf32, #tpu.memory_space<smem>>
    %945 = vector.broadcast %944 : f32 to vector<8x128xf32>
    %946 = arith.mulf %412, %945 : vector<8x128xf32>
    %947 = arith.addf %943, %946 : vector<8x128xf32>
    %c217 = arith.constant 217 : index
    %948 = memref.load %arg1[%c217] : memref<327xf32, #tpu.memory_space<smem>>
    %949 = vector.broadcast %948 : f32 to vector<8x128xf32>
    %950 = arith.mulf %455, %949 : vector<8x128xf32>
    %951 = arith.addf %947, %950 : vector<8x128xf32>
    %c227 = arith.constant 227 : index
    %952 = memref.load %arg1[%c227] : memref<327xf32, #tpu.memory_space<smem>>
    %953 = vector.broadcast %952 : f32 to vector<8x128xf32>
    %954 = arith.mulf %498, %953 : vector<8x128xf32>
    %955 = arith.addf %951, %954 : vector<8x128xf32>
    %c237 = arith.constant 237 : index
    %956 = memref.load %arg1[%c237] : memref<327xf32, #tpu.memory_space<smem>>
    %957 = vector.broadcast %956 : f32 to vector<8x128xf32>
    %958 = arith.mulf %541, %957 : vector<8x128xf32>
    %959 = arith.addf %955, %958 : vector<8x128xf32>
    %c247 = arith.constant 247 : index
    %960 = memref.load %arg1[%c247] : memref<327xf32, #tpu.memory_space<smem>>
    %961 = vector.broadcast %960 : f32 to vector<8x128xf32>
    %962 = arith.mulf %584, %961 : vector<8x128xf32>
    %963 = arith.addf %959, %962 : vector<8x128xf32>
    %c257 = arith.constant 257 : index
    %964 = memref.load %arg1[%c257] : memref<327xf32, #tpu.memory_space<smem>>
    %965 = vector.broadcast %964 : f32 to vector<8x128xf32>
    %966 = arith.mulf %627, %965 : vector<8x128xf32>
    %967 = arith.addf %963, %966 : vector<8x128xf32>
    %c267 = arith.constant 267 : index
    %968 = memref.load %arg1[%c267] : memref<327xf32, #tpu.memory_space<smem>>
    %969 = vector.broadcast %968 : f32 to vector<8x128xf32>
    %970 = arith.addf %967, %969 : vector<8x128xf32>
    %971 = math.tanh %970 : vector<8x128xf32>
    %c168 = arith.constant 168 : index
    %972 = memref.load %arg1[%c168] : memref<327xf32, #tpu.memory_space<smem>>
    %973 = vector.broadcast %972 : f32 to vector<8x128xf32>
    %974 = arith.mulf %240, %973 : vector<8x128xf32>
    %c178 = arith.constant 178 : index
    %975 = memref.load %arg1[%c178] : memref<327xf32, #tpu.memory_space<smem>>
    %976 = vector.broadcast %975 : f32 to vector<8x128xf32>
    %977 = arith.mulf %283, %976 : vector<8x128xf32>
    %978 = arith.addf %974, %977 : vector<8x128xf32>
    %c188 = arith.constant 188 : index
    %979 = memref.load %arg1[%c188] : memref<327xf32, #tpu.memory_space<smem>>
    %980 = vector.broadcast %979 : f32 to vector<8x128xf32>
    %981 = arith.mulf %326, %980 : vector<8x128xf32>
    %982 = arith.addf %978, %981 : vector<8x128xf32>
    %c198 = arith.constant 198 : index
    %983 = memref.load %arg1[%c198] : memref<327xf32, #tpu.memory_space<smem>>
    %984 = vector.broadcast %983 : f32 to vector<8x128xf32>
    %985 = arith.mulf %369, %984 : vector<8x128xf32>
    %986 = arith.addf %982, %985 : vector<8x128xf32>
    %c208 = arith.constant 208 : index
    %987 = memref.load %arg1[%c208] : memref<327xf32, #tpu.memory_space<smem>>
    %988 = vector.broadcast %987 : f32 to vector<8x128xf32>
    %989 = arith.mulf %412, %988 : vector<8x128xf32>
    %990 = arith.addf %986, %989 : vector<8x128xf32>
    %c218 = arith.constant 218 : index
    %991 = memref.load %arg1[%c218] : memref<327xf32, #tpu.memory_space<smem>>
    %992 = vector.broadcast %991 : f32 to vector<8x128xf32>
    %993 = arith.mulf %455, %992 : vector<8x128xf32>
    %994 = arith.addf %990, %993 : vector<8x128xf32>
    %c228 = arith.constant 228 : index
    %995 = memref.load %arg1[%c228] : memref<327xf32, #tpu.memory_space<smem>>
    %996 = vector.broadcast %995 : f32 to vector<8x128xf32>
    %997 = arith.mulf %498, %996 : vector<8x128xf32>
    %998 = arith.addf %994, %997 : vector<8x128xf32>
    %c238 = arith.constant 238 : index
    %999 = memref.load %arg1[%c238] : memref<327xf32, #tpu.memory_space<smem>>
    %1000 = vector.broadcast %999 : f32 to vector<8x128xf32>
    %1001 = arith.mulf %541, %1000 : vector<8x128xf32>
    %1002 = arith.addf %998, %1001 : vector<8x128xf32>
    %c248 = arith.constant 248 : index
    %1003 = memref.load %arg1[%c248] : memref<327xf32, #tpu.memory_space<smem>>
    %1004 = vector.broadcast %1003 : f32 to vector<8x128xf32>
    %1005 = arith.mulf %584, %1004 : vector<8x128xf32>
    %1006 = arith.addf %1002, %1005 : vector<8x128xf32>
    %c258 = arith.constant 258 : index
    %1007 = memref.load %arg1[%c258] : memref<327xf32, #tpu.memory_space<smem>>
    %1008 = vector.broadcast %1007 : f32 to vector<8x128xf32>
    %1009 = arith.mulf %627, %1008 : vector<8x128xf32>
    %1010 = arith.addf %1006, %1009 : vector<8x128xf32>
    %c268 = arith.constant 268 : index
    %1011 = memref.load %arg1[%c268] : memref<327xf32, #tpu.memory_space<smem>>
    %1012 = vector.broadcast %1011 : f32 to vector<8x128xf32>
    %1013 = arith.addf %1010, %1012 : vector<8x128xf32>
    %1014 = math.tanh %1013 : vector<8x128xf32>
    %c169 = arith.constant 169 : index
    %1015 = memref.load %arg1[%c169] : memref<327xf32, #tpu.memory_space<smem>>
    %1016 = vector.broadcast %1015 : f32 to vector<8x128xf32>
    %1017 = arith.mulf %240, %1016 : vector<8x128xf32>
    %c179 = arith.constant 179 : index
    %1018 = memref.load %arg1[%c179] : memref<327xf32, #tpu.memory_space<smem>>
    %1019 = vector.broadcast %1018 : f32 to vector<8x128xf32>
    %1020 = arith.mulf %283, %1019 : vector<8x128xf32>
    %1021 = arith.addf %1017, %1020 : vector<8x128xf32>
    %c189 = arith.constant 189 : index
    %1022 = memref.load %arg1[%c189] : memref<327xf32, #tpu.memory_space<smem>>
    %1023 = vector.broadcast %1022 : f32 to vector<8x128xf32>
    %1024 = arith.mulf %326, %1023 : vector<8x128xf32>
    %1025 = arith.addf %1021, %1024 : vector<8x128xf32>
    %c199 = arith.constant 199 : index
    %1026 = memref.load %arg1[%c199] : memref<327xf32, #tpu.memory_space<smem>>
    %1027 = vector.broadcast %1026 : f32 to vector<8x128xf32>
    %1028 = arith.mulf %369, %1027 : vector<8x128xf32>
    %1029 = arith.addf %1025, %1028 : vector<8x128xf32>
    %c209 = arith.constant 209 : index
    %1030 = memref.load %arg1[%c209] : memref<327xf32, #tpu.memory_space<smem>>
    %1031 = vector.broadcast %1030 : f32 to vector<8x128xf32>
    %1032 = arith.mulf %412, %1031 : vector<8x128xf32>
    %1033 = arith.addf %1029, %1032 : vector<8x128xf32>
    %c219 = arith.constant 219 : index
    %1034 = memref.load %arg1[%c219] : memref<327xf32, #tpu.memory_space<smem>>
    %1035 = vector.broadcast %1034 : f32 to vector<8x128xf32>
    %1036 = arith.mulf %455, %1035 : vector<8x128xf32>
    %1037 = arith.addf %1033, %1036 : vector<8x128xf32>
    %c229 = arith.constant 229 : index
    %1038 = memref.load %arg1[%c229] : memref<327xf32, #tpu.memory_space<smem>>
    %1039 = vector.broadcast %1038 : f32 to vector<8x128xf32>
    %1040 = arith.mulf %498, %1039 : vector<8x128xf32>
    %1041 = arith.addf %1037, %1040 : vector<8x128xf32>
    %c239 = arith.constant 239 : index
    %1042 = memref.load %arg1[%c239] : memref<327xf32, #tpu.memory_space<smem>>
    %1043 = vector.broadcast %1042 : f32 to vector<8x128xf32>
    %1044 = arith.mulf %541, %1043 : vector<8x128xf32>
    %1045 = arith.addf %1041, %1044 : vector<8x128xf32>
    %c249 = arith.constant 249 : index
    %1046 = memref.load %arg1[%c249] : memref<327xf32, #tpu.memory_space<smem>>
    %1047 = vector.broadcast %1046 : f32 to vector<8x128xf32>
    %1048 = arith.mulf %584, %1047 : vector<8x128xf32>
    %1049 = arith.addf %1045, %1048 : vector<8x128xf32>
    %c259 = arith.constant 259 : index
    %1050 = memref.load %arg1[%c259] : memref<327xf32, #tpu.memory_space<smem>>
    %1051 = vector.broadcast %1050 : f32 to vector<8x128xf32>
    %1052 = arith.mulf %627, %1051 : vector<8x128xf32>
    %1053 = arith.addf %1049, %1052 : vector<8x128xf32>
    %c269 = arith.constant 269 : index
    %1054 = memref.load %arg1[%c269] : memref<327xf32, #tpu.memory_space<smem>>
    %1055 = vector.broadcast %1054 : f32 to vector<8x128xf32>
    %1056 = arith.addf %1053, %1055 : vector<8x128xf32>
    %1057 = math.tanh %1056 : vector<8x128xf32>
    %c270 = arith.constant 270 : index
    %1058 = memref.load %arg1[%c270] : memref<327xf32, #tpu.memory_space<smem>>
    %1059 = vector.broadcast %1058 : f32 to vector<8x128xf32>
    %1060 = arith.mulf %670, %1059 : vector<8x128xf32>
    %c274 = arith.constant 274 : index
    %1061 = memref.load %arg1[%c274] : memref<327xf32, #tpu.memory_space<smem>>
    %1062 = vector.broadcast %1061 : f32 to vector<8x128xf32>
    %1063 = arith.mulf %713, %1062 : vector<8x128xf32>
    %1064 = arith.addf %1060, %1063 : vector<8x128xf32>
    %c278 = arith.constant 278 : index
    %1065 = memref.load %arg1[%c278] : memref<327xf32, #tpu.memory_space<smem>>
    %1066 = vector.broadcast %1065 : f32 to vector<8x128xf32>
    %1067 = arith.mulf %756, %1066 : vector<8x128xf32>
    %1068 = arith.addf %1064, %1067 : vector<8x128xf32>
    %c282 = arith.constant 282 : index
    %1069 = memref.load %arg1[%c282] : memref<327xf32, #tpu.memory_space<smem>>
    %1070 = vector.broadcast %1069 : f32 to vector<8x128xf32>
    %1071 = arith.mulf %799, %1070 : vector<8x128xf32>
    %1072 = arith.addf %1068, %1071 : vector<8x128xf32>
    %c286 = arith.constant 286 : index
    %1073 = memref.load %arg1[%c286] : memref<327xf32, #tpu.memory_space<smem>>
    %1074 = vector.broadcast %1073 : f32 to vector<8x128xf32>
    %1075 = arith.mulf %842, %1074 : vector<8x128xf32>
    %1076 = arith.addf %1072, %1075 : vector<8x128xf32>
    %c290 = arith.constant 290 : index
    %1077 = memref.load %arg1[%c290] : memref<327xf32, #tpu.memory_space<smem>>
    %1078 = vector.broadcast %1077 : f32 to vector<8x128xf32>
    %1079 = arith.mulf %885, %1078 : vector<8x128xf32>
    %1080 = arith.addf %1076, %1079 : vector<8x128xf32>
    %c294 = arith.constant 294 : index
    %1081 = memref.load %arg1[%c294] : memref<327xf32, #tpu.memory_space<smem>>
    %1082 = vector.broadcast %1081 : f32 to vector<8x128xf32>
    %1083 = arith.mulf %928, %1082 : vector<8x128xf32>
    %1084 = arith.addf %1080, %1083 : vector<8x128xf32>
    %c298 = arith.constant 298 : index
    %1085 = memref.load %arg1[%c298] : memref<327xf32, #tpu.memory_space<smem>>
    %1086 = vector.broadcast %1085 : f32 to vector<8x128xf32>
    %1087 = arith.mulf %971, %1086 : vector<8x128xf32>
    %1088 = arith.addf %1084, %1087 : vector<8x128xf32>
    %c302 = arith.constant 302 : index
    %1089 = memref.load %arg1[%c302] : memref<327xf32, #tpu.memory_space<smem>>
    %1090 = vector.broadcast %1089 : f32 to vector<8x128xf32>
    %1091 = arith.mulf %1014, %1090 : vector<8x128xf32>
    %1092 = arith.addf %1088, %1091 : vector<8x128xf32>
    %c306 = arith.constant 306 : index
    %1093 = memref.load %arg1[%c306] : memref<327xf32, #tpu.memory_space<smem>>
    %1094 = vector.broadcast %1093 : f32 to vector<8x128xf32>
    %1095 = arith.mulf %1057, %1094 : vector<8x128xf32>
    %1096 = arith.addf %1092, %1095 : vector<8x128xf32>
    %c310 = arith.constant 310 : index
    %1097 = memref.load %arg1[%c310] : memref<327xf32, #tpu.memory_space<smem>>
    %1098 = vector.broadcast %1097 : f32 to vector<8x128xf32>
    %1099 = arith.addf %1096, %1098 : vector<8x128xf32>
    %1100 = math.tanh %1099 : vector<8x128xf32>
    %c271 = arith.constant 271 : index
    %1101 = memref.load %arg1[%c271] : memref<327xf32, #tpu.memory_space<smem>>
    %1102 = vector.broadcast %1101 : f32 to vector<8x128xf32>
    %1103 = arith.mulf %670, %1102 : vector<8x128xf32>
    %c275 = arith.constant 275 : index
    %1104 = memref.load %arg1[%c275] : memref<327xf32, #tpu.memory_space<smem>>
    %1105 = vector.broadcast %1104 : f32 to vector<8x128xf32>
    %1106 = arith.mulf %713, %1105 : vector<8x128xf32>
    %1107 = arith.addf %1103, %1106 : vector<8x128xf32>
    %c279 = arith.constant 279 : index
    %1108 = memref.load %arg1[%c279] : memref<327xf32, #tpu.memory_space<smem>>
    %1109 = vector.broadcast %1108 : f32 to vector<8x128xf32>
    %1110 = arith.mulf %756, %1109 : vector<8x128xf32>
    %1111 = arith.addf %1107, %1110 : vector<8x128xf32>
    %c283 = arith.constant 283 : index
    %1112 = memref.load %arg1[%c283] : memref<327xf32, #tpu.memory_space<smem>>
    %1113 = vector.broadcast %1112 : f32 to vector<8x128xf32>
    %1114 = arith.mulf %799, %1113 : vector<8x128xf32>
    %1115 = arith.addf %1111, %1114 : vector<8x128xf32>
    %c287 = arith.constant 287 : index
    %1116 = memref.load %arg1[%c287] : memref<327xf32, #tpu.memory_space<smem>>
    %1117 = vector.broadcast %1116 : f32 to vector<8x128xf32>
    %1118 = arith.mulf %842, %1117 : vector<8x128xf32>
    %1119 = arith.addf %1115, %1118 : vector<8x128xf32>
    %c291 = arith.constant 291 : index
    %1120 = memref.load %arg1[%c291] : memref<327xf32, #tpu.memory_space<smem>>
    %1121 = vector.broadcast %1120 : f32 to vector<8x128xf32>
    %1122 = arith.mulf %885, %1121 : vector<8x128xf32>
    %1123 = arith.addf %1119, %1122 : vector<8x128xf32>
    %c295 = arith.constant 295 : index
    %1124 = memref.load %arg1[%c295] : memref<327xf32, #tpu.memory_space<smem>>
    %1125 = vector.broadcast %1124 : f32 to vector<8x128xf32>
    %1126 = arith.mulf %928, %1125 : vector<8x128xf32>
    %1127 = arith.addf %1123, %1126 : vector<8x128xf32>
    %c299 = arith.constant 299 : index
    %1128 = memref.load %arg1[%c299] : memref<327xf32, #tpu.memory_space<smem>>
    %1129 = vector.broadcast %1128 : f32 to vector<8x128xf32>
    %1130 = arith.mulf %971, %1129 : vector<8x128xf32>
    %1131 = arith.addf %1127, %1130 : vector<8x128xf32>
    %c303 = arith.constant 303 : index
    %1132 = memref.load %arg1[%c303] : memref<327xf32, #tpu.memory_space<smem>>
    %1133 = vector.broadcast %1132 : f32 to vector<8x128xf32>
    %1134 = arith.mulf %1014, %1133 : vector<8x128xf32>
    %1135 = arith.addf %1131, %1134 : vector<8x128xf32>
    %c307 = arith.constant 307 : index
    %1136 = memref.load %arg1[%c307] : memref<327xf32, #tpu.memory_space<smem>>
    %1137 = vector.broadcast %1136 : f32 to vector<8x128xf32>
    %1138 = arith.mulf %1057, %1137 : vector<8x128xf32>
    %1139 = arith.addf %1135, %1138 : vector<8x128xf32>
    %c311 = arith.constant 311 : index
    %1140 = memref.load %arg1[%c311] : memref<327xf32, #tpu.memory_space<smem>>
    %1141 = vector.broadcast %1140 : f32 to vector<8x128xf32>
    %1142 = arith.addf %1139, %1141 : vector<8x128xf32>
    %1143 = math.tanh %1142 : vector<8x128xf32>
    %c272 = arith.constant 272 : index
    %1144 = memref.load %arg1[%c272] : memref<327xf32, #tpu.memory_space<smem>>
    %1145 = vector.broadcast %1144 : f32 to vector<8x128xf32>
    %1146 = arith.mulf %670, %1145 : vector<8x128xf32>
    %c276 = arith.constant 276 : index
    %1147 = memref.load %arg1[%c276] : memref<327xf32, #tpu.memory_space<smem>>
    %1148 = vector.broadcast %1147 : f32 to vector<8x128xf32>
    %1149 = arith.mulf %713, %1148 : vector<8x128xf32>
    %1150 = arith.addf %1146, %1149 : vector<8x128xf32>
    %c280 = arith.constant 280 : index
    %1151 = memref.load %arg1[%c280] : memref<327xf32, #tpu.memory_space<smem>>
    %1152 = vector.broadcast %1151 : f32 to vector<8x128xf32>
    %1153 = arith.mulf %756, %1152 : vector<8x128xf32>
    %1154 = arith.addf %1150, %1153 : vector<8x128xf32>
    %c284 = arith.constant 284 : index
    %1155 = memref.load %arg1[%c284] : memref<327xf32, #tpu.memory_space<smem>>
    %1156 = vector.broadcast %1155 : f32 to vector<8x128xf32>
    %1157 = arith.mulf %799, %1156 : vector<8x128xf32>
    %1158 = arith.addf %1154, %1157 : vector<8x128xf32>
    %c288 = arith.constant 288 : index
    %1159 = memref.load %arg1[%c288] : memref<327xf32, #tpu.memory_space<smem>>
    %1160 = vector.broadcast %1159 : f32 to vector<8x128xf32>
    %1161 = arith.mulf %842, %1160 : vector<8x128xf32>
    %1162 = arith.addf %1158, %1161 : vector<8x128xf32>
    %c292 = arith.constant 292 : index
    %1163 = memref.load %arg1[%c292] : memref<327xf32, #tpu.memory_space<smem>>
    %1164 = vector.broadcast %1163 : f32 to vector<8x128xf32>
    %1165 = arith.mulf %885, %1164 : vector<8x128xf32>
    %1166 = arith.addf %1162, %1165 : vector<8x128xf32>
    %c296 = arith.constant 296 : index
    %1167 = memref.load %arg1[%c296] : memref<327xf32, #tpu.memory_space<smem>>
    %1168 = vector.broadcast %1167 : f32 to vector<8x128xf32>
    %1169 = arith.mulf %928, %1168 : vector<8x128xf32>
    %1170 = arith.addf %1166, %1169 : vector<8x128xf32>
    %c300 = arith.constant 300 : index
    %1171 = memref.load %arg1[%c300] : memref<327xf32, #tpu.memory_space<smem>>
    %1172 = vector.broadcast %1171 : f32 to vector<8x128xf32>
    %1173 = arith.mulf %971, %1172 : vector<8x128xf32>
    %1174 = arith.addf %1170, %1173 : vector<8x128xf32>
    %c304 = arith.constant 304 : index
    %1175 = memref.load %arg1[%c304] : memref<327xf32, #tpu.memory_space<smem>>
    %1176 = vector.broadcast %1175 : f32 to vector<8x128xf32>
    %1177 = arith.mulf %1014, %1176 : vector<8x128xf32>
    %1178 = arith.addf %1174, %1177 : vector<8x128xf32>
    %c308 = arith.constant 308 : index
    %1179 = memref.load %arg1[%c308] : memref<327xf32, #tpu.memory_space<smem>>
    %1180 = vector.broadcast %1179 : f32 to vector<8x128xf32>
    %1181 = arith.mulf %1057, %1180 : vector<8x128xf32>
    %1182 = arith.addf %1178, %1181 : vector<8x128xf32>
    %c312 = arith.constant 312 : index
    %1183 = memref.load %arg1[%c312] : memref<327xf32, #tpu.memory_space<smem>>
    %1184 = vector.broadcast %1183 : f32 to vector<8x128xf32>
    %1185 = arith.addf %1182, %1184 : vector<8x128xf32>
    %1186 = math.tanh %1185 : vector<8x128xf32>
    %c273 = arith.constant 273 : index
    %1187 = memref.load %arg1[%c273] : memref<327xf32, #tpu.memory_space<smem>>
    %1188 = vector.broadcast %1187 : f32 to vector<8x128xf32>
    %1189 = arith.mulf %670, %1188 : vector<8x128xf32>
    %c277 = arith.constant 277 : index
    %1190 = memref.load %arg1[%c277] : memref<327xf32, #tpu.memory_space<smem>>
    %1191 = vector.broadcast %1190 : f32 to vector<8x128xf32>
    %1192 = arith.mulf %713, %1191 : vector<8x128xf32>
    %1193 = arith.addf %1189, %1192 : vector<8x128xf32>
    %c281 = arith.constant 281 : index
    %1194 = memref.load %arg1[%c281] : memref<327xf32, #tpu.memory_space<smem>>
    %1195 = vector.broadcast %1194 : f32 to vector<8x128xf32>
    %1196 = arith.mulf %756, %1195 : vector<8x128xf32>
    %1197 = arith.addf %1193, %1196 : vector<8x128xf32>
    %c285 = arith.constant 285 : index
    %1198 = memref.load %arg1[%c285] : memref<327xf32, #tpu.memory_space<smem>>
    %1199 = vector.broadcast %1198 : f32 to vector<8x128xf32>
    %1200 = arith.mulf %799, %1199 : vector<8x128xf32>
    %1201 = arith.addf %1197, %1200 : vector<8x128xf32>
    %c289 = arith.constant 289 : index
    %1202 = memref.load %arg1[%c289] : memref<327xf32, #tpu.memory_space<smem>>
    %1203 = vector.broadcast %1202 : f32 to vector<8x128xf32>
    %1204 = arith.mulf %842, %1203 : vector<8x128xf32>
    %1205 = arith.addf %1201, %1204 : vector<8x128xf32>
    %c293 = arith.constant 293 : index
    %1206 = memref.load %arg1[%c293] : memref<327xf32, #tpu.memory_space<smem>>
    %1207 = vector.broadcast %1206 : f32 to vector<8x128xf32>
    %1208 = arith.mulf %885, %1207 : vector<8x128xf32>
    %1209 = arith.addf %1205, %1208 : vector<8x128xf32>
    %c297 = arith.constant 297 : index
    %1210 = memref.load %arg1[%c297] : memref<327xf32, #tpu.memory_space<smem>>
    %1211 = vector.broadcast %1210 : f32 to vector<8x128xf32>
    %1212 = arith.mulf %928, %1211 : vector<8x128xf32>
    %1213 = arith.addf %1209, %1212 : vector<8x128xf32>
    %c301 = arith.constant 301 : index
    %1214 = memref.load %arg1[%c301] : memref<327xf32, #tpu.memory_space<smem>>
    %1215 = vector.broadcast %1214 : f32 to vector<8x128xf32>
    %1216 = arith.mulf %971, %1215 : vector<8x128xf32>
    %1217 = arith.addf %1213, %1216 : vector<8x128xf32>
    %c305 = arith.constant 305 : index
    %1218 = memref.load %arg1[%c305] : memref<327xf32, #tpu.memory_space<smem>>
    %1219 = vector.broadcast %1218 : f32 to vector<8x128xf32>
    %1220 = arith.mulf %1014, %1219 : vector<8x128xf32>
    %1221 = arith.addf %1217, %1220 : vector<8x128xf32>
    %c309 = arith.constant 309 : index
    %1222 = memref.load %arg1[%c309] : memref<327xf32, #tpu.memory_space<smem>>
    %1223 = vector.broadcast %1222 : f32 to vector<8x128xf32>
    %1224 = arith.mulf %1057, %1223 : vector<8x128xf32>
    %1225 = arith.addf %1221, %1224 : vector<8x128xf32>
    %c313 = arith.constant 313 : index
    %1226 = memref.load %arg1[%c313] : memref<327xf32, #tpu.memory_space<smem>>
    %1227 = vector.broadcast %1226 : f32 to vector<8x128xf32>
    %1228 = arith.addf %1225, %1227 : vector<8x128xf32>
    %1229 = math.tanh %1228 : vector<8x128xf32>
    %1230 = arith.addf %1100, %1143 : vector<8x128xf32>
    %1231 = arith.addf %1230, %1186 : vector<8x128xf32>
    %1232 = arith.addf %1231, %1229 : vector<8x128xf32>
    %cst = arith.constant 2.500000e-01 : f32
    %1233 = vector.broadcast %cst : f32 to vector<8x128xf32>
    %1234 = arith.mulf %1232, %1233 : vector<8x128xf32>
    %1235 = arith.subf %1100, %1234 : vector<8x128xf32>
    %1236 = arith.subf %1143, %1234 : vector<8x128xf32>
    %1237 = arith.subf %1186, %1234 : vector<8x128xf32>
    %1238 = arith.subf %1229, %1234 : vector<8x128xf32>
    %1239 = arith.mulf %1235, %1235 : vector<8x128xf32>
    %1240 = arith.mulf %1236, %1236 : vector<8x128xf32>
    %1241 = arith.addf %1239, %1240 : vector<8x128xf32>
    %1242 = arith.mulf %1237, %1237 : vector<8x128xf32>
    %1243 = arith.addf %1241, %1242 : vector<8x128xf32>
    %1244 = arith.mulf %1238, %1238 : vector<8x128xf32>
    %1245 = arith.addf %1243, %1244 : vector<8x128xf32>
    %cst_12 = arith.constant 2.500000e-01 : f32
    %1246 = vector.broadcast %cst_12 : f32 to vector<8x128xf32>
    %1247 = arith.mulf %1245, %1246 : vector<8x128xf32>
    %cst_13 = arith.constant 9.99999974E-6 : f32
    %1248 = vector.broadcast %cst_13 : f32 to vector<8x128xf32>
    %1249 = arith.addf %1247, %1248 : vector<8x128xf32>
    %1250 = math.rsqrt %1249 : vector<8x128xf32>
    %1251 = arith.mulf %1235, %1250 : vector<8x128xf32>
    %c314 = arith.constant 314 : index
    %1252 = memref.load %arg1[%c314] : memref<327xf32, #tpu.memory_space<smem>>
    %1253 = vector.broadcast %1252 : f32 to vector<8x128xf32>
    %1254 = arith.mulf %1251, %1253 : vector<8x128xf32>
    %c318 = arith.constant 318 : index
    %1255 = memref.load %arg1[%c318] : memref<327xf32, #tpu.memory_space<smem>>
    %1256 = vector.broadcast %1255 : f32 to vector<8x128xf32>
    %1257 = arith.addf %1254, %1256 : vector<8x128xf32>
    %1258 = arith.mulf %1236, %1250 : vector<8x128xf32>
    %c315 = arith.constant 315 : index
    %1259 = memref.load %arg1[%c315] : memref<327xf32, #tpu.memory_space<smem>>
    %1260 = vector.broadcast %1259 : f32 to vector<8x128xf32>
    %1261 = arith.mulf %1258, %1260 : vector<8x128xf32>
    %c319 = arith.constant 319 : index
    %1262 = memref.load %arg1[%c319] : memref<327xf32, #tpu.memory_space<smem>>
    %1263 = vector.broadcast %1262 : f32 to vector<8x128xf32>
    %1264 = arith.addf %1261, %1263 : vector<8x128xf32>
    %1265 = arith.mulf %1237, %1250 : vector<8x128xf32>
    %c316 = arith.constant 316 : index
    %1266 = memref.load %arg1[%c316] : memref<327xf32, #tpu.memory_space<smem>>
    %1267 = vector.broadcast %1266 : f32 to vector<8x128xf32>
    %1268 = arith.mulf %1265, %1267 : vector<8x128xf32>
    %c320 = arith.constant 320 : index
    %1269 = memref.load %arg1[%c320] : memref<327xf32, #tpu.memory_space<smem>>
    %1270 = vector.broadcast %1269 : f32 to vector<8x128xf32>
    %1271 = arith.addf %1268, %1270 : vector<8x128xf32>
    %1272 = arith.mulf %1238, %1250 : vector<8x128xf32>
    %c317 = arith.constant 317 : index
    %1273 = memref.load %arg1[%c317] : memref<327xf32, #tpu.memory_space<smem>>
    %1274 = vector.broadcast %1273 : f32 to vector<8x128xf32>
    %1275 = arith.mulf %1272, %1274 : vector<8x128xf32>
    %c321 = arith.constant 321 : index
    %1276 = memref.load %arg1[%c321] : memref<327xf32, #tpu.memory_space<smem>>
    %1277 = vector.broadcast %1276 : f32 to vector<8x128xf32>
    %1278 = arith.addf %1275, %1277 : vector<8x128xf32>
    %c322 = arith.constant 322 : index
    %1279 = memref.load %arg1[%c322] : memref<327xf32, #tpu.memory_space<smem>>
    %1280 = vector.broadcast %1279 : f32 to vector<8x128xf32>
    %1281 = arith.mulf %1257, %1280 : vector<8x128xf32>
    %c323 = arith.constant 323 : index
    %1282 = memref.load %arg1[%c323] : memref<327xf32, #tpu.memory_space<smem>>
    %1283 = vector.broadcast %1282 : f32 to vector<8x128xf32>
    %1284 = arith.mulf %1264, %1283 : vector<8x128xf32>
    %1285 = arith.addf %1281, %1284 : vector<8x128xf32>
    %c324 = arith.constant 324 : index
    %1286 = memref.load %arg1[%c324] : memref<327xf32, #tpu.memory_space<smem>>
    %1287 = vector.broadcast %1286 : f32 to vector<8x128xf32>
    %1288 = arith.mulf %1271, %1287 : vector<8x128xf32>
    %1289 = arith.addf %1285, %1288 : vector<8x128xf32>
    %c325 = arith.constant 325 : index
    %1290 = memref.load %arg1[%c325] : memref<327xf32, #tpu.memory_space<smem>>
    %1291 = vector.broadcast %1290 : f32 to vector<8x128xf32>
    %1292 = arith.mulf %1278, %1291 : vector<8x128xf32>
    %1293 = arith.addf %1289, %1292 : vector<8x128xf32>
    %c326 = arith.constant 326 : index
    %1294 = memref.load %arg1[%c326] : memref<327xf32, #tpu.memory_space<smem>>
    %1295 = vector.broadcast %1294 : f32 to vector<8x128xf32>
    %1296 = arith.addf %1293, %1295 : vector<8x128xf32>
    %c0_14 = arith.constant 0 : index
    %c0_15 = arith.constant 0 : index
    %1297 = vector.load %arg3[%c0_14, %c0_15] : memref<8x128xf32, #tpu.memory_space<vmem>>, vector<8x128xf32>
    tpu.vector_store %arg3[%c0_14, %c0_15], %1296 {strides = array<i32>} : memref<8x128xf32, #tpu.memory_space<vmem>>, vector<8x128xf32>,
    return
  }
  func.func @transform_0(%arg0: i32) -> i32 {
    %c0_i32 = arith.constant 0 : i32
    %c0_i32_0 = arith.constant 0 : i32
    return %c0_i32 : i32
  }
  func.func @transform_1(%arg0: i32) -> (i32, i32, i32) {
    %c0_i32 = arith.constant 0 : i32
    %c0_i32_0 = arith.constant 0 : i32
    %c0_i32_1 = arith.constant 0 : i32
    return %c0_i32, %arg0, %c0_i32_0 : i32, i32, i32
  }
  func.func @transform_2(%arg0: i32) -> (i32, i32) {
    %c0_i32 = arith.constant 0 : i32
    %c0_i32_0 = arith.constant 0 : i32
    return %arg0, %c0_i32 : i32, i32
  }
}

</mosaic_0001>

<bundles_post_ra>
// kernel: tpu_custom_call.1
= control target key start
LH: loop header
LB: loop body
LE: loop exit
PB: predicated region body
PF: predicated region fallthrough
CT: control target
= control target key end

     0   :  { %7 = vsyncpa [#allocation5], 0  ;;  %s3158_s0 = inlined_call_operand.hbm [shape: f32[327], index: 0, kind: input, shape index: {}]   ;;  %s3159_s1 = inlined_call_operand.hbm [shape: f32[4,8,128], index: 1, kind: input, shape index: {}]   ;;  %s3160_s2 = inlined_call_operand.hbm [shape: f32[8,128], index: 2, kind: output, shape index: {}]  }
   0x1   :  { %8 = vsyncpa [#allocation3], 0 }
   0x2   :  { %9 = vsyncpa [#allocation4], 0  ;;  %s1748_s11 = scalar_lea.hbm %s3158_s0, 48  ;;  %s1750_s16 = scalar_lea.hbm %s3158_s0, 64 }
   0x3   :  { %p1749_p0 = scmp.ne.s32.totalorder %s3158_s0, %s1748_s11  ;;  %p1751_p1 = scmp.lt.u32.totalorder %s1750_s16, %s1748_s11 }
   0x4   :  { %p1752_p2 = scmp.lt.u32.totalorder %s1748_s11, %s3158_s0 }
   0x6   :  { %p1753_p3 = por %p1752_p2, %p1751_p1 }
   0x8   :  { %p1754_p4 = pnand %p1753_p3, %p1749_p0 }
   0xa   :  { %1757 = shalt.err (!%p1754_p4)
}
   0xb   :  { %s1808_s19 = smov [#allocation2]   ;;  %s1809_s22 = smov [#allocation6]  }
   0xc   :  { %17 = dma.hbm_to_smem %s3158_s0, 48, %s1808_s19, [#allocation5]  }
   0xd   :  { %s23_s23 = sshll.u32 %s1809_s22, 4  ;;  %s1758_s26 = scalar_lea.hbm %s3159_s1, 512  ;;  %s24_s23 = int_to_ptr.vmem [resolvable:$true] %s23_s23 }
   0xe   :  { %p1759_p5 = scmp.ne.s32.totalorder %s3159_s1, %s1758_s26  ;;  %p1762_p6 = scmp.lt.u32.totalorder %s1758_s26, %s3159_s1 }
  0x10   :  { %p1764_p7 = pnand %p1762_p6, %p1759_p5 }
  0x12   :  { %1767 = shalt.err (!%p1764_p7)
}
  0x13   :  { %s1768_s3 = scalar_lea.vmem %s24_s23, 512  ;;  %p1773_p9 = scmp.lt.s32.totalorder %s24_s23, %s24_s23 }
  0x14   :  { %p1769_p8 = scmp.ne.s32.totalorder %s24_s23, %s1768_s3  ;;  %p1774_p10 = scmp.lt.s32.totalorder %s1768_s3, %s1768_s3 }
  0x16   :  { %p1775_p11 = por %p1774_p10, %p1773_p9 }
  0x18   :  { %p1776_p12 = pnand %p1775_p11, %p1769_p8 }
  0x1a   :  { %1779 = shalt.err (!%p1776_p12)
}
  0x1b   :  { %s1810_s0 = smov 128   ;;  %s1811_s4 = smov 8  }
  0x1c   :  { %29 = dma.hbm_to_vmem [thread:$0]  %s3159_s1, 512, %s24_s23, [#allocation3], %s1810_s0, %s1810_s0, %s1811_s4  }
  0x1d   :  { %1802 = dma.done.wait [#allocation5], 48  }
  0x1e   :  { %1803 = vsyncadd [#allocation5], 4294967248 }
  0x1f   :  { %1804 = dma.done.wait [#allocation3], 512  }
  0x20   :  { %1805 = vsyncadd [#allocation3], 4294966784 }
  0x21   :  { %36 = sfence }
  0x22   :  { %s44_s7 = sld [smem:[#allocation2]]  ;;  %s1347_s8 = sld [smem:[#allocation2 + $0xa]]  ;;  %v1857_v0 = vld [vmem:[#allocation6] sm:$0xff]  ;;  %v1863_v1 = vld [vmem:[#allocation6 + $0x8] sm:$0xff]  ;;  %v1865_v2 = vld [vmem:[#allocation6 + $0x10] sm:$0xff] }
  0x23   :  { %s1348_s9 = sld [smem:[#allocation2 + $0x14]]  ;;  %s1349_s10 = sld [smem:[#allocation2 + $0x1e]]  ;;  %v1871_v3 = vld [vmem:[#allocation6 + $0x18] sm:$0xff] }
  0x24   :  { %s1855_s11 = sld [smem:[#allocation2 + $0x28]]  ;;  %s1351_s12 = sld [smem:[#allocation2 + $0x1]] }
  0x25   :  { %s1352_s13 = sld [smem:[#allocation2 + $0xb]]  ;;  %s1859_s14 = sld [smem:[#allocation2 + $0x15]] }
  0x26   :  { %s1861_s15 = sld [smem:[#allocation2 + $0x1f]]  ;;  %s1867_s1 = sld [smem:[#allocation2 + $0x29]] }
  0x27   :  { %s1869_s16 = sld [smem:[#allocation2 + $0x2]]  ;;  %s1873_s17 = sld [smem:[#allocation2 + $0xc]] }
  0x28   :  { %v45_v4 = vstv %s44_s7  ;;  %s1875_s18 = sld [smem:[#allocation2 + $0x16]]  ;;  %v48_v6 = vstv %s1347_s8  ;;  %s1878_s19 = sld [smem:[#allocation2 + $0x20]] }
  0x29   :  { %v46_v5 = vmul.f32 %v45_v4, %v1857_v0  ;;  %v52_v7 = vstv %s1348_s9  ;;  %s1880_s20 = sld [smem:[#allocation2 + $0x2a]]  ;;  %v49_v8 = vmul.f32 %v48_v6, %v1863_v1  ;;  %v56_v10 = vstv %s1349_s10  ;;  %s1884_s21 = sld [smem:[#allocation2 + $0x3]] }
  0x2a   :  { %v53_v9 = vmul.f32 %v52_v7, %v1865_v2  ;;  %s1886_s22 = sld [smem:[#allocation2 + $0xd]]  ;;  %v57_v11 = vmul.f32 %v56_v10, %v1871_v3  ;;  %v64_v12 = vstv %s1351_s12  ;;  %s1889_s23 = sld [smem:[#allocation2 + $0x17]]  ;;  %v60_v18 = vstv %s1855_s11 }
  0x2b   :  { %v67_v13 = vstv %s1352_s13  ;;  %s1891_s24 = sld [smem:[#allocation2 + $0x21]]  ;;  %v50_v14 = vadd.f32 %v49_v8, %v46_v5  ;;  %v65_v15 = vmul.f32 %v64_v12, %v1857_v0  ;;  %v71_v17 = vstv %s1859_s14  ;;  %s1896_s25 = sld [smem:[#allocation2 + $0x2b]] }
  0x2c   :  { %v68_v16 = vmul.f32 %v67_v13, %v1863_v1  ;;  %s1898_s26 = sld [smem:[#allocation2 + $0x4]]  ;;  %v72_v19 = vmul.f32 %v71_v17, %v1865_v2  ;;  %v75_v20 = vstv %s1861_s15  ;;  %s1904_s27 = sld [smem:[#allocation2 + $0xe]]  ;;  %v79_v26 = vstv %s1867_s1 }
  0x2d   :  { %v83_v21 = vstv %s1869_s16  ;;  %s1906_s28 = sld [smem:[#allocation2 + $0x18]]  ;;  %v54_v22 = vadd.f32 %v53_v9, %v50_v14  ;;  %v76_v24 = vmul.f32 %v75_v20, %v1871_v3  ;;  %v86_v27 = vstv %s1873_s17  ;;  %s1914_s29 = sld [smem:[#allocation2 + $0x22]] }
  0x2e   :  { %v69_v23 = vadd.f32 %v68_v16, %v65_v15  ;;  %v84_v25 = vmul.f32 %v83_v21, %v1857_v0  ;;  %v90_v28 = vstv %s1875_s18  ;;  %v94_v29 = vstv %s1878_s19  ;;  %s1918_s30 = sld [smem:[#allocation2 + $0x5]]  ;;  %s1924_s3 = sld [smem:[#allocation2 + $0xf]] }
  0x2f   :  { %v58_v30 = vadd.f32 %v57_v11, %v54_v22  ;;  %v87_v32 = vmul.f32 %v86_v27, %v1863_v1  ;;  %v91_v33 = vmul.f32 %v90_v28, %v1865_v2  ;;  %v95_v34 = vmul.f32 %v94_v29, %v1871_v3  ;;  %s1926_s0 = sld [smem:[#allocation2 + $0x19]]  ;;  %s1929_s4 = sld [smem:[#allocation2 + $0x2c]] }
  0x30   :  { %v73_v31 = vadd.f32 %v72_v19, %v69_v23  ;;  %v102_v35 = vstv %s1884_s21  ;;  %v105_v36 = vstv %s1886_s22  ;;  %v109_v37 = vstv %s1889_s23  ;;  %s1935_s5 = sld [smem:[#allocation2 + $0x23]]  ;;  %s1937_s6 = sld [smem:[#allocation2 + $0x6]] }
  0x31   :  { %v61_v38 = vadd.f32 %v60_v18, %v58_v30  ;;  %v88_v40 = vadd.f32 %v87_v32, %v84_v25  ;;  %v103_v41 = vmul.f32 %v102_v35, %v1857_v0  ;;  %v98_v42 = vstv %s1880_s20  ;;  %s1941_s7 = sld [smem:[#allocation2 + $0x2d]]  ;;  %s1943_s8 = sld [smem:[#allocation2 + $0x10]] }
  0x32   :  { %v77_v39 = vadd.f32 %v76_v24, %v73_v31  ;;  %v106_v43 = vmul.f32 %v105_v36, %v1863_v1  ;;  %v110_v44 = vmul.f32 %v109_v37, %v1865_v2  ;;  %v113_v45 = vstv %s1891_s24  ;;  %s1948_s9 = sld [smem:[#allocation2 + $0x1a]]  ;;  %s1950_s10 = sld [smem:[#allocation2 + $0x24]] }
  0x33   :  { %v92_v47 = vadd.f32 %v91_v33, %v88_v40  ;;  %v114_v48 = vmul.f32 %v113_v45, %v1871_v3  ;;  %v117_v49 = vstv %s1896_s25  ;;  %v121_v51 = vstv %s1898_s26  ;;  %s1956_s11 = sld [smem:[#allocation2 + $0x7]]  ;;  %s1958_s12 = sld [smem:[#allocation2 + $0x11]] }
  0x34   :  { %v80_v46 = vadd.f32 %v79_v26, %v77_v39  ;;  %v107_v50 = vadd.f32 %v106_v43, %v103_v41  ;;  %v124_v52 = vstv %s1904_s27  ;;  %v128_v53 = vstv %s1906_s28  ;;  %s1962_s13 = sld [smem:[#allocation2 + $0x2e]]  ;;  %s1967_s14 = sld [smem:[#allocation2 + $0x1b]] }
  0x35   :  { %1678 = vtanh.f32 %v61_v38  ;;  %v96_v54 = vadd.f32 %v95_v34, %v92_v47  ;;  %v122_v55 = vmul.f32 %v121_v51, %v1857_v0  ;;  %v125_v56 = vmul.f32 %v124_v52, %v1863_v1  ;;  %s1969_s15 = sld [smem:[#allocation2 + $0x25]]  ;;  %s1974_s1 = sld [smem:[#allocation2 + $0x8]] }
  0x36   :  { %1680 = vtanh.f32 %v80_v46  ;;  %v111_v57 = vadd.f32 %v110_v44, %v107_v50  ;;  %v129_v58 = vmul.f32 %v128_v53, %v1865_v2  ;;  %v132_v59 = vstv %s1914_s29  ;;  %s1978_s16 = sld [smem:[#allocation2 + $0x12]]  ;;  %s1980_s17 = sld [smem:[#allocation2 + $0x1c]] }
  0x37   :  { %v99_v60 = vadd.f32 %v98_v42, %v96_v54  ;;  %v126_v61 = vadd.f32 %v125_v56, %v122_v55  ;;  %v133_v62 = vmul.f32 %v132_v59, %v1871_v3  ;;  %v140_v63 = vstv %s1918_s30  ;;  %s1988_s18 = sld [smem:[#allocation2 + $0x2f]]  ;;  %s1990_s19 = sld [smem:[#allocation2 + $0x26]] }
  0x38   :  { %v115_v4 = vadd.f32 %v114_v48, %v111_v57  ;;  %v141_v5 = vmul.f32 %v140_v63, %v1857_v0  ;;  %v143_v6 = vstv %s1924_s3  ;;  %v147_v7 = vstv %s1926_s0  ;;  %s1994_s20 = sld [smem:[#allocation2 + $0x9]]  ;;  %s1999_s21 = sld [smem:[#allocation2 + $0x13]] }
  0x39   :  { %v130_v8 = vadd.f32 %v129_v58, %v126_v61  ;;  %v136_v9 = vstv %s1929_s4  ;;  %v144_v10 = vmul.f32 %v143_v6, %v1863_v1  ;;  %v148_v11 = vmul.f32 %v147_v7, %v1865_v2  ;;  %s2001_s22 = sld [smem:[#allocation2 + $0x1d]]  ;;  %s2007_s23 = sld [smem:[#allocation2 + $0x30]] }
  0x3a   :  { %1682 = vtanh.f32 %v99_v60  ;;  %v118_v12 = vadd.f32 %v117_v49, %v115_v4  ;;  %v151_v13 = vstv %s1935_s5  ;;  %v159_v14 = vstv %s1937_s6  ;;  %s2014_s24 = sld [smem:[#allocation2 + $0x27]]  ;;  %s2016_s25 = sld [smem:[#allocation2 + $0x32]] }
  0x3b   :  { %v134_v15 = vadd.f32 %v133_v62, %v130_v8  ;;  %v145_v16 = vadd.f32 %v144_v10, %v141_v5  ;;  %v152_v17 = vmul.f32 %v151_v13, %v1871_v3  ;;  %v160_v18 = vmul.f32 %v159_v14, %v1857_v0  ;;  %s2020_s26 = sld [smem:[#allocation2 + $0x3c]]  ;;  %s2025_s27 = sld [smem:[#allocation2 + $0x46]] }
  0x3c   :  { %v155_v19 = vstv %s1941_s7  ;;  %v162_v20 = vstv %s1943_s8  ;;  %v166_v21 = vstv %s1948_s9  ;;  %v170_v22 = vstv %s1950_s10  ;;  %s2027_s28 = sld [smem:[#allocation2 + $0x50]]  ;;  %s2031_s29 = sld [smem:[#allocation2 + $0x31]] }
  0x3d   :  { %v137_v23 = vadd.f32 %v136_v9, %v134_v15  ;;  %v149_v24 = vadd.f32 %v148_v11, %v145_v16  ;;  %v163_v25 = vmul.f32 %v162_v20, %v1863_v1  ;;  %v167_v26 = vmul.f32 %v166_v21, %v1865_v2  ;;  %s2038_s30 = sld [smem:[#allocation2 + $0x5a]]  ;;  %s2040_s3 = sld [smem:[#allocation2 + $0x64]] }
  0x3e   :  { %1684 = vtanh.f32 %v118_v12  ;;  %v171_v27 = vmul.f32 %v170_v22, %v1871_v3  ;;  %v178_v28 = vstv %s1956_s11  ;;  %v181_v29 = vstv %s1958_s12  ;;  %s2047_s0 = sld [smem:[#allocation2 + $0x6e]]  ;;  %s2049_s4 = sld [smem:[#allocation2 + $0x78]] }
  0x3f   :  { %v2003_v30 = vpop.eup %1678  ;;  %v153_v31 = vadd.f32 %v152_v17, %v149_v24  ;;  %v164_v32 = vadd.f32 %v163_v25, %v160_v18  ;;  %v174_v33 = vstv %s1962_s13  ;;  %v179_v34 = vmul.f32 %v178_v28, %v1857_v0  ;;  %s2053_s5 = sld [smem:[#allocation2 + $0x33]]  ;;  %s2055_s6 = sld [smem:[#allocation2 + $0x3d]] }
  0x40   :  { %v2009_v35 = vpop.eup %1680  ;;  %1686 = vtanh.f32 %v137_v23  ;;  %v182_v36 = vmul.f32 %v181_v29, %v1863_v1  ;;  %v185_v37 = vstv %s1967_s14  ;;  %v189_v38 = vstv %s1969_s15  ;;  %s2062_s7 = sld [smem:[#allocation2 + $0x47]]  ;;  %s2064_s8 = sld [smem:[#allocation2 + $0x51]] }
  0x41   :  { %v156_v39 = vadd.f32 %v155_v19, %v153_v31  ;;  %v168_v40 = vadd.f32 %v167_v26, %v164_v32  ;;  %v186_v41 = vmul.f32 %v185_v37, %v1865_v2  ;;  %v190_v42 = vmul.f32 %v189_v38, %v1871_v3  ;;  %s2068_s9 = sld [smem:[#allocation2 + $0x82]]  ;;  %s2070_s10 = sld [smem:[#allocation2 + $0x8c]] }
  0x42   :  { %v183_v43 = vadd.f32 %v182_v36, %v179_v34  ;;  %v197_v44 = vstv %s1974_s1  ;;  %v200_v45 = vstv %s1978_s16  ;;  %v204_v46 = vstv %s1980_s17  ;;  %s2077_s11 = sld [smem:[#allocation2 + $0x5b]]  ;;  %s2079_s12 = sld [smem:[#allocation2 + $0x65]] }
  0x43   :  { %1688 = vtanh.f32 %v156_v39  ;;  %v172_v47 = vadd.f32 %v171_v27, %v168_v40  ;;  %v198_v48 = vmul.f32 %v197_v44, %v1857_v0  ;;  %v201_v49 = vmul.f32 %v200_v45, %v1863_v1  ;;  %s2086_s13 = sld [smem:[#allocation2 + $0x6f]]  ;;  %s2088_s14 = sld [smem:[#allocation2 + $0x79]] }
  0x44   :  { %v2033_v50 = vpop.eup %1682  ;;  %v187_v51 = vadd.f32 %v186_v41, %v183_v43  ;;  %v193_v52 = vstv %s1988_s18  ;;  %v205_v53 = vmul.f32 %v204_v46, %v1865_v2  ;;  %v208_v54 = vstv %s1990_s19  ;;  %s2093_s15 = sld [smem:[#allocation2 + $0x83]]  ;;  %s2095_s1 = sld [smem:[#allocation2 + $0x8d]] }
  0x45   :  { %v175_v55 = vadd.f32 %v174_v33, %v172_v47  ;;  %v202_v56 = vadd.f32 %v201_v49, %v198_v48  ;;  %v209_v57 = vmul.f32 %v208_v54, %v1871_v3  ;;  %v216_v58 = vstv %s1994_s20  ;;  %s2100_s16 = sld [smem:[#allocation2 + $0x34]]  ;;  %s2102_s17 = sld [smem:[#allocation2 + $0x3e]] }
  0x46   :  { %v191_v59 = vadd.f32 %v190_v42, %v187_v51  ;;  %v217_v60 = vmul.f32 %v216_v58, %v1857_v0  ;;  %v219_v61 = vstv %s1999_s21  ;;  %v223_v62 = vstv %s2001_s22  ;;  %s2110_s18 = sld [smem:[#allocation2 + $0x48]]  ;;  %s2112_s19 = sld [smem:[#allocation2 + $0x52]] }
  0x47   :  { %1690 = vtanh.f32 %v175_v55  ;;  %v206_v63 = vadd.f32 %v205_v53, %v202_v56  ;;  %v220_v4 = vmul.f32 %v219_v61, %v1863_v1  ;;  %v224_v5 = vmul.f32 %v223_v62, %v1865_v2  ;;  %s2118_s20 = sld [smem:[#allocation2 + $0x5c]]  ;;  %s2124_s21 = sld [smem:[#allocation2 + $0x66]] }
  0x48   :  { %v2057_v6 = vpop.eup %1684  ;;  %v194_v0 = vadd.f32 %v193_v52, %v191_v59  ;;  %v212_v7 = vstv %s2007_s23  ;;  %v227_v8 = vstv %s2014_s24  ;;  %v235_v9 = vstv %s2016_s25  ;;  %s2126_s22 = sld [smem:[#allocation2 + $0x70]]  ;;  %s2132_s23 = sld [smem:[#allocation2 + $0x96]] }
  0x49   :  { %v210_v1 = vadd.f32 %v209_v57, %v206_v63  ;;  %v221_v10 = vadd.f32 %v220_v4, %v217_v60  ;;  %v228_v2 = vmul.f32 %v227_v8, %v1871_v3  ;;  %v236_v11 = vmul.f32 %v2003_v30, %v235_v9  ;;  %s2140_s24 = sld [smem:[#allocation2 + $0x7a]]  ;;  %s2142_s25 = sld [smem:[#allocation2 + $0x84]] }
  0x4a   :  { %v2072_v12 = vpop.eup %1686  ;;  %1692 = vtanh.f32 %v194_v0  ;;  %v238_v13 = vstv %s2020_s26  ;;  %v242_v14 = vstv %s2025_s27  ;;  %v246_v15 = vstv %s2027_s28  ;;  %s2146_s26 = sld [smem:[#allocation2 + $0x97]]  ;;  %s2154_s27 = sld [smem:[#allocation2 + $0x8e]] }
  0x4b   :  { %v213_v16 = vadd.f32 %v212_v7, %v210_v1  ;;  %v225_v3 = vadd.f32 %v224_v5, %v221_v10  ;;  %v239_v17 = vmul.f32 %v2009_v35, %v238_v13  ;;  %v243_v18 = vmul.f32 %v2033_v50, %v242_v14  ;;  %s2156_s28 = sld [smem:[#allocation2 + $0x35]] }
  0x4c   :  { %v231_v19 = vstv %s2031_s29  ;;  %v250_v20 = vstv %s2038_s30  ;;  %v254_v21 = vstv %s2040_s3  ;;  %v247_v25 = vmul.f32 %v2057_v6, %v246_v15  ;;  %s2162_s29 = sld [smem:[#allocation2 + $0x3f]]  ;;  %s2164_s30 = sld [smem:[#allocation2 + $0x49]] }
  0x4d   :  { %v2090_v22 = vpop.eup %1688  ;;  %1694 = vtanh.f32 %v213_v16  ;;  %v229_v23 = vadd.f32 %v228_v2, %v225_v3  ;;  %v240_v24 = vadd.f32 %v239_v17, %v236_v11  ;;  %v251_v26 = vmul.f32 %v2072_v12, %v250_v20  ;;  %s2171_s3 = sld [smem:[#allocation2 + $0x53]] }
  0x4e   :  { %v255_v27 = vmul.f32 %v2090_v22, %v254_v21  ;;  %v258_v28 = vstv %s2047_s0  ;;  %v262_v32 = vstv %s2049_s4  ;;  %v278_v33 = vstv %s2053_s5  ;;  %s2173_s0 = sld [smem:[#allocation2 + $0x5d]]  ;;  %s2178_s4 = sld [smem:[#allocation2 + $0x67]] }
  0x4f   :  { %v232_v29 = vadd.f32 %v231_v19, %v229_v23  ;;  %v244_v31 = vadd.f32 %v243_v18, %v240_v24  ;;  %v279_v34 = vmul.f32 %v2003_v30, %v278_v33  ;;  %v281_v36 = vstv %s2055_s6  ;;  %s2184_s5 = sld [smem:[#allocation2 + $0x71]]  ;;  %s2186_s6 = sld [smem:[#allocation2 + $0x7b]] }
  0x50   :  { %v285_v37 = vstv %s2062_s7  ;;  %v289_v38 = vstv %s2064_s8  ;;  %v282_v41 = vmul.f32 %v2009_v35, %v281_v36  ;;  %v266_v43 = vstv %s2068_s9  ;;  %s2193_s7 = sld [smem:[#allocation2 + $0x98]]  ;;  %s2197_s8 = sld [smem:[#allocation2 + $0x85]] }
  0x51   :  { %v2114_v39 = vpop.eup %1690  ;;  %1696 = vtanh.f32 %v232_v29  ;;  %v248_v40 = vadd.f32 %v247_v25, %v244_v31  ;;  %v286_v42 = vmul.f32 %v2033_v50, %v285_v37  ;;  %v270_v44 = vstv %s2070_s10  ;;  %s2199_s9 = sld [smem:[#allocation2 + $0x8f]]  ;;  %s2205_s10 = sld [smem:[#allocation2 + $0x36]] }
  0x52   :  { %v293_v45 = vstv %s2077_s11  ;;  %v297_v46 = vstv %s2079_s12  ;;  %v259_v48 = vmul.f32 %v2114_v39, %v258_v28  ;;  %v283_v49 = vadd.f32 %v282_v41, %v279_v34  ;;  %s2207_s11 = sld [smem:[#allocation2 + $0x40]]  ;;  %s2211_s12 = sld [smem:[#allocation2 + $0x4a]] }
  0x53   :  { %v252_v47 = vadd.f32 %v251_v26, %v248_v40  ;;  %v290_v51 = vmul.f32 %v2057_v6, %v289_v38  ;;  %v294_v53 = vmul.f32 %v2072_v12, %v293_v45  ;;  %v298_v54 = vmul.f32 %v2090_v22, %v297_v46 }
  0x54   :  { %v2130_v52 = vpop.eup %1692  ;;  %v301_v55 = vstv %s2086_s13  ;;  %v305_v56 = vstv %s2088_s14  ;;  %v287_v59 = vadd.f32 %v286_v42, %v283_v49  ;;  %v309_v60 = vstv %s2093_s15  ;;  %s2213_s13 = sld [smem:[#allocation2 + $0x54]]  ;;  %s2218_s14 = sld [smem:[#allocation2 + $0x5e]] }
  0x55   :  { %v256_v57 = vadd.f32 %v255_v27, %v252_v47  ;;  %v263_v58 = vmul.f32 %v2130_v52, %v262_v32  ;;  %v302_v61 = vmul.f32 %v2114_v39, %v301_v55  ;;  %v313_v62 = vstv %s2095_s1  ;;  %s2220_s15 = sld [smem:[#allocation2 + $0x68]]  ;;  %s2227_s1 = sld [smem:[#allocation2 + $0x72]] }
  0x56   :  { %v321_v63 = vstv %s2100_s16  ;;  %v324_v4 = vstv %s2102_s17  ;;  %v291_v7 = vadd.f32 %v290_v51, %v287_v59  ;;  %v306_v10 = vmul.f32 %v2130_v52, %v305_v56  ;;  %s2230_s16 = sld [smem:[#allocation2 + $0x99]]  ;;  %s2235_s17 = sld [smem:[#allocation2 + $0x7c]] }
  0x57   :  { %v2150_v5 = vpop.eup %1694  ;;  %v260_v0 = vadd.f32 %v259_v48, %v256_v57  ;;  %v322_v8 = vmul.f32 %v2003_v30, %v321_v63  ;;  %v325_v9 = vmul.f32 %v2009_v35, %v324_v4  ;;  %v328_v2 = vstv %s2110_s18  ;;  %s2237_s18 = sld [smem:[#allocation2 + $0x86]] }
  0x58   :  { %v267_v1 = vmul.f32 %v2150_v5, %v266_v43  ;;  %v332_v11 = vstv %s2112_s19  ;;  %v295_v14 = vadd.f32 %v294_v53, %v291_v7  ;;  %v329_v16 = vmul.f32 %v2033_v50, %v328_v2  ;;  %s2241_s19 = sld [smem:[#allocation2 + $0x90]] }
  0x59   :  { %v264_v13 = vadd.f32 %v263_v58, %v260_v0  ;;  %v326_v15 = vadd.f32 %v325_v9, %v322_v8  ;;  %v333_v3 = vmul.f32 %v2057_v6, %v332_v11  ;;  %v336_v17 = vstv %s2118_s20  ;;  %s2243_s20 = sld [smem:[#allocation2 + $0x37]] }
  0x5a   :  { %v340_v18 = vstv %s2124_s21  ;;  %v344_v19 = vstv %s2126_s22  ;;  %v299_v23 = vadd.f32 %v298_v54, %v295_v14  ;;  %v337_v25 = vmul.f32 %v2072_v12, %v336_v17  ;;  %s2248_s21 = sld [smem:[#allocation2 + $0x41]]  ;;  %s2250_s22 = sld [smem:[#allocation2 + $0x4b]] }
  0x5b   :  { %v2175_v20 = vpop.eup %1696  ;;  %v268_v21 = vadd.f32 %v267_v1, %v264_v13  ;;  %v330_v24 = vadd.f32 %v329_v16, %v326_v15  ;;  %v274_v27 = vstv %s2132_s23  ;;  %v310_v28 = vmul.f32 %v2150_v5, %v309_v60  ;;  %s2254_s23 = sld [smem:[#allocation2 + $0x55]] }
  0x5c   :  { %v271_v26 = vmul.f32 %v2175_v20, %v270_v44  ;;  %v341_v29 = vmul.f32 %v2090_v22, %v340_v18  ;;  %v303_v31 = vadd.f32 %v302_v61, %v299_v23  ;;  %v348_v33 = vstv %s2140_s24  ;;  %s2260_s24 = sld [smem:[#allocation2 + $0x5f]] }
  0x5d   :  { %v334_v32 = vadd.f32 %v333_v3, %v330_v24  ;;  %v352_v34 = vstv %s2142_s25  ;;  %v314_v37 = vmul.f32 %v2175_v20, %v313_v62  ;;  %v317_v38 = vstv %s2146_s26  ;;  %s2262_s25 = sld [smem:[#allocation2 + $0x69]]  ;;  %s2265_s26 = sld [smem:[#allocation2 + $0x9a]] }
  0x5e   :  { %v272_v36 = vadd.f32 %v271_v26, %v268_v21  ;;  %v345_v40 = vmul.f32 %v2114_v39, %v344_v19  ;;  %v307_v41 = vadd.f32 %v306_v10, %v303_v31  ;;  %v349_v43 = vmul.f32 %v2130_v52, %v348_v33 }
  0x5f   :  { %v338_v42 = vadd.f32 %v337_v25, %v334_v32  ;;  %v353_v44 = vmul.f32 %v2150_v5, %v352_v34  ;;  %v356_v45 = vstv %s2154_s27  ;;  %v364_v46 = vstv %s2156_s28  ;;  %s2271_s27 = sld [smem:[#allocation2 + $0x73]]  ;;  %s2273_s28 = sld [smem:[#allocation2 + $0x7d]] }
  0x60   :  { %v367_v47 = vstv %s2162_s29  ;;  %v371_v48 = vstv %s2164_s30  ;;  %v311_v49 = vadd.f32 %v310_v28, %v307_v41  ;;  %v365_v53 = vmul.f32 %v2003_v30, %v364_v46  ;;  %s2280_s29 = sld [smem:[#allocation2 + $0x87]]  ;;  %s2282_s30 = sld [smem:[#allocation2 + $0x91]] }
  0x61   :  { %v342_v51 = vadd.f32 %v341_v29, %v338_v42  ;;  %v368_v54 = vmul.f32 %v2009_v35, %v367_v47  ;;  %v275_v55 = vadd.f32 %v274_v27, %v272_v36  ;;  %v372_v56 = vmul.f32 %v2033_v50, %v371_v48 }
  0x62   :  { %v375_v57 = vstv %s2171_s3  ;;  %v379_v58 = vstv %s2173_s0  ;;  %v315_v59 = vadd.f32 %v314_v37, %v311_v49  ;;  %v357_v63 = vmul.f32 %v2175_v20, %v356_v45  ;;  %s2286_s3 = sld [smem:[#allocation2 + $0x9b]]  ;;  %s2288_s0 = sld [smem:[#allocation2 + $0x38]] }
  0x63   :  { %v346_v60 = vadd.f32 %v345_v40, %v342_v51  ;;  %v369_v61 = vadd.f32 %v368_v54, %v365_v53  ;;  %v376_v62 = vmul.f32 %v2057_v6, %v375_v57  ;;  %v383_v4 = vstv %s2178_s4  ;;  %s2296_s4 = sld [smem:[#allocation2 + $0x42]] }
  0x64   :  { %v387_v0 = vstv %s2184_s5  ;;  %v391_v7 = vstv %s2186_s6  ;;  %v318_v8 = vadd.f32 %v317_v38, %v315_v59  ;;  %v380_v10 = vmul.f32 %v2072_v12, %v379_v58  ;;  %s2298_s5 = sld [smem:[#allocation2 + $0x4c]]  ;;  %s2302_s6 = sld [smem:[#allocation2 + $0x56]] }
  0x65   :  { %v350_v9 = vadd.f32 %v349_v43, %v346_v60  ;;  %v373_v1 = vadd.f32 %v372_v56, %v369_v61  ;;  %1698 = vtanh.f32 %v275_v55  ;;  %v360_v2 = vstv %s2193_s7  ;;  %s2310_s7 = sld [smem:[#allocation2 + $0x60]] }
  0x66   :  { %v384_v11 = vmul.f32 %v2090_v22, %v383_v4  ;;  %v388_v13 = vmul.f32 %v2114_v39, %v387_v0  ;;  %v392_v16 = vmul.f32 %v2130_v52, %v391_v7  ;;  %v395_v3 = vstv %s2197_s8  ;;  %s2312_s8 = sld [smem:[#allocation2 + $0x6a]] }
  0x67   :  { %v354_v14 = vadd.f32 %v353_v44, %v350_v9  ;;  %v377_v15 = vadd.f32 %v376_v62, %v373_v1  ;;  %1700 = vtanh.f32 %v318_v8  ;;  %v399_v17 = vstv %s2199_s9  ;;  %s2319_s9 = sld [smem:[#allocation2 + $0x74]] }
  0x68   :  { %v407_v18 = vstv %s2205_s10  ;;  %v410_v19 = vstv %s2207_s11  ;;  %v414_v26 = vstv %s2211_s12  ;;  %v418_v27 = vstv %s2213_s13  ;;  %s2321_s10 = sld [smem:[#allocation2 + $0x7e]]  ;;  %s2328_s11 = sld [smem:[#allocation2 + $0x88]] }
  0x69   :  { %v358_v21 = vadd.f32 %v357_v63, %v354_v14  ;;  %v381_v23 = vadd.f32 %v380_v10, %v377_v15  ;;  %v408_v24 = vmul.f32 %v2003_v30, %v407_v18  ;;  %v411_v25 = vmul.f32 %v2009_v35, %v410_v19  ;;  %s2330_s12 = sld [smem:[#allocation2 + $0x92]]  ;;  %s2334_s13 = sld [smem:[#allocation2 + $0x9c]] }
  0x6a   :  { %v422_v28 = vstv %s2218_s14  ;;  %v426_v29 = vstv %s2220_s15  ;;  %v415_v34 = vmul.f32 %v2033_v50, %v414_v26  ;;  %v396_v36 = vmul.f32 %v2150_v5, %v395_v3  ;;  %s2336_s14 = sld [smem:[#allocation2 + $0x39]]  ;;  %s2344_s15 = sld [smem:[#allocation2 + $0x43]] }
  0x6b   :  { %v361_v31 = vadd.f32 %v360_v2, %v358_v21  ;;  %v385_v32 = vadd.f32 %v384_v11, %v381_v23  ;;  %v412_v33 = vadd.f32 %v411_v25, %v408_v24  ;;  %v400_v37 = vmul.f32 %v2175_v20, %v399_v17 }
  0x6c   :  { %v419_v38 = vmul.f32 %v2057_v6, %v418_v27  ;;  %v430_v40 = vstv %s2227_s1  ;;  %v403_v42 = vstv %s2230_s16  ;;  %v423_v44 = vmul.f32 %v2072_v12, %v422_v28  ;;  %s2346_s1 = sld [smem:[#allocation2 + $0x4d]]  ;;  %s2350_s16 = sld [smem:[#allocation2 + $0x57]] }
  0x6d   :  { %v389_v41 = vadd.f32 %v388_v13, %v385_v32  ;;  %v416_v43 = vadd.f32 %v415_v34, %v412_v33  ;;  %1702 = vtanh.f32 %v361_v31  ;;  %v427_v45 = vmul.f32 %v2090_v22, %v426_v29 }
  0x6e   :  { %v431_v46 = vmul.f32 %v2114_v39, %v430_v40  ;;  %v434_v47 = vstv %s2235_s17  ;;  %v438_v51 = vstv %s2237_s18  ;;  %v442_v53 = vstv %s2241_s19  ;;  %s2356_s17 = sld [smem:[#allocation2 + $0x61]]  ;;  %s2358_s18 = sld [smem:[#allocation2 + $0x6b]] }
  0x6f   :  { %v393_v48 = vadd.f32 %v392_v16, %v389_v41  ;;  %v420_v49 = vadd.f32 %v419_v38, %v416_v43  ;;  %v2290_v54 = vpop.eup %1698  ;;  %v435_v55 = vmul.f32 %v2130_v52, %v434_v47  ;;  %v450_v56 = vstv %s2243_s20  ;;  %s2364_s19 = sld [smem:[#allocation2 + $0x75]]  ;;  %s2366_s20 = sld [smem:[#allocation2 + $0x7f]] }
  0x70   :  { %v453_v57 = vstv %s2248_s21  ;;  %v457_v58 = vstv %s2250_s22  ;;  %v451_v61 = vmul.f32 %v2003_v30, %v450_v56  ;;  %v461_v0 = vstv %s2254_s23  ;;  %s2373_s21 = sld [smem:[#allocation2 + $0x89]]  ;;  %s2375_s22 = sld [smem:[#allocation2 + $0x93]] }
  0x71   :  { %v397_v59 = vadd.f32 %v396_v36, %v393_v48  ;;  %v424_v60 = vadd.f32 %v423_v44, %v420_v49  ;;  %v454_v62 = vmul.f32 %v2009_v35, %v453_v57  ;;  %v2304_v63 = vpop.eup %1700  ;;  %v458_v4 = vmul.f32 %v2033_v50, %v457_v58  ;;  %s2379_s23 = sld [smem:[#allocation2 + $0x9d]] }
  0x72   :  { %v465_v7 = vstv %s2260_s24  ;;  %v469_v8 = vstv %s2262_s25  ;;  %v462_v2 = vmul.f32 %v2057_v6, %v461_v0  ;;  %v439_v11 = vmul.f32 %v2150_v5, %v438_v51  ;;  %s2381_s24 = sld [smem:[#allocation2 + $0x3a]]  ;;  %s2387_s25 = sld [smem:[#allocation2 + $0x44]] }
  0x73   :  { %v401_v9 = vadd.f32 %v400_v37, %v397_v59  ;;  %v428_v1 = vadd.f32 %v427_v45, %v424_v60  ;;  %v455_v10 = vadd.f32 %v454_v62, %v451_v61  ;;  %v446_v13 = vstv %s2265_s26  ;;  %s2389_s26 = sld [smem:[#allocation2 + $0x4e]] }
  0x74   :  { %v473_v14 = vstv %s2271_s27  ;;  %v477_v15 = vstv %s2273_s28  ;;  %v443_v3 = vmul.f32 %v2175_v20, %v442_v53  ;;  %v466_v18 = vmul.f32 %v2072_v12, %v465_v7  ;;  %s2393_s27 = sld [smem:[#allocation2 + $0x58]]  ;;  %s2399_s28 = sld [smem:[#allocation2 + $0x62]] }
  0x75   :  { %v432_v16 = vadd.f32 %v431_v46, %v428_v1  ;;  %v459_v17 = vadd.f32 %v458_v4, %v455_v10  ;;  %v404_v19 = vadd.f32 %v403_v42, %v401_v9  ;;  %v470_v21 = vmul.f32 %v2090_v22, %v469_v8 }
  0x76   :  { %v474_v23 = vmul.f32 %v2114_v39, %v473_v14  ;;  %v478_v24 = vmul.f32 %v2130_v52, %v477_v15  ;;  %v481_v27 = vstv %s2280_s29  ;;  %v485_v28 = vstv %s2282_s30  ;;  %s2401_s29 = sld [smem:[#allocation2 + $0x6c]]  ;;  %s2407_s30 = sld [smem:[#allocation2 + $0x76]] }
  0x77   :  { %v436_v25 = vadd.f32 %v435_v55, %v432_v16  ;;  %v463_v26 = vadd.f32 %v462_v2, %v459_v17  ;;  %v2338_v29 = vpop.eup %1702  ;;  %v489_v31 = vstv %s2286_s3  ;;  %v493_v32 = vstv %s2288_s0  ;;  %s2409_s0 = sld [smem:[#allocation2 + $0x80]]  ;;  %s2432_s3 = sld [smem:[#allocation2 + $0x45]] }
  0x78   :  { %v496_v33 = vstv %s2296_s4  ;;  %v500_v34 = vstv %s2298_s5  ;;  %v494_v38 = vmul.f32 %v2003_v30, %v493_v32  ;;  %v504_v42 = vstv %s2302_s6  ;;  %s2420_s4 = sld [smem:[#allocation2 + $0x8a]]  ;;  %s2424_s5 = sld [smem:[#allocation2 + $0x94]] }
  0x79   :  { %v440_v36 = vadd.f32 %v439_v11, %v436_v25  ;;  %v467_v37 = vadd.f32 %v466_v18, %v463_v26  ;;  %v497_v40 = vmul.f32 %v2009_v35, %v496_v33  ;;  %v501_v41 = vmul.f32 %v2033_v50, %v500_v34  ;;  %s2426_s6 = sld [smem:[#allocation2 + $0x3b]] }
  0x7a   :  { %v508_v43 = vstv %s2310_s7  ;;  %v512_v44 = vstv %s2312_s8  ;;  %v505_v48 = vmul.f32 %v2057_v6, %v504_v42  ;;  %1704 = vtanh.f32 %v404_v19  ;;  %s2434_s7 = sld [smem:[#allocation2 + $0x4f]]  ;;  %s2438_s8 = sld [smem:[#allocation2 + $0x59]] }
  0x7b   :  { %v444_v45 = vadd.f32 %v443_v3, %v440_v36  ;;  %v471_v46 = vadd.f32 %v470_v21, %v467_v37  ;;  %v498_v47 = vadd.f32 %v497_v40, %v494_v38  ;;  %v482_v49 = vmul.f32 %v2150_v5, %v481_v27 }
  0x7c   :  { %v516_v51 = vstv %s2319_s9  ;;  %v520_v53 = vstv %s2321_s10  ;;  %v486_v56 = vmul.f32 %v2175_v20, %v485_v28  ;;  %v509_v58 = vmul.f32 %v2072_v12, %v508_v43  ;;  %s2444_s9 = sld [smem:[#allocation2 + $0x63]]  ;;  %s2446_s10 = sld [smem:[#allocation2 + $0x6d]] }
  0x7d   :  { %v475_v55 = vadd.f32 %v474_v23, %v471_v46  ;;  %v502_v57 = vadd.f32 %v501_v41, %v498_v47  ;;  %v447_v59 = vadd.f32 %v446_v13, %v444_v45  ;;  %v513_v60 = vmul.f32 %v2090_v22, %v512_v44 }
  0x7e   :  { %v517_v61 = vmul.f32 %v2114_v39, %v516_v51  ;;  %v521_v62 = vmul.f32 %v2130_v52, %v520_v53  ;;  %v524_v7 = vstv %s2328_s11  ;;  %v528_v8 = vstv %s2330_s12  ;;  %s2449_s11 = sld [smem:[#allocation2 + $0x9e]]  ;;  %s2454_s12 = sld [smem:[#allocation2 + $0x77]] }
  0x7f   :  { %v479_v4 = vadd.f32 %v478_v24, %v475_v55  ;;  %v506_v0 = vadd.f32 %v505_v48, %v502_v57  ;;  %v532_v9 = vstv %s2334_s13  ;;  %v536_v1 = vstv %s2336_s14  ;;  %s2456_s14 = sld [smem:[#allocation2 + $0x81]]  ;;  %s2471_s13 = sld [smem:[#allocation2 + $0x95]] }
  0x80   :  { %v539_v10 = vstv %s2344_s15  ;;  %v543_v2 = vstv %s2346_s1  ;;  %v537_v14 = vmul.f32 %v2003_v30, %v536_v1  ;;  %v547_v3 = vstv %s2350_s16  ;;  %s2467_s15 = sld [smem:[#allocation2 + $0x8b]]  ;;  %s2473_s1 = sld [smem:[#allocation2 + $0xa0]] }
  0x81   :  { %v483_v11 = vadd.f32 %v482_v49, %v479_v4  ;;  %v510_v13 = vadd.f32 %v509_v58, %v506_v0  ;;  %v540_v15 = vmul.f32 %v2009_v35, %v539_v10  ;;  %v544_v16 = vmul.f32 %v2033_v50, %v543_v2  ;;  %s2478_s16 = sld [smem:[#allocation2 + $0xaa]] }
  0x82   :  { %v551_v17 = vstv %s2356_s17  ;;  %v555_v18 = vstv %s2358_s18  ;;  %v548_v24 = vmul.f32 %v2057_v6, %v547_v3  ;;  %1706 = vtanh.f32 %v447_v59  ;;  %s2480_s17 = sld [smem:[#allocation2 + $0xb4]]  ;;  %s2484_s18 = sld [smem:[#allocation2 + $0xbe]] }
  0x83   :  { %v487_v19 = vadd.f32 %v486_v56, %v483_v11  ;;  %v514_v21 = vadd.f32 %v513_v60, %v510_v13  ;;  %v541_v23 = vadd.f32 %v540_v15, %v537_v14  ;;  %v525_v25 = vmul.f32 %v2150_v5, %v524_v7 }
  0x84   :  { %v559_v26 = vstv %s2364_s19  ;;  %v563_v27 = vstv %s2366_s20  ;;  %v529_v32 = vmul.f32 %v2175_v20, %v528_v8  ;;  %v552_v34 = vmul.f32 %v2072_v12, %v551_v17  ;;  %v2413_v36 = vpop.eup %1704  ;;  %s2490_s19 = sld [smem:[#allocation2 + $0xc8]]  ;;  %s2492_s20 = sld [smem:[#allocation2 + $0xd2]] }
  0x85   :  { %v518_v28 = vadd.f32 %v517_v61, %v514_v21  ;;  %v545_v33 = vadd.f32 %v544_v16, %v541_v23  ;;  %v490_v37 = vadd.f32 %v489_v31, %v487_v19  ;;  %v556_v38 = vmul.f32 %v2090_v22, %v555_v18 }
  0x86   :  { %v560_v40 = vmul.f32 %v2114_v39, %v559_v26  ;;  %v564_v41 = vmul.f32 %v2130_v52, %v563_v27  ;;  %v567_v44 = vstv %s2373_s21  ;;  %v571_v45 = vstv %s2375_s22  ;;  %s2499_s21 = sld [smem:[#allocation2 + $0x9f]]  ;;  %s2501_s22 = sld [smem:[#allocation2 + $0xdc]] }
  0x87   :  { %v522_v42 = vadd.f32 %v521_v62, %v518_v28  ;;  %v549_v43 = vadd.f32 %v548_v24, %v545_v33  ;;  %v575_v31 = vstv %s2379_s23  ;;  %v579_v46 = vstv %s2381_s24  ;;  %s2512_s23 = sld [smem:[#allocation2 + $0xe6]]  ;;  %s2514_s24 = sld [smem:[#allocation2 + $0xa1]] }
  0x88   :  { %v582_v47 = vstv %s2387_s25  ;;  %v586_v48 = vstv %s2389_s26  ;;  %v580_v53 = vmul.f32 %v2003_v30, %v579_v46  ;;  %v590_v57 = vstv %s2393_s27  ;;  %s2517_s25 = sld [smem:[#allocation2 + $0xab]]  ;;  %s2519_s26 = sld [smem:[#allocation2 + $0xb5]] }
  0x89   :  { %v526_v49 = vadd.f32 %v525_v25, %v522_v42  ;;  %v553_v51 = vadd.f32 %v552_v34, %v549_v43  ;;  %v583_v55 = vmul.f32 %v2009_v35, %v582_v47  ;;  %v587_v56 = vmul.f32 %v2033_v50, %v586_v48  ;;  %s2525_s27 = sld [smem:[#allocation2 + $0xbf]] }
  0x8a   :  { %v594_v58 = vstv %s2399_s28  ;;  %v598_v59 = vstv %s2401_s29  ;;  %v591_v4 = vmul.f32 %v2057_v6, %v590_v57  ;;  %1708 = vtanh.f32 %v490_v37  ;;  %s2527_s28 = sld [smem:[#allocation2 + $0xc9]]  ;;  %s2531_s29 = sld [smem:[#allocation2 + $0xf0]] }
  0x8b   :  { %v530_v60 = vadd.f32 %v529_v32, %v526_v49  ;;  %v557_v61 = vadd.f32 %v556_v38, %v553_v51  ;;  %v584_v62 = vadd.f32 %v583_v55, %v580_v53  ;;  %v568_v0 = vmul.f32 %v2150_v5, %v567_v44 }
  0x8c   :  { %v602_v7 = vstv %s2407_s30  ;;  %v606_v8 = vstv %s2409_s0  ;;  %v595_v11 = vmul.f32 %v2072_v12, %v594_v58  ;;  %v2461_v13 = vpop.eup %1706  ;;  %v572_v14 = vmul.f32 %v2175_v20, %v571_v45  ;;  %s2533_s30 = sld [smem:[#allocation2 + $0xfa]]  ;;  %s2541_s0 = sld [smem:[#allocation2 + $0x104]] }
  0x8d   :  { %v533_v1 = vadd.f32 %v532_v9, %v530_v60  ;;  %v561_v10 = vadd.f32 %v560_v40, %v557_v61  ;;  %v588_v2 = vadd.f32 %v587_v56, %v584_v62  ;;  %v599_v15 = vmul.f32 %v2090_v22, %v598_v59 }
  0x8e   :  { %v603_v16 = vmul.f32 %v2114_v39, %v602_v7  ;;  %v607_v3 = vmul.f32 %v2130_v52, %v606_v8  ;;  %v610_v18 = vstv %s2420_s4  ;;  %v614_v19 = vstv %s2424_s5  ;;  %s2543_s4 = sld [smem:[#allocation2 + $0xd3]]  ;;  %s2550_s5 = sld [smem:[#allocation2 + $0xdd]] }
  0x8f   :  { %v565_v9 = vadd.f32 %v564_v41, %v561_v10  ;;  %v592_v17 = vadd.f32 %v591_v4, %v588_v2  ;;  %1710 = vtanh.f32 %v533_v1  ;;  %v622_v21 = vstv %s2426_s6  ;;  %s2552_s6 = sld [smem:[#allocation2 + $0xe7]] }
  0x90   :  { %v625_v23 = vstv %s2432_s3  ;;  %v629_v24 = vstv %s2434_s7  ;;  %v623_v27 = vmul.f32 %v2003_v30, %v622_v21  ;;  %v633_v33 = vstv %s2438_s8  ;;  %s2555_s3 = sld [smem:[#allocation2 + $0xf1]]  ;;  %s2557_s7 = sld [smem:[#allocation2 + $0xfb]] }
  0x91   :  { %v569_v25 = vadd.f32 %v568_v0, %v565_v9  ;;  %v596_v26 = vadd.f32 %v595_v11, %v592_v17  ;;  %v626_v28 = vmul.f32 %v2009_v35, %v625_v23  ;;  %v630_v32 = vmul.f32 %v2033_v50, %v629_v24  ;;  %s2563_s8 = sld [smem:[#allocation2 + $0xa2]] }
  0x92   :  { %v637_v34 = vstv %s2444_s9  ;;  %v641_v37 = vstv %s2446_s10  ;;  %v634_v30 = vmul.f32 %v2057_v6, %v633_v33  ;;  %v611_v42 = vmul.f32 %v2150_v5, %v610_v18  ;;  %s2565_s9 = sld [smem:[#allocation2 + $0xac]]  ;;  %s2572_s10 = sld [smem:[#allocation2 + $0xb6]] }
  0x93   :  { %v573_v38 = vadd.f32 %v572_v14, %v569_v25  ;;  %v600_v40 = vadd.f32 %v599_v15, %v596_v26  ;;  %v627_v41 = vadd.f32 %v626_v28, %v623_v27  ;;  %v618_v35 = vstv %s2449_s11  ;;  %s2574_s11 = sld [smem:[#allocation2 + $0xc0]] }
  0x94   :  { %v645_v43 = vstv %s2454_s12  ;;  %v649_v44 = vstv %s2456_s14  ;;  %v638_v47 = vmul.f32 %v2072_v12, %v637_v34  ;;  %v2506_v6 = vpop.eup %1708  ;;  %v615_v48 = vmul.f32 %v2175_v20, %v614_v19  ;;  %s2580_s12 = sld [smem:[#allocation2 + $0xca]]  ;;  %s2586_s14 = sld [smem:[#allocation2 + $0x105]] }
  0x95   :  { %v576_v50 = vadd.f32 %v575_v31, %v573_v38  ;;  %v604_v45 = vadd.f32 %v603_v16, %v600_v40  ;;  %v631_v46 = vadd.f32 %v630_v32, %v627_v41  ;;  %v642_v49 = vmul.f32 %v2090_v22, %v641_v37 }
  0x96   :  { %v646_v51 = vmul.f32 %v2114_v39, %v645_v43  ;;  %v650_v53 = vmul.f32 %v2130_v52, %v649_v44  ;;  %v653_v12 = vstv %s2467_s15  ;;  %v657_v56 = vstv %s2471_s13  ;;  %s2588_s15 = sld [smem:[#allocation2 + $0xd4]]  ;;  %s2591_s13 = sld [smem:[#allocation2 + $0xde]] }
  0x97   :  { %1712 = vtanh.f32 %v576_v50  ;;  %v608_v31 = vadd.f32 %v607_v3, %v604_v45  ;;  %v635_v55 = vadd.f32 %v634_v30, %v631_v46  ;;  %v665_v22 = vstv %s2473_s1  ;;  %s2593_s1 = sld [smem:[#allocation2 + $0xe8]] }
  0x98   :  { %v668_v39 = vstv %s2478_s16  ;;  %v672_v57 = vstv %s2480_s17  ;;  %v666_v59 = vmul.f32 %v2290_v54, %v665_v22  ;;  %v676_v4 = vstv %s2484_s18  ;;  %s2600_s16 = sld [smem:[#allocation2 + $0xf2]]  ;;  %s2606_s17 = sld [smem:[#allocation2 + $0xa3]] }
  0x99   :  { %v612_v52 = vadd.f32 %v611_v42, %v608_v31  ;;  %v639_v58 = vadd.f32 %v638_v47, %v635_v55  ;;  %v669_v60 = vmul.f32 %v2304_v63, %v668_v39  ;;  %v2535_v61 = vpop.eup %1710  ;;  %v673_v62 = vmul.f32 %v2338_v29, %v672_v57  ;;  %s2608_s18 = sld [smem:[#allocation2 + $0xad]] }
  0x9a   :  { %v680_v0 = vstv %s2490_s19  ;;  %v684_v7 = vstv %s2492_s20  ;;  %v677_v2 = vmul.f32 %v2413_v36, %v676_v4  ;;  %v654_v11 = vmul.f32 %v2150_v5, %v653_v12  ;;  %s2612_s19 = sld [smem:[#allocation2 + $0xb7]]  ;;  %s2618_s20 = sld [smem:[#allocation2 + $0xc1]] }
  0x9b   :  { %v616_v8 = vadd.f32 %v615_v48, %v612_v52  ;;  %v643_v1 = vadd.f32 %v642_v49, %v639_v58  ;;  %v670_v10 = vadd.f32 %v669_v60, %v666_v59  ;;  %v658_v14 = vmul.f32 %v2175_v20, %v657_v56 }
  0x9c   :  { %v661_v15 = vstv %s2499_s21  ;;  %v688_v16 = vstv %s2501_s22  ;;  %v681_v18 = vmul.f32 %v2461_v13, %v680_v0  ;;  %v685_v5 = vmul.f32 %v2506_v6, %v684_v7  ;;  %s2620_s21 = sld [smem:[#allocation2 + $0xcb]]  ;;  %s2626_s22 = sld [smem:[#allocation2 + $0xfc]] }
  0x9d   :  { %v619_v3 = vadd.f32 %v618_v35, %v616_v8  ;;  %v647_v9 = vadd.f32 %v646_v51, %v643_v1  ;;  %v674_v17 = vadd.f32 %v673_v62, %v670_v10  ;;  %v689_v20 = vmul.f32 %v2535_v61, %v688_v16 }
  0x9e   :  { %v692_v19 = vstv %s2512_s23  ;;  %v708_v21 = vstv %s2514_s24  ;;  %v711_v26 = vstv %s2517_s25  ;;  %v715_v27 = vstv %s2519_s26  ;;  %s2631_s23 = sld [smem:[#allocation2 + $0xd5]]  ;;  %s2636_s24 = sld [smem:[#allocation2 + $0xdf]] }
  0x9f   :  { %1714 = vtanh.f32 %v619_v3  ;;  %v651_v23 = vadd.f32 %v650_v53, %v647_v9  ;;  %v678_v24 = vadd.f32 %v677_v2, %v674_v17  ;;  %v709_v25 = vmul.f32 %v2290_v54, %v708_v21  ;;  %s2638_s25 = sld [smem:[#allocation2 + $0xe9]]  ;;  %s2645_s26 = sld [smem:[#allocation2 + $0x106]] }
  0xa0   :  { %v719_v28 = vstv %s2525_s27  ;;  %v723_v32 = vstv %s2527_s28  ;;  %v712_v38 = vmul.f32 %v2304_v63, %v711_v26  ;;  %v716_v40 = vmul.f32 %v2338_v29, %v715_v27  ;;  %s2647_s27 = sld [smem:[#allocation2 + $0xf3]]  ;;  %s2655_s28 = sld [smem:[#allocation2 + $0xa4]] }
  0xa1   :  { %v2576_v33 = vpop.eup %1712  ;;  %v655_v34 = vadd.f32 %v654_v11, %v651_v23  ;;  %v682_v37 = vadd.f32 %v681_v18, %v678_v24  ;;  %v696_v41 = vstv %s2531_s29  ;;  %v700_v30 = vstv %s2533_s30  ;;  %s2660_s29 = sld [smem:[#allocation2 + $0xfd]]  ;;  %s2692_s30 = sld [smem:[#allocation2 + $0xe0]] }
  0xa2   :  { %v704_v42 = vstv %s2541_s0  ;;  %v727_v35 = vstv %s2543_s4  ;;  %v713_v50 = vadd.f32 %v712_v38, %v709_v25  ;;  %v720_v45 = vmul.f32 %v2413_v36, %v719_v28  ;;  %s2662_s4 = sld [smem:[#allocation2 + $0x107]]  ;;  %s2718_s0 = sld [smem:[#allocation2 + $0xb9]] }
  0xa3   :  { %v659_v43 = vadd.f32 %v658_v14, %v655_v34  ;;  %v686_v44 = vadd.f32 %v685_v5, %v682_v37  ;;  %v693_v46 = vmul.f32 %v2576_v33, %v692_v19  ;;  %v724_v47 = vmul.f32 %v2461_v13, %v723_v32 }
  0xa4   :  { %v728_v48 = vmul.f32 %v2506_v6, %v727_v35  ;;  %v731_v49 = vstv %s2550_s5  ;;  %v717_v31 = vadd.f32 %v716_v40, %v713_v50  ;;  %v735_v55 = vstv %s2552_s6  ;;  %s2668_s5 = sld [smem:[#allocation2 + $0xae]]  ;;  %s2670_s6 = sld [smem:[#allocation2 + $0xb8]] }
  0xa5   :  { %v662_v51 = vadd.f32 %v661_v15, %v659_v43  ;;  %v690_v53 = vadd.f32 %v689_v20, %v686_v44  ;;  %v739_v12 = vstv %s2555_s3  ;;  %v743_v56 = vstv %s2557_s7  ;;  %s2679_s3 = sld [smem:[#allocation2 + $0xc2]] }
  0xa6   :  { %v751_v22 = vstv %s2563_s8  ;;  %v754_v39 = vstv %s2565_s9  ;;  %v721_v57 = vadd.f32 %v720_v45, %v717_v31  ;;  %v732_v52 = vmul.f32 %v2535_v61, %v731_v49  ;;  %s2684_s8 = sld [smem:[#allocation2 + $0xcc]]  ;;  %s2686_s9 = sld [smem:[#allocation2 + $0xd6]] }
  0xa7   :  { %1716 = vtanh.f32 %v662_v51  ;;  %v752_v58 = vmul.f32 %v2290_v54, %v751_v22  ;;  %v736_v59 = vmul.f32 %v2576_v33, %v735_v55  ;;  %v755_v60 = vmul.f32 %v2304_v63, %v754_v39  ;;  %s2694_s7 = sld [smem:[#allocation2 + $0xea]] }
  0xa8   :  { %v758_v62 = vstv %s2572_s10  ;;  %v762_v4 = vstv %s2574_s11  ;;  %v694_v7 = vadd.f32 %v693_v46, %v690_v53  ;;  %v725_v8 = vadd.f32 %v724_v47, %v721_v57  ;;  %s2699_s10 = sld [smem:[#allocation2 + $0xf4]]  ;;  %s2706_s11 = sld [smem:[#allocation2 + $0xfe]] }
  0xa9   :  { %v2622_v0 = vpop.eup %1714  ;;  %v759_v1 = vmul.f32 %v2338_v29, %v758_v62  ;;  %v766_v10 = vstv %s2580_s12  ;;  %v756_v11 = vadd.f32 %v755_v60, %v752_v58  ;;  %v763_v14 = vmul.f32 %v2413_v36, %v762_v4  ;;  %s2711_s12 = sld [smem:[#allocation2 + $0xa5]] }
  0xaa   :  { %v697_v2 = vmul.f32 %v2622_v0, %v696_v41  ;;  %v770_v15 = vstv %s2588_s15  ;;  %v729_v16 = vadd.f32 %v728_v48, %v725_v8  ;;  %v747_v3 = vstv %s2586_s14  ;;  %s2713_s15 = sld [smem:[#allocation2 + $0xaf]]  ;;  %s2723_s14 = sld [smem:[#allocation2 + $0xc3]] }
  0xab   :  { %v774_v9 = vstv %s2591_s13  ;;  %v778_v17 = vstv %s2593_s1  ;;  %v740_v18 = vmul.f32 %v2622_v0, %v739_v12  ;;  %v760_v5 = vadd.f32 %v759_v1, %v756_v11  ;;  %s2725_s13 = sld [smem:[#allocation2 + $0xcd]]  ;;  %s2729_s1 = sld [smem:[#allocation2 + $0xd7]] }
  0xac   :  { %v767_v20 = vmul.f32 %v2461_v13, %v766_v10  ;;  %v771_v19 = vmul.f32 %v2506_v6, %v770_v15  ;;  %v698_v21 = vadd.f32 %v697_v2, %v694_v7  ;;  %v733_v23 = vadd.f32 %v732_v52, %v729_v16 }
  0xad   :  { %v775_v24 = vmul.f32 %v2535_v61, %v774_v9  ;;  %v779_v25 = vmul.f32 %v2576_v33, %v778_v17  ;;  %v764_v26 = vadd.f32 %v763_v14, %v760_v5  ;;  %v782_v27 = vstv %s2600_s16  ;;  %s2733_s16 = sld [smem:[#allocation2 + $0xe1]] }
  0xae   :  { %v794_v28 = vstv %s2606_s17  ;;  %v797_v32 = vstv %s2608_s18  ;;  %v737_v34 = vadd.f32 %v736_v59, %v733_v23  ;;  %v801_v40 = vstv %s2612_s19  ;;  %s2735_s17 = sld [smem:[#allocation2 + $0xeb]]  ;;  %s2739_s18 = sld [smem:[#allocation2 + $0x108]] }
  0xaf   :  { %v795_v37 = vmul.f32 %v2290_v54, %v794_v28  ;;  %v798_v38 = vmul.f32 %v2304_v63, %v797_v32  ;;  %v768_v41 = vadd.f32 %v767_v20, %v764_v26  ;;  %v802_v35 = vmul.f32 %v2338_v29, %v801_v40  ;;  %s2744_s19 = sld [smem:[#allocation2 + $0xf5]] }
  0xb0   :  { %v805_v43 = vstv %s2618_s20  ;;  %v809_v44 = vstv %s2620_s21  ;;  %v741_v45 = vadd.f32 %v740_v18, %v737_v34  ;;  %v786_v46 = vstv %s2626_s22  ;;  %s2748_s20 = sld [smem:[#allocation2 + $0xff]]  ;;  %s2750_s21 = sld [smem:[#allocation2 + $0xa6]] }
  0xb1   :  { %v2664_v50 = vpop.eup %1716  ;;  %v799_v47 = vadd.f32 %v798_v38, %v795_v37  ;;  %v806_v48 = vmul.f32 %v2413_v36, %v805_v43  ;;  %v772_v53 = vadd.f32 %v771_v19, %v768_v41  ;;  %v810_v31 = vmul.f32 %v2461_v13, %v809_v44  ;;  %s2755_s22 = sld [smem:[#allocation2 + $0xb0]] }
  0xb2   :  { %v701_v49 = vmul.f32 %v2664_v50, %v700_v30  ;;  %v744_v51 = vmul.f32 %v2664_v50, %v743_v56  ;;  %v813_v12 = vstv %s2631_s23  ;;  %v817_v22 = vstv %s2636_s24  ;;  %s2757_s23 = sld [smem:[#allocation2 + $0xba]]  ;;  %s2765_s24 = sld [smem:[#allocation2 + $0xc4]] }
  0xb3   :  { %v803_v55 = vadd.f32 %v802_v35, %v799_v47  ;;  %v821_v39 = vstv %s2638_s25  ;;  %v776_v52 = vadd.f32 %v775_v24, %v772_v53  ;;  %v783_v56 = vmul.f32 %v2622_v0, %v782_v27  ;;  %s2767_s25 = sld [smem:[#allocation2 + $0xce]] }
  0xb4   :  { %v702_v57 = vadd.f32 %v701_v49, %v698_v21  ;;  %v745_v30 = vadd.f32 %v744_v51, %v741_v45  ;;  %v790_v58 = vstv %s2645_s26  ;;  %v814_v60 = vmul.f32 %v2506_v6, %v813_v12  ;;  %s2771_s26 = sld [smem:[#allocation2 + $0xd8]] }
  0xb5   :  { %v807_v59 = vadd.f32 %v806_v48, %v803_v55  ;;  %v825_v62 = vstv %s2647_s27  ;;  %v780_v4 = vadd.f32 %v779_v25, %v776_v52  ;;  %v787_v7 = vmul.f32 %v2664_v50, %v786_v46  ;;  %s2776_s27 = sld [smem:[#allocation2 + $0xe2]] }
  0xb6   :  { %v818_v8 = vmul.f32 %v2535_v61, %v817_v22  ;;  %v822_v1 = vmul.f32 %v2576_v33, %v821_v39  ;;  %v705_v10 = vadd.f32 %v704_v42, %v702_v57  ;;  %v748_v2 = vadd.f32 %v747_v3, %v745_v30 }
  0xb7   :  { %v811_v11 = vadd.f32 %v810_v31, %v807_v59  ;;  %v837_v14 = vstv %s2655_s28  ;;  %v784_v15 = vadd.f32 %v783_v56, %v780_v4  ;;  %v826_v16 = vmul.f32 %v2622_v0, %v825_v62  ;;  %s2778_s28 = sld [smem:[#allocation2 + $0xec]] }
  0xb8   :  { %v829_v9 = vstv %s2660_s29  ;;  %v838_v17 = vmul.f32 %v2290_v54, %v837_v14  ;;  %v833_v18 = vstv %s2662_s4  ;;  %v840_v3 = vstv %s2668_s5  ;;  %s2785_s29 = sld [smem:[#allocation2 + $0x109]]  ;;  %s2789_s4 = sld [smem:[#allocation2 + $0xf6]] }
  0xb9   :  { %v815_v42 = vadd.f32 %v814_v60, %v811_v11  ;;  %v844_v5 = vstv %s2670_s6  ;;  %v788_v20 = vadd.f32 %v787_v7, %v784_v15  ;;  %v841_v19 = vmul.f32 %v2304_v63, %v840_v3  ;;  %s2791_s5 = sld [smem:[#allocation2 + $0x100]]  ;;  %s2798_s6 = sld [smem:[#allocation2 + $0x10a]] }
  0xba   :  { %v845_v21 = vmul.f32 %v2338_v29, %v844_v5  ;;  %v848_v23 = vstv %s2679_s3  ;;  %1718 = vtanh.f32 %v705_v10  ;;  %v852_v25 = vstv %s2684_s8  ;;  %s2800_s3 = sld [smem:[#allocation2 + $0xa7]]  ;;  %s2805_s8 = sld [smem:[#allocation2 + $0xb1]] }
  0xbb   :  { %v819_v24 = vadd.f32 %v818_v8, %v815_v42  ;;  %v856_v26 = vstv %s2686_s9  ;;  %v791_v27 = vadd.f32 %v790_v58, %v788_v20  ;;  %v830_v28 = vmul.f32 %v2664_v50, %v829_v9  ;;  %s2807_s9 = sld [smem:[#allocation2 + $0xbb]] }
  0xbc   :  { %v842_v32 = vadd.f32 %v841_v19, %v838_v17  ;;  %v849_v34 = vmul.f32 %v2413_v36, %v848_v23  ;;  %1720 = vtanh.f32 %v748_v2  ;;  %v860_v38 = vstv %s2692_s30  ;;  %s2814_s30 = sld [smem:[#allocation2 + $0xc5]] }
  0xbd   :  { %v823_v37 = vadd.f32 %v822_v1, %v819_v24  ;;  %v864_v40 = vstv %s2694_s7  ;;  %v853_v35 = vmul.f32 %v2461_v13, %v852_v25  ;;  %v857_v43 = vmul.f32 %v2506_v6, %v856_v26  ;;  %s2819_s7 = sld [smem:[#allocation2 + $0xcf]] }
  0xbe   :  { %v846_v41 = vadd.f32 %v845_v21, %v842_v32  ;;  %v868_v44 = vstv %s2699_s10  ;;  %1722 = vtanh.f32 %v791_v27  ;;  %v861_v46 = vmul.f32 %v2535_v61, %v860_v38  ;;  %s2821_s10 = sld [smem:[#allocation2 + $0xd9]] }
  0xbf   :  { %v827_v45 = vadd.f32 %v826_v16, %v823_v37  ;;  %v865_v47 = vmul.f32 %v2576_v33, %v864_v40  ;;  %v872_v49 = vstv %s2706_s11  ;;  %v880_v51 = vstv %s2711_s12  ;;  %s2828_s11 = sld [smem:[#allocation2 + $0xe3]]  ;;  %s2830_s12 = sld [smem:[#allocation2 + $0xed]] }
  0xc0   :  { %v850_v48 = vadd.f32 %v849_v34, %v846_v41  ;;  %v883_v53 = vstv %s2713_s15  ;;  %v881_v55 = vmul.f32 %v2290_v54, %v880_v51  ;;  %v887_v22 = vstv %s2718_s0  ;;  %s2837_s15 = sld [smem:[#allocation2 + $0xf7]]  ;;  %s2839_s0 = sld [smem:[#allocation2 + $0x101]] }
  0xc1   :  { %v831_v31 = vadd.f32 %v830_v28, %v827_v45  ;;  %v884_v12 = vmul.f32 %v2304_v63, %v883_v53  ;;  %v888_v57 = vmul.f32 %v2338_v29, %v887_v22  ;;  %v891_v30 = vstv %s2723_s14  ;;  %s2843_s14 = sld [smem:[#allocation2 + $0x10b]] }
  0xc2   :  { %v854_v39 = vadd.f32 %v853_v35, %v850_v48  ;;  %v895_v52 = vstv %s2725_s13  ;;  %v869_v58 = vmul.f32 %v2622_v0, %v868_v44  ;;  %v892_v60 = vmul.f32 %v2413_v36, %v891_v30  ;;  %s2845_s13 = sld [smem:[#allocation2 + $0xa8]] }
  0xc3   :  { %v834_v56 = vadd.f32 %v833_v18, %v831_v31  ;;  %v885_v59 = vadd.f32 %v884_v12, %v881_v55  ;;  %v899_v4 = vstv %s2729_s1  ;;  %v903_v7 = vstv %s2733_s16  ;;  %s2853_s1 = sld [smem:[#allocation2 + $0xb2]]  ;;  %s2855_s16 = sld [smem:[#allocation2 + $0xbc]] }
  0xc4   :  { %v858_v62 = vadd.f32 %v857_v43, %v854_v39  ;;  %v907_v8 = vstv %s2735_s17  ;;  %v2780_v1 = vpop.eup %1718  ;;  %v873_v10 = vmul.f32 %v2664_v50, %v872_v49  ;;  %v876_v2 = vstv %s2739_s18  ;;  %s2859_s17 = sld [smem:[#allocation2 + $0xc6]]  ;;  %s2865_s18 = sld [smem:[#allocation2 + $0xd0]] }
  0xc5   :  { %v889_v11 = vadd.f32 %v888_v57, %v885_v59  ;;  %v896_v14 = vmul.f32 %v2461_v13, %v895_v52  ;;  %1724 = vtanh.f32 %v834_v56  ;;  %v900_v16 = vmul.f32 %v2506_v6, %v899_v4 }
  0xc6   :  { %v862_v15 = vadd.f32 %v861_v46, %v858_v62  ;;  %v904_v9 = vmul.f32 %v2535_v61, %v903_v7  ;;  %v2793_v17 = vpop.eup %1720  ;;  %v908_v18 = vmul.f32 %v2576_v33, %v907_v8  ;;  %v911_v3 = vstv %s2744_s19  ;;  %s2867_s19 = sld [smem:[#allocation2 + $0xda]] }
  0xc7   :  { %v893_v42 = vadd.f32 %v892_v60, %v889_v11  ;;  %v915_v5 = vstv %s2748_s20  ;;  %v923_v19 = vstv %s2750_s21  ;;  %v926_v21 = vstv %s2755_s22  ;;  %s2874_s20 = sld [smem:[#allocation2 + $0xe4]]  ;;  %s2876_s21 = sld [smem:[#allocation2 + $0xee]] }
  0xc8   :  { %v866_v20 = vadd.f32 %v865_v47, %v862_v15  ;;  %v930_v23 = vstv %s2757_s23  ;;  %v2809_v24 = vpop.eup %1722  ;;  %v924_v26 = vmul.f32 %v2290_v54, %v923_v19  ;;  %v927_v27 = vmul.f32 %v2304_v63, %v926_v21  ;;  %s2882_s22 = sld [smem:[#allocation2 + $0xf8]]  ;;  %s2886_s23 = sld [smem:[#allocation2 + $0x102]] }
  0xc9   :  { %v897_v25 = vadd.f32 %v896_v14, %v893_v42  ;;  %v931_v28 = vmul.f32 %v2338_v29, %v930_v23  ;;  %v912_v34 = vmul.f32 %v2622_v0, %v911_v3  ;;  %v934_v37 = vstv %s2765_s24  ;;  %s2888_s24 = sld [smem:[#allocation2 + $0xa9]] }
  0xca   :  { %v870_v32 = vadd.f32 %v869_v58, %v866_v20  ;;  %v938_v38 = vstv %s2767_s25  ;;  %v928_v41 = vadd.f32 %v927_v27, %v924_v26  ;;  %v935_v35 = vmul.f32 %v2413_v36, %v934_v37  ;;  %s2894_s25 = sld [smem:[#allocation2 + $0xb3]] }
  0xcb   :  { %v901_v40 = vadd.f32 %v900_v16, %v897_v25  ;;  %v942_v43 = vstv %s2771_s26  ;;  %v916_v45 = vmul.f32 %v2664_v50, %v915_v5  ;;  %v946_v46 = vstv %s2776_s27  ;;  %s2896_s26 = sld [smem:[#allocation2 + $0xbd]]  ;;  %s2900_s27 = sld [smem:[#allocation2 + $0xc7]] }
  0xcc   :  { %v874_v44 = vadd.f32 %v873_v10, %v870_v32  ;;  %v950_v47 = vstv %s2778_s28  ;;  %v919_v49 = vstv %s2785_s29  ;;  %v932_v51 = vadd.f32 %v931_v28, %v928_v41  ;;  %s2906_s28 = sld [smem:[#allocation2 + $0xd1]]  ;;  %s2908_s29 = sld [smem:[#allocation2 + $0xdb]] }
  0xcd   :  { %v905_v48 = vadd.f32 %v904_v9, %v901_v40  ;;  %v939_v53 = vmul.f32 %v2461_v13, %v938_v38  ;;  %v943_v55 = vmul.f32 %v2506_v6, %v942_v43  ;;  %v947_v12 = vmul.f32 %v2535_v61, %v946_v46 }
  0xce   :  { %v877_v31 = vadd.f32 %v876_v2, %v874_v44  ;;  %v951_v22 = vmul.f32 %v2576_v33, %v950_v47  ;;  %v936_v57 = vadd.f32 %v935_v35, %v932_v51  ;;  %v954_v30 = vstv %s2789_s4  ;;  %s2911_s4 = sld [smem:[#allocation2 + $0x10c]] }
  0xcf   :  { %v909_v39 = vadd.f32 %v908_v18, %v905_v48  ;;  %v958_v52 = vstv %s2791_s5  ;;  %v2847_v56 = vpop.eup %1724  ;;  %v962_v58 = vstv %s2798_s6  ;;  %v966_v59 = vstv %s2800_s3  ;;  %s2916_s5 = sld [smem:[#allocation2 + $0xe5]]  ;;  %s2918_s3 = sld [smem:[#allocation2 + $0xef]] }
  0xd0   :  { %v969_v60 = vstv %s2805_s8  ;;  %v973_v62 = vstv %s2807_s9  ;;  %v940_v7 = vadd.f32 %v939_v53, %v936_v57  ;;  %v967_v8 = vmul.f32 %v2290_v54, %v966_v59  ;;  %s2927_s8 = sld [smem:[#allocation2 + $0xf9]]  ;;  %s2933_s6 = sld [smem:[#allocation2 + $0x103]] }
  0xd1   :  { %v913_v4 = vadd.f32 %v912_v34, %v909_v39  ;;  %v970_v10 = vmul.f32 %v2304_v63, %v969_v60  ;;  %v974_v2 = vmul.f32 %v2338_v29, %v973_v62  ;;  %v977_v11 = vstv %s2814_s30  ;;  %s2935_s9 = sld [smem:[#allocation2 + $0x10e]]  ;;  %s2940_s30 = sld [smem:[#allocation2 + $0x112]] }
  0xd2   :  { %v981_v14 = vstv %s2819_s7  ;;  %v985_v15 = vstv %s2821_s10  ;;  %v944_v9 = vadd.f32 %v943_v55, %v940_v7  ;;  %v978_v18 = vmul.f32 %v2413_v36, %v977_v11  ;;  %s2942_s7 = sld [smem:[#allocation2 + $0x116]]  ;;  %s2946_s10 = sld [smem:[#allocation2 + $0x11a]] }
  0xd3   :  { %v917_v16 = vadd.f32 %v916_v45, %v913_v4  ;;  %v971_v42 = vadd.f32 %v970_v10, %v967_v8  ;;  %v955_v3 = vmul.f32 %v2622_v0, %v954_v30  ;;  %v959_v5 = vmul.f32 %v2664_v50, %v958_v52 }
  0xd4   :  { %v989_v20 = vstv %s2828_s11  ;;  %v993_v19 = vstv %s2830_s12  ;;  %1726 = vtanh.f32 %v877_v31  ;;  %v948_v21 = vadd.f32 %v947_v12, %v944_v9  ;;  %s2952_s11 = sld [smem:[#allocation2 + $0x11e]]  ;;  %s2954_s12 = sld [smem:[#allocation2 + $0x122]] }
  0xd5   :  { %v975_v23 = vadd.f32 %v974_v2, %v971_v42  ;;  %v982_v25 = vmul.f32 %v2461_v13, %v981_v14  ;;  %v920_v26 = vadd.f32 %v919_v49, %v917_v16  ;;  %v986_v27 = vmul.f32 %v2506_v6, %v985_v15 }
  0xd6   :  { %v990_v28 = vmul.f32 %v2535_v61, %v989_v20  ;;  %v994_v32 = vmul.f32 %v2576_v33, %v993_v19  ;;  %v952_v34 = vadd.f32 %v951_v22, %v948_v21  ;;  %v997_v38 = vstv %s2837_s15  ;;  %s2961_s15 = sld [smem:[#allocation2 + $0x126]] }
  0xd7   :  { %v979_v37 = vadd.f32 %v978_v18, %v975_v23  ;;  %v1001_v40 = vstv %s2839_s0  ;;  %v1005_v41 = vstv %s2843_s14  ;;  %v1009_v35 = vstv %s2845_s13  ;;  %s2972_s0 = sld [smem:[#allocation2 + $0x12a]]  ;;  %s2974_s14 = sld [smem:[#allocation2 + $0x10f]] }
  0xd8   :  { %v1012_v43 = vstv %s2853_s1  ;;  %v1016_v44 = vstv %s2855_s16  ;;  %v956_v45 = vadd.f32 %v955_v3, %v952_v34  ;;  %v1010_v47 = vmul.f32 %v2290_v54, %v1009_v35  ;;  %s2977_s13 = sld [smem:[#allocation2 + $0x113]]  ;;  %s2979_s1 = sld [smem:[#allocation2 + $0x117]] }
  0xd9   :  { %v983_v46 = vadd.f32 %v982_v25, %v979_v37  ;;  %v1013_v48 = vmul.f32 %v2304_v63, %v1012_v43  ;;  %v1017_v49 = vmul.f32 %v2338_v29, %v1016_v44  ;;  %v1020_v51 = vstv %s2859_s17  ;;  %s2985_s16 = sld [smem:[#allocation2 + $0x11b]]  ;;  %s2987_s17 = sld [smem:[#allocation2 + $0x11f]] }
  0xda   :  { %v1024_v53 = vstv %s2865_s18  ;;  %v1028_v31 = vstv %s2867_s19  ;;  %v960_v55 = vadd.f32 %v959_v5, %v956_v45  ;;  %v1021_v39 = vmul.f32 %v2413_v36, %v1020_v51  ;;  %s2989_s18 = sld [smem:[#allocation2 + $0x10d]]  ;;  %s2993_s19 = sld [smem:[#allocation2 + $0x12e]] }
  0xdb   :  { %v987_v12 = vadd.f32 %v986_v27, %v983_v46  ;;  %v1014_v22 = vadd.f32 %v1013_v48, %v1010_v47  ;;  %1728 = vtanh.f32 %v920_v26  ;;  %v998_v57 = vmul.f32 %v2622_v0, %v997_v38 }
  0xdc   :  { %v1032_v30 = vstv %s2874_s20  ;;  %v1036_v52 = vstv %s2876_s21  ;;  %v963_v59 = vadd.f32 %v962_v58, %v960_v55  ;;  %v1025_v4 = vmul.f32 %v2461_v13, %v1024_v53  ;;  %s3001_s20 = sld [smem:[#allocation2 + $0x132]]  ;;  %s3003_s21 = sld [smem:[#allocation2 + $0x123]] }
  0xdd   :  { %v991_v60 = vadd.f32 %v990_v28, %v987_v12  ;;  %v1018_v62 = vadd.f32 %v1017_v49, %v1014_v22  ;;  %v1002_v7 = vmul.f32 %v2664_v50, %v1001_v40  ;;  %v1029_v8 = vmul.f32 %v2506_v6, %v1028_v31 }
  0xde   :  { %v1033_v10 = vmul.f32 %v2535_v61, %v1032_v30  ;;  %v1037_v2 = vmul.f32 %v2576_v33, %v1036_v52  ;;  %v2929_v11 = vpop.eup %1726  ;;  %v1040_v15 = vstv %s2882_s22  ;;  %v1044_v16 = vstv %s2886_s23  ;;  %s3009_s22 = sld [smem:[#allocation2 + $0x136]]  ;;  %s3011_s23 = sld [smem:[#allocation2 + $0x127]] }
  0xdf   :  { %v995_v58 = vadd.f32 %v994_v32, %v991_v60  ;;  %v1022_v14 = vadd.f32 %v1021_v39, %v1018_v62  ;;  %1730 = vtanh.f32 %v963_v59  ;;  %v1052_v9 = vstv %s2888_s24  ;;  %s3014_s24 = sld [smem:[#allocation2 + $0x12b]] }
  0xe0   :  { %v1055_v42 = vstv %s2894_s25  ;;  %v1059_v18 = vstv %s2896_s26  ;;  %v1053_v20 = vmul.f32 %v2290_v54, %v1052_v9  ;;  %v1063_v23 = vstv %s2900_s27  ;;  %s3016_s25 = sld [smem:[#allocation2 + $0x12f]]  ;;  %s3022_s26 = sld [smem:[#allocation2 + $0x110]] }
  0xe1   :  { %v999_v3 = vadd.f32 %v998_v57, %v995_v58  ;;  %v1026_v5 = vadd.f32 %v1025_v4, %v1022_v14  ;;  %v1056_v19 = vmul.f32 %v2304_v63, %v1055_v42  ;;  %v1060_v21 = vmul.f32 %v2338_v29, %v1059_v18  ;;  %s3024_s27 = sld [smem:[#allocation2 + $0x114]] }
  0xe2   :  { %v1067_v25 = vstv %s2906_s28  ;;  %v1071_v26 = vstv %s2908_s29  ;;  %v1064_v54 = vmul.f32 %v2413_v36, %v1063_v23  ;;  %v1041_v34 = vmul.f32 %v2622_v0, %v1040_v15  ;;  %s3027_s28 = sld [smem:[#allocation2 + $0x133]]  ;;  %s3033_s29 = sld [smem:[#allocation2 + $0x118]] }
  0xe3   :  { %v1003_v27 = vadd.f32 %v1002_v7, %v999_v3  ;;  %v1030_v28 = vadd.f32 %v1029_v8, %v1026_v5  ;;  %v1057_v32 = vadd.f32 %v1056_v19, %v1053_v20  ;;  %v1048_v63 = vstv %s2911_s4  ;;  %s3035_s4 = sld [smem:[#allocation2 + $0x11c]] }
  0xe4   :  { %v1075_v37 = vstv %s2916_s5  ;;  %v1079_v38 = vstv %s2918_s3  ;;  %v1068_v43 = vmul.f32 %v2461_v13, %v1067_v25  ;;  %v1045_v36 = vmul.f32 %v2664_v50, %v1044_v16  ;;  %s3041_s5 = sld [smem:[#allocation2 + $0x120]]  ;;  %s3047_s3 = sld [smem:[#allocation2 + $0x124]] }
  0xe5   :  { %v1006_v29 = vadd.f32 %v1005_v41, %v1003_v27  ;;  %v1034_v40 = vadd.f32 %v1033_v10, %v1030_v28  ;;  %v1061_v35 = vadd.f32 %v1060_v21, %v1057_v32  ;;  %v2966_v44 = vpop.eup %1728  ;;  %v1072_v45 = vmul.f32 %v2506_v6, %v1071_v26 }
  0xe6   :  { %v1076_v46 = vmul.f32 %v2535_v61, %v1075_v37  ;;  %v1080_v47 = vmul.f32 %v2576_v33, %v1079_v38  ;;  %v1083_v13 = vstv %s2927_s8  ;;  %v1087_v49 = vstv %s2933_s6  ;;  %s3050_s8 = sld [smem:[#allocation2 + $0x137]]  ;;  %s3052_s6 = sld [smem:[#allocation2 + $0x128]] }
  0xe7   :  { %1732 = vtanh.f32 %v1006_v29  ;;  %v1038_v41 = vadd.f32 %v1037_v2, %v1034_v40  ;;  %v1065_v48 = vadd.f32 %v1064_v54, %v1061_v35  ;;  %v1095_v6 = vstv %s2935_s9  ;;  %s3059_s9 = sld [smem:[#allocation2 + $0x12c]] }
  0xe8   :  { %v1098_v61 = vstv %s2940_s30  ;;  %v1102_v51 = vstv %s2942_s7  ;;  %v1096_v31 = vmul.f32 %v2780_v1, %v1095_v6  ;;  %v1106_v39 = vstv %s2946_s10  ;;  %s3061_s30 = sld [smem:[#allocation2 + $0x130]]  ;;  %s3067_s7 = sld [smem:[#allocation2 + $0x111]] }
  0xe9   :  { %v1042_v33 = vadd.f32 %v1041_v34, %v1038_v41  ;;  %v1069_v53 = vadd.f32 %v1068_v43, %v1065_v48  ;;  %v1099_v55 = vmul.f32 %v2793_v17, %v1098_v61  ;;  %v2995_v12 = vpop.eup %1730  ;;  %v1103_v22 = vmul.f32 %v2809_v24, %v1102_v51  ;;  %s3069_s10 = sld [smem:[#allocation2 + $0x115]] }
  0xea   :  { %v1110_v57 = vstv %s2952_s11  ;;  %v1114_v30 = vstv %s2954_s12  ;;  %v1107_v62 = vmul.f32 %v2847_v56, %v1106_v39  ;;  %v1084_v4 = vmul.f32 %v2622_v0, %v1083_v13  ;;  %s3073_s11 = sld [smem:[#allocation2 + $0x119]]  ;;  %s3079_s12 = sld [smem:[#allocation2 + $0x11d]] }
  0xeb   :  { %v1046_v52 = vadd.f32 %v1045_v36, %v1042_v33  ;;  %v1073_v59 = vadd.f32 %v1072_v45, %v1069_v53  ;;  %v1100_v60 = vadd.f32 %v1099_v55, %v1096_v31  ;;  %v1088_v7 = vmul.f32 %v2664_v50, %v1087_v49 }
  0xec   :  { %v1118_v8 = vstv %s2961_s15  ;;  %v1111_v14 = vmul.f32 %v2929_v11, %v1110_v57  ;;  %v1115_v0 = vmul.f32 %v2966_v44, %v1114_v30  ;;  %v1122_v15 = vstv %s2972_s0  ;;  %s3081_s15 = sld [smem:[#allocation2 + $0x121]]  ;;  %s3090_s0 = sld [smem:[#allocation2 + $0x134]] }
  0xed   :  { %v1049_v10 = vadd.f32 %v1048_v63, %v1046_v52  ;;  %v1077_v2 = vadd.f32 %v1076_v46, %v1073_v59  ;;  %v1104_v58 = vadd.f32 %v1103_v22, %v1100_v60  ;;  %v1119_v50 = vmul.f32 %v2995_v12, %v1118_v8 }
  0xee   :  { %v1138_v16 = vstv %s2974_s14  ;;  %v1141_v3 = vstv %s2977_s13  ;;  %v1145_v5 = vstv %s2979_s1  ;;  %v1149_v20 = vstv %s2985_s16  ;;  %s3095_s14 = sld [smem:[#allocation2 + $0x125]]  ;;  %s3100_s13 = sld [smem:[#allocation2 + $0x129]] }
  0xef   :  { %1734 = vtanh.f32 %v1049_v10  ;;  %v1081_v9 = vadd.f32 %v1080_v47, %v1077_v2  ;;  %v1108_v42 = vadd.f32 %v1107_v62, %v1104_v58  ;;  %v1139_v18 = vmul.f32 %v2780_v1, %v1138_v16  ;;  %s3107_s1 = sld [smem:[#allocation2 + $0x12d]]  ;;  %s3115_s16 = sld [smem:[#allocation2 + $0x131]] }
  0xf0   :  { %v1153_v19 = vstv %s2987_s17  ;;  %v1142_v26 = vmul.f32 %v2793_v17, %v1141_v3  ;;  %v1146_v27 = vmul.f32 %v2809_v24, %v1145_v5  ;;  %v1091_v28 = vstv %s2989_s18  ;;  %s3118_s17 = sld [smem:[#allocation2 + $0x138]]  ;;  %s3124_s18 = sld [smem:[#allocation2 + $0x135]] }
  0xf1   :  { %v3037_v21 = vpop.eup %1732  ;;  %v1085_v23 = vadd.f32 %v1084_v4, %v1081_v9  ;;  %v1112_v25 = vadd.f32 %v1111_v14, %v1108_v42  ;;  %v1126_v32 = vstv %s2993_s19  ;;  %v1130_v54 = vstv %s3001_s20  ;;  %s1659_s19 = sld [smem:[#allocation2 + $0x139]]  ;;  %s1660_s20 = sld [smem:[#allocation2 + $0x13a]] }
  0xf2   :  { %v1157_v34 = vstv %s3003_s21  ;;  %v1143_v38 = vadd.f32 %v1142_v26, %v1139_v18  ;;  %v1150_v29 = vmul.f32 %v2847_v56, %v1149_v20  ;;  %v1123_v40 = vmul.f32 %v3037_v21, %v1122_v15  ;;  %s1662_s21 = sld [smem:[#allocation2 + $0x13b]] }
  0xf3   :  { %v1089_v63 = vadd.f32 %v1088_v7, %v1085_v23  ;;  %v1116_v37 = vadd.f32 %v1115_v0, %v1112_v25  ;;  %v1134_v35 = vstv %s3009_s22  ;;  %v1154_v43 = vmul.f32 %v2929_v11, %v1153_v19  ;;  %s1664_s22 = sld [smem:[#allocation2 + $0x13c]] }
  0xf4   :  { %v1158_v36 = vmul.f32 %v2966_v44, %v1157_v34  ;;  %v1147_v47 = vadd.f32 %v1146_v27, %v1143_v38  ;;  %v1161_v41 = vstv %s3011_s23  ;;  %v1165_v48 = vstv %s3014_s24  ;;  %s1666_s23 = sld [smem:[#allocation2 + $0x13d]]  ;;  %s1661_s24 = sld [smem:[#allocation2 + $0x13e]] }
  0xf5   :  { %v1092_v45 = vadd.f32 %v1091_v28, %v1089_v63  ;;  %v1120_v46 = vadd.f32 %v1119_v50, %v1116_v37  ;;  %v1169_v13 = vstv %s3016_s25  ;;  %v1181_v49 = vstv %s3022_s26  ;;  %s1663_s25 = sld [smem:[#allocation2 + $0x13f]]  ;;  %s1665_s26 = sld [smem:[#allocation2 + $0x140]] }
  0xf6   :  { %v1184_v6 = vstv %s3024_s27  ;;  %v1151_v61 = vadd.f32 %v1150_v29, %v1147_v47  ;;  %v1173_v51 = vstv %s3027_s28  ;;  %v1182_v33 = vmul.f32 %v2780_v1, %v1181_v49  ;;  %s1667_s27 = sld [smem:[#allocation2 + $0x141]]  ;;  %s3140_s28 = sld [smem:[#allocation2 + $0x142]] }
  0xf7   :  { %1736 = vtanh.f32 %v1092_v45  ;;  %v1162_v53 = vmul.f32 %v2995_v12, %v1161_v41  ;;  %v1185_v31 = vmul.f32 %v2793_v17, %v1184_v6  ;;  %v1188_v55 = vstv %s3033_s29  ;;  %s1669_s29 = sld [smem:[#allocation2 + $0x143]] }
  0xf8   :  { %v1192_v22 = vstv %s3035_s4  ;;  %v1124_v57 = vadd.f32 %v1123_v40, %v1120_v46  ;;  %v1155_v30 = vadd.f32 %v1154_v43, %v1151_v61  ;;  %v1189_v52 = vmul.f32 %v2809_v24, %v1188_v55  ;;  %s1670_s4 = sld [smem:[#allocation2 + $0x144]] }
  0xf9   :  { %v3083_v39 = vpop.eup %1734  ;;  %v1196_v59 = vstv %s3041_s5  ;;  %v1186_v62 = vadd.f32 %v1185_v31, %v1182_v33  ;;  %v1193_v4 = vmul.f32 %v2847_v56, %v1192_v22  ;;  %v1200_v7 = vstv %s3047_s3  ;;  %s3142_s5 = sld [smem:[#allocation2 + $0x145]]  ;;  %s1672_s3 = sld [smem:[#allocation2 + $0x146]] }
  0xfa   :  { %v1127_v60 = vmul.f32 %v3083_v39, %v1126_v32  ;;  %v1159_v8 = vadd.f32 %v1158_v36, %v1155_v30  ;;  %v1166_v10 = vmul.f32 %v3037_v21, %v1165_v48  ;;  %v1177_v2 = vstv %s3050_s8  ;;  %s1812_s8 = smov [#allocation7]  }
  0xfb   :  { %v1204_v58 = vstv %s3052_s6  ;;  %v1170_v14 = vmul.f32 %v3083_v39, %v1169_v13  ;;  %v1190_v0 = vadd.f32 %v1189_v52, %v1186_v62  ;;  %v1197_v50 = vmul.f32 %v2929_v11, %v1196_v59  ;;  %s1337_s6 = sshll.u32 %s1812_s8, 4  ;;  %s1338_s6 = int_to_ptr.vmem [resolvable:$true] %s1337_s6 }
  0xfc   :  { %v1201_v15 = vmul.f32 %v2966_v44, %v1200_v7  ;;  %v1128_v16 = vadd.f32 %v1127_v60, %v1124_v57  ;;  %v1163_v9 = vadd.f32 %v1162_v53, %v1159_v8  ;;  %v1205_v42 = vmul.f32 %v2995_v12, %v1204_v58  ;;  %p1785_p0 = scmp.lt.s32.totalorder %s1338_s6, %s1338_s6 }
  0xfd   :  { %v1208_v18 = vstv %s3059_s9  ;;  %v1194_v3 = vadd.f32 %v1193_v4, %v1190_v0  ;;  %v1212_v5 = vstv %s3061_s30  ;;  %v1224_v20 = vstv %s3067_s7  ;;  %s1780_s9 = scalar_lea.vmem %s1338_s6, 128 }
  0xfe   :  { %v1227_v19 = vstv %s3069_s10  ;;  %v1167_v23 = vadd.f32 %v1166_v10, %v1163_v9  ;;  %v1225_v25 = vmul.f32 %v2780_v1, %v1224_v20  ;;  %v1231_v27 = vstv %s3073_s11  ;;  %p1781_p13 = scmp.ne.s32.totalorder %s1338_s6, %s1780_s9  ;;  %p1786_p1 = scmp.lt.s32.totalorder %s1780_s9, %s1780_s9 }
  0xff   :  { %v1228_v26 = vmul.f32 %v2793_v17, %v1227_v19  ;;  %v1198_v28 = vadd.f32 %v1197_v50, %v1194_v3  ;;  %v1232_v32 = vmul.f32 %v2809_v24, %v1231_v27  ;;  %v1235_v34 = vstv %s3079_s12 }
 0x100   :  { %v1239_v63 = vstv %s3081_s15  ;;  %v1171_v38 = vadd.f32 %v1170_v14, %v1167_v23  ;;  %v1209_v29 = vmul.f32 %v3037_v21, %v1208_v18  ;;  %v1236_v17 = vmul.f32 %v2847_v56, %v1235_v34  ;;  %p1787_p2 = por %p1786_p1, %p1785_p0 }
 0x101   :  { %v1737_v37 = vpop.eup %1736  ;;  %v1229_v1 = vadd.f32 %v1228_v26, %v1225_v25  ;;  %v1202_v24 = vadd.f32 %v1201_v15, %v1198_v28  ;;  %v1216_v36 = vstv %s3090_s0  ;;  %v1213_v45 = vmul.f32 %v3083_v39, %v1212_v5 }
 0x102   :  { %v1131_v40 = vmul.f32 %v1737_v37, %v1130_v54  ;;  %v1174_v43 = vmul.f32 %v1737_v37, %v1173_v51  ;;  %v1240_v47 = vmul.f32 %v2929_v11, %v1239_v63  ;;  %v1243_v41 = vstv %s3095_s14  ;;  %p1788_p3 = pnand %p1787_p2, %p1781_p13 }
 0x103   :  { %v1233_v46 = vadd.f32 %v1232_v32, %v1229_v1  ;;  %v1206_v56 = vadd.f32 %v1205_v42, %v1202_v24  ;;  %v1247_v49 = vstv %s3100_s13  ;;  %v1244_v54 = vmul.f32 %v2966_v44, %v1243_v41 }
 0x104   :  { %v1132_v48 = vadd.f32 %v1131_v40, %v1128_v16  ;;  %v1175_v13 = vadd.f32 %v1174_v43, %v1171_v38  ;;  %v1217_v33 = vmul.f32 %v1737_v37, %v1216_v36  ;;  %v1251_v53 = vstv %s3107_s1 }
 0x105   :  { %v1237_v6 = vadd.f32 %v1236_v17, %v1233_v46  ;;  %v1210_v51 = vadd.f32 %v1209_v29, %v1206_v56  ;;  %v1248_v11 = vmul.f32 %v2995_v12, %v1247_v49  ;;  %v1255_v57 = vstv %s3115_s16 }
 0x106   :  { %v1135_v61 = vadd.f32 %v1134_v35, %v1132_v48  ;;  %v1178_v31 = vadd.f32 %v1177_v2, %v1175_v13  ;;  %v1220_v30 = vstv %s3118_s17  ;;  %v1252_v59 = vmul.f32 %v3037_v21, %v1251_v53 }
 0x107   :  { %v1241_v55 = vadd.f32 %v1240_v47, %v1237_v6  ;;  %v1214_v22 = vadd.f32 %v1213_v45, %v1210_v51  ;;  %v1259_v44 = vstv %s3124_s18  ;;  %v1256_v35 = vmul.f32 %v3083_v39, %v1255_v57 }
 0x108   :  { %1738 = vtanh.f32 %v1135_v61  ;;  %v1260_v8 = vmul.f32 %v1737_v37, %v1259_v44  ;;  %v1263_v12 = vstv %s1659_s19  ;;  %v1286_v37 = vstv %s1660_s20 }
 0x109   :  { %v1245_v52 = vadd.f32 %v1244_v54, %v1241_v55  ;;  %v1218_v60 = vadd.f32 %v1217_v33, %v1214_v22  ;;  %1740 = vtanh.f32 %v1178_v31  ;;  %v1293_v38 = vstv %s1662_s21 }
 0x10a   :  { %v1300_v29 = vstv %s1664_s22  ;;  %v1307_v1 = vstv %s1666_s23  ;;  %v1289_v36 = vstv %s1661_s24  ;;  %v1296_v45 = vstv %s1663_s25 }
 0x10b   :  { %v1249_v62 = vadd.f32 %v1248_v11, %v1245_v52  ;;  %v1221_v4 = vadd.f32 %v1220_v30, %v1218_v60  ;;  %v1303_v46 = vstv %s1665_s26  ;;  %v1310_v47 = vstv %s1667_s27 }
 0x10c   :  { %v1313_v49 = vstv %s3140_s28  ;;  %v1316_v6 = vstv %s1669_s29  ;;  %v1320_v54 = vstv %s1670_s4  ;;  %v1324_v31 = vstv %s3142_s5 }
 0x10d   :  { %v1253_v7 = vadd.f32 %v1252_v59, %v1249_v62  ;;  %1742 = vtanh.f32 %v1221_v4  ;;  %v1328_v59 = vstv %s1672_s3 }
 0x10f   :  { %v1257_v10 = vadd.f32 %v1256_v35, %v1253_v7 }
 0x111   :  { %v1261_v2 = vadd.f32 %v1260_v8, %v1257_v10 }
 0x112   :  { %v1739_v14 = vpop.eup %1738 }
 0x113   :  { %v1264_v58 = vadd.f32 %v1263_v12, %v1261_v2  ;;  %v1741_v0 = vpop.eup %1740 }
 0x114   :  { %v1266_v50 = vadd.f32 %v1741_v0, %v1739_v14 }
 0x115   :  { %1744 = vtanh.f32 %v1264_v58 }
 0x117   :  { %v1743_v21 = vpop.eup %1742 }
 0x118   :  { %v1267_v15 = vadd.f32 %v1743_v21, %v1266_v50 }
 0x11f   :  { %v1745_v16 = vpop.eup %1744 }
 0x120   :  { %v1268_v9 = vadd.f32 %v1745_v16, %v1267_v15 }
 0x122   :  { %v1269_v42 = vmul.f32 0.25, %v1268_v9 }
 0x124   :  { %v1270_v18 = vsub.f32 %v1739_v14, %v1269_v42  ;;  %v1271_v3 = vsub.f32 %v1741_v0, %v1269_v42  ;;  %v1272_v39 = vsub.f32 %v1743_v21, %v1269_v42  ;;  %v1273_v5 = vsub.f32 %v1745_v16, %v1269_v42 }
 0x126   :  { %v1274_v20 = vmul.f32 %v1270_v18, %v1270_v18  ;;  %v1275_v19 = vmul.f32 %v1271_v3, %v1271_v3  ;;  %v1277_v23 = vmul.f32 %v1272_v39, %v1272_v39  ;;  %v1279_v26 = vmul.f32 %v1273_v5, %v1273_v5 }
 0x128   :  { %v1276_v25 = vadd.f32 %v1275_v19, %v1274_v20 }
 0x12a   :  { %v1278_v27 = vadd.f32 %v1277_v23, %v1276_v25 }
 0x12c   :  { %v1280_v28 = vadd.f32 %v1279_v26, %v1278_v27 }
 0x12e   :  { %v1281_v32 = vmul.f32 0.25, %v1280_v28 }
 0x130   :  { %v1282_v34 = vadd.f32 1e-05, %v1281_v32 }
 0x132   :  { %1746 = vrsqrt.f32 %v1282_v34 }
 0x13c   :  { %v1747_v63 = vpop.eup %1746 }
 0x13d   :  { %v1284_v17 = vmul.f32 %v1747_v63, %v1270_v18  ;;  %v1291_v40 = vmul.f32 %v1747_v63, %v1271_v3  ;;  %v1298_v43 = vmul.f32 %v1747_v63, %v1272_v39  ;;  %v1305_v24 = vmul.f32 %v1747_v63, %v1273_v5 }
 0x13f   :  { %v1287_v41 = vmul.f32 %v1286_v37, %v1284_v17  ;;  %v1294_v48 = vmul.f32 %v1293_v38, %v1291_v40  ;;  %v1301_v13 = vmul.f32 %v1300_v29, %v1298_v43  ;;  %v1308_v56 = vmul.f32 %v1307_v1, %v1305_v24 }
 0x141   :  { %v1290_v61 = vadd.f32 %v1289_v36, %v1287_v41  ;;  %v1297_v51 = vadd.f32 %v1296_v45, %v1294_v48  ;;  %v1304_v33 = vadd.f32 %v1303_v46, %v1301_v13  ;;  %v1311_v53 = vadd.f32 %v1310_v47, %v1308_v56 }
 0x143   :  { %v1314_v55 = vmul.f32 %v1313_v49, %v1290_v61  ;;  %v1317_v11 = vmul.f32 %v1316_v6, %v1297_v51  ;;  %v1321_v22 = vmul.f32 %v1320_v54, %v1304_v33  ;;  %v1325_v30 = vmul.f32 %v1324_v31, %v1311_v53 }
 0x145   :  { %v1318_v57 = vadd.f32 %v1317_v11, %v1314_v55 }
 0x147   :  { %v1322_v52 = vadd.f32 %v1321_v22, %v1318_v57 }
 0x149   :  { %v1326_v60 = vadd.f32 %v1325_v30, %v1322_v52 }
 0x14b   :  { %v1329_v44 = vadd.f32 %v1328_v59, %v1326_v60 }
 0x14d   :  { %1330 = vst [vmem:[#allocation7] sm:$0xff] %v1329_v44 }
 0x14e   :  { %1791 = shalt.err (!%p1788_p3)
}
 0x14f   :  { %s1792_s10 = scalar_lea.hbm %s3160_s2, 128 }
 0x150   :  { %p1793_p4 = scmp.ne.s32.totalorder %s3160_s2, %s1792_s10  ;;  %p1796_p5 = scmp.lt.u32.totalorder %s1792_s10, %s3160_s2 }
 0x152   :  { %p1798_p6 = pnand %p1796_p5, %p1793_p4 }
 0x154   :  { %1801 = shalt.err (!%p1798_p6)
}
 0x155   :  { %1340 = dma.vmem_to_hbm [thread:$0]  %s1338_s6, 128, %s3160_s2, [#allocation4]  }
 0x156   :  { %1806 = dma.done.wait [#allocation4], 128  }
 0x157   :  { %1807 = vsyncadd [#allocation4], 4294967168 }
 0x158   :  { %1344 = vsyncpa [#allocation3], 1 }
 0x159   :  { %1345 = vsyncpa [#allocation4], 1 }
 0x15a   :  { %1346 = vsyncpa [#allocation5], 1 }

</bundles_post_ra>
